<compile_context>
chip_gen: v6e
topology: v6e:2x2x1
jax: 0.10.0
libtpu: 0.0.40
codegen_flags: <defaults>
</compile_context>

<pallas_src>
import functools

import jax
import jax.numpy as jnp
from jax import lax
from jax.experimental import pallas as pl
from jax.experimental.pallas import tpu as pltpu


# --------------------------------------------------------------------------- #
# Fused attention-block kernel
#   grid = (B, L // q_block, L // kv_block); flash-style sweep over the KV axis.
# --------------------------------------------------------------------------- #
def _attn_block_kernel(x_q_ref, x_kv_ref, wq_ref, bq_ref, wkv_ref, bkv_ref,
                       wo_ref, bo_ref, o_ref,
                       q_sc, kv_sc, ml_sc, acc_sc, *,
                       n_heads, d_k, tq, scale, compute_dtype):
    j = pl.program_id(2)
    HD = n_heads * d_k
    cd = compute_dtype

    # ---- prologue: first KV tile of this (batch, q-tile) --------------------- #
    @pl.when(j == 0)
    def _():
        q = jnp.dot(x_q_ref[...], wq_ref[...],
                    preferred_element_type=jnp.float32) + bq_ref[...]       # (tq, HD) f32
        q_sc[...] = (q * scale).astype(cd)                                  # pre-scaled Q
        ml_sc[:, :n_heads] = jnp.full((tq, n_heads), -jnp.inf, jnp.float32)  # running max
        ml_sc[:, n_heads:] = jnp.zeros((tq, n_heads), jnp.float32)           # running denom
        acc_sc[...] = jnp.zeros_like(acc_sc)

    # ---- K/V for this tile: one fused (tkv,C)@(C,2HD) matmul, staged to VMEM - #
    kv = jnp.dot(x_kv_ref[...], wkv_ref[...],
                 preferred_element_type=jnp.float32) + bkv_ref[...]          # (tkv, 2HD) f32
    kv_sc[...] = kv.astype(cd)                                               # relieve vregs

    # ---- online-softmax accumulate (static unroll over heads) ---------------- #
    # TODO(synk): for d_k < 128, pack multiple heads per MXU pass (block-diagonal K)
    # so the S/PV contractions stay 128/256-wide on v6e/v7x.
    for h in range(n_heads):
        q = q_sc[:, h * d_k:(h + 1) * d_k]                       # (tq, d_k)  cd
        k = kv_sc[:, h * d_k:(h + 1) * d_k]                      # (tkv, d_k) cd
        v = kv_sc[:, HD + h * d_k:HD + (h + 1) * d_k]            # (tkv, d_k) cd

        s = lax.dot_general(q, k, (((1,), (1,)), ((), ())),
                            preferred_element_type=jnp.float32)  # (tq, tkv)

        m_prev = ml_sc[:, h:h + 1]
        l_prev = ml_sc[:, n_heads + h:n_heads + h + 1]
        m_new = jnp.maximum(m_prev, jnp.max(s, axis=-1, keepdims=True))
        alpha = jnp.exp(m_prev - m_new)
        p = jnp.exp(s - m_new)

        ml_sc[:, n_heads + h:n_heads + h + 1] = (
            alpha * l_prev + jnp.sum(p, axis=-1, keepdims=True))
        acc_sc[:, h * d_k:(h + 1) * d_k] = (
            alpha * acc_sc[:, h * d_k:(h + 1) * d_k]
            + jnp.dot(p.astype(cd), v, preferred_element_type=jnp.float32))
        ml_sc[:, h:h + 1] = m_new

    # ---- epilogue (last KV tile): normalize in place, out-proj, residual ----- #
    @pl.when(j == pl.num_programs(2) - 1)
    def _():
        for h in range(n_heads):
            inv_l = pl.reciprocal(ml_sc[:, n_heads + h:n_heads + h + 1],
                                  approx=True)                               # EUP slot
            acc_sc[:, h * d_k:(h + 1) * d_k] = acc_sc[:, h * d_k:(h + 1) * d_k] * inv_l
        y = jnp.dot(acc_sc[...].astype(cd), wo_ref[...],
                    preferred_element_type=jnp.float32) + bo_ref[...]        # (tq, C) f32
        o_ref[...] = (y + x_q_ref[...].astype(jnp.float32)).astype(o_ref.dtype)


def _pick_vmem_limit():
    """Generation-aware scoped-VMEM limit: leave headroom on v7x (64 MiB/TC)."""
    try:
        cap = pltpu.get_tpu_info().vmem_capacity_bytes
    except Exception:
        cap = 64 * 1024 * 1024
    if cap <= 64 * 1024 * 1024:
        return 48 * 1024 * 1024     # v7x
    return 96 * 1024 * 1024         # v5e / v6e (128 MiB physical)


def _pick_block(L, cap):
    """Largest divisor of L that is <= cap."""
    for b in range(min(L, cap), 0, -1):
        if L % b == 0:
            return b
    return L


def custom_attention_block_forward(x_nchw, params, n_heads, d_k, *,
                                   q_block=None, kv_block=None,
                                   compute_dtype=jnp.bfloat16,
                                   vmem_limit_bytes=None):
    """Forward pass of CustomAttentionBlock. x_nchw: (B, C, H, W)."""
    B, C, H, W = x_nchw.shape
    L = H * W
    HD = n_heads * d_k
    cd = compute_dtype

    # NCHW -> (B, L, C) lane-dense token slab (seq index = h*W + w, like PyTorch view).
    # Stream activations in compute_dtype (halves the dominant HBM->VMEM DMA in bf16).
    x = jnp.transpose(x_nchw.reshape(B, C, L), (0, 2, 1)).astype(cd)

    # Re-pack the fused PyTorch projection (3*nh*dk, C) into [Q | KV] slabs so the
    # kernel issues exactly two lane-dense projection matmuls. Free in XLA.
    wqkv_t = params['w_qkv'].T.reshape(C, n_heads, 3, d_k)               # (C, nh, 3, dk)
    wq = wqkv_t[:, :, 0, :].reshape(C, HD)
    wkv = jnp.concatenate([wqkv_t[:, :, 1, :].reshape(C, HD),
                           wqkv_t[:, :, 2, :].reshape(C, HD)], axis=-1)  # (C, 2*HD)
    bqkv = params['b_qkv'].reshape(n_heads, 3, d_k)
    bq = bqkv[:, 0, :].reshape(1, HD).astype(jnp.float32)
    bkv = jnp.concatenate([bqkv[:, 1, :].reshape(1, HD),
                           bqkv[:, 2, :].reshape(1, HD)], axis=-1).astype(jnp.float32)
    wo = params['w_out'].T                                               # (HD, C)
    bo = params['b_out'].reshape(1, C).astype(jnp.float32)

    wq, wkv, wo = wq.astype(cd), wkv.astype(cd), wo.astype(cd)           # bf16 halves weight DMA

    # Tile sizes: kv_block multiple of 256 fills the v6e/v7x MXU N dim; q_block sets
    # the scratch/VMEM footprint (O(tq*HD)) so the kernel scales past small L.
    if kv_block is None:
        kv_block = _pick_block(L, 512)
    if q_block is None:
        q_block = _pick_block(L, 256)
    assert L % kv_block == 0, "H*W must be divisible by kv_block"
    assert L % q_block == 0, "H*W must be divisible by q_block"
    n_kv = L // kv_block
    n_q = L // q_block
    scale = float(d_k) ** -0.5

    if vmem_limit_bytes is None:
        vmem_limit_bytes = _pick_vmem_limit()

    kern = functools.partial(_attn_block_kernel, n_heads=n_heads, d_k=d_k,
                             tq=q_block, scale=scale, compute_dtype=cd)

    out = pl.pallas_call(
        kern,
        out_shape=jax.ShapeDtypeStruct((B, L, C), jnp.float32),
        grid=(B, n_q, n_kv),
        in_specs=[
            # x view for the Q tile (resident over the KV axis): Q proj + residual.
            pl.BlockSpec((None, q_block, C), lambda b, i, j: (b, i, 0)),
            # x view for the KV tile: K/V projection input.
            pl.BlockSpec((None, kv_block, C), lambda b, i, j: (b, j, 0)),
            pl.BlockSpec((C, HD), lambda b, i, j: (0, 0)),           # Wq
            pl.BlockSpec((1, HD), lambda b, i, j: (0, 0)),           # bq
            pl.BlockSpec((C, 2 * HD), lambda b, i, j: (0, 0)),       # [Wk | Wv]
            pl.BlockSpec((1, 2 * HD), lambda b, i, j: (0, 0)),       # [bk | bv]
            pl.BlockSpec((HD, C), lambda b, i, j: (0, 0)),           # Wo^T
            pl.BlockSpec((1, C), lambda b, i, j: (0, 0)),            # bo
        ],
        out_specs=pl.BlockSpec((None, q_block, C), lambda b, i, j: (b, i, 0)),
        scratch_shapes=[
            pltpu.VMEM((q_block, HD), cd),                  # pre-scaled Q (compute dtype)
            pltpu.VMEM((kv_block, 2 * HD), cd),             # staged [K | V]
            pltpu.VMEM((q_block, 2 * n_heads), jnp.float32),  # merged [m | l]
            pltpu.VMEM((q_block, HD), jnp.float32),         # output accumulator
        ],
        compiler_params=pltpu.CompilerParams(
            dimension_semantics=("parallel", "parallel", "arbitrary"),
            vmem_limit_bytes=vmem_limit_bytes,
        ),
    )(x, x, wq, bq, wkv, bkv, wo, bo)

    # (B, L, C) -> NCHW, like res.permute(0, 2, 1).view(B, C, H, W)
    return jnp.transpose(out, (0, 2, 1)).reshape(B, C, H, W)


# --------------------------------------------------------------------------- #
# Pure-JAX reference (mirrors the PyTorch forward op-for-op)
# --------------------------------------------------------------------------- #
def ref_forward(x_nchw, params, n_heads, d_k):
    hp = lax.Precision.HIGHEST
    B, C, H, W = x_nchw.shape
    x = jnp.transpose(x_nchw.reshape(B, C, H * W), (0, 2, 1))            # (B, L, C)
    qkv = jnp.einsum('blc,oc->blo', x, params['w_qkv'], precision=hp) + params['b_qkv']
    qkv = qkv.reshape(B, -1, n_heads, 3 * d_k)
    q, k, v = jnp.split(qkv, 3, axis=-1)
    attn = jnp.einsum('bihd,bjhd->bijh', q, k, precision=hp) * (d_k ** -0.5)
    attn = jax.nn.softmax(attn, axis=2)
    res = jnp.einsum('bijh,bjhd->bihd', attn, v, precision=hp)
    res = res.reshape(B, -1, n_heads * d_k)
    res = jnp.einsum('bld,cd->blc', res, params['w_out'], precision=hp) + params['b_out']
    res = res + x
    return jnp.transpose(res, (0, 2, 1)).reshape(B, C, H, W)


# --------------------------------------------------------------------------- #
# Deterministic parameter init + run
# --------------------------------------------------------------------------- #
def init_params(key, n_channels, n_heads, d_k):
    HD = n_heads * d_k
    k1, k2, k3, k4 = jax.random.split(key, 4)
    return {
        # PyTorch layouts: nn.Linear(C, 3*HD).weight is (3*HD, C); Linear(HD, C).weight is (C, HD)
        'w_qkv': 0.08 * jax.random.normal(k1, (3 * HD, n_channels), jnp.float32),
        'b_qkv': 0.02 * jax.random.normal(k2, (3 * HD,), jnp.float32),
        'w_out': 0.08 * jax.random.normal(k3, (n_channels, HD), jnp.float32),
        'b_out': 0.02 * jax.random.normal(k4, (n_channels,), jnp.float32),
    }


if __name__ == "__main__":
    B, C, H, W = 2, 128, 16, 16          # L = 256 tokens, lane-dense C
    n_heads = 2
    d_k = 128                            # lane-aligned head dim (HD = 256)

    key = jax.random.PRNGKey(0)
    kx, kp = jax.random.split(key)
    x = jax.random.normal(kx, (B, C, H, W), jnp.float32)   # PyTorch NCHW input
    params = init_params(kp, C, n_heads, d_k)

    ref = jax.block_until_ready(ref_forward(x, params, n_heads, d_k))

    # f32-operand path; 2 q-tiles x 2 kv-tiles exercises q-tiling + online softmax.
    out_f32 = jax.block_until_ready(
        custom_attention_block_forward(x, params, n_heads, d_k,
                                       q_block=128, kv_block=128,
                                       compute_dtype=jnp.float32))
    assert out_f32.shape == (B, C, H, W), out_f32.shape
    err32 = float(jnp.max(jnp.abs(out_f32 - ref)))
    assert err32 < 2e-2, err32

    # Default path: bf16 MXU operands + f32 accumulation (fast on v5e/v6e/v7x).
    out_bf16 = jax.block_until_ready(
        custom_attention_block_forward(x, params, n_heads, d_k,
                                       q_block=128, kv_block=128))
    assert out_bf16.shape == (B, C, H, W), out_bf16.shape
    err16 = float(jnp.max(jnp.abs(out_bf16 - ref)))
    assert err16 < 8e-2, err16

    print("KERNEL_OK")
</pallas_src>

<mosaic_0001>
module attributes {stable_mosaic.version = 11 : i64} {
  func.func @_attn_block_kernel(%arg0: i32, %arg1: i32, %arg2: i32, %arg3: memref<1x128x128xf32, #tpu.memory_space<vmem>>, %arg4: memref<1x128x128xf32, #tpu.memory_space<vmem>>, %arg5: memref<128x256xf32, #tpu.memory_space<vmem>>, %arg6: memref<1x256xf32, #tpu.memory_space<vmem>>, %arg7: memref<128x512xf32, #tpu.memory_space<vmem>>, %arg8: memref<1x512xf32, #tpu.memory_space<vmem>>, %arg9: memref<256x128xf32, #tpu.memory_space<vmem>>, %arg10: memref<1x128xf32, #tpu.memory_space<vmem>>, %arg11: memref<1x128x128xf32, #tpu.memory_space<vmem>>, %arg12: memref<128x256xf32, #tpu.memory_space<vmem>>, %arg13: memref<128x512xf32, #tpu.memory_space<vmem>>, %arg14: memref<128x4xf32, #tpu.memory_space<vmem>>, %arg15: memref<128x256xf32, #tpu.memory_space<vmem>>) attributes {dimension_semantics = [#tpu.dimension_semantics<parallel>, #tpu.dimension_semantics<parallel>, #tpu.dimension_semantics<arbitrary>], iteration_bounds = array<i64: 2, 2, 2>, scalar_prefetch = 0 : i64, scratch_operands = 4 : i64, tpu.core_type = #tpu.core_type<tc>, window_params = [{transform_indices = @transform_0, window_bounds = array<i64: 1, 128, 128>}, {transform_indices = @transform_1, window_bounds = array<i64: 1, 128, 128>}, {pipeline_mode = #tpu.pipeline_mode<synchronous>, transform_indices = @transform_2, window_bounds = array<i64: 128, 256>}, {pipeline_mode = #tpu.pipeline_mode<synchronous>, transform_indices = @transform_3, window_bounds = array<i64: 1, 256>}, {pipeline_mode = #tpu.pipeline_mode<synchronous>, transform_indices = @transform_4, window_bounds = array<i64: 128, 512>}, {pipeline_mode = #tpu.pipeline_mode<synchronous>, transform_indices = @transform_5, window_bounds = array<i64: 1, 512>}, {pipeline_mode = #tpu.pipeline_mode<synchronous>, transform_indices = @transform_6, window_bounds = array<i64: 256, 128>}, {pipeline_mode = #tpu.pipeline_mode<synchronous>, transform_indices = @transform_7, window_bounds = array<i64: 1, 128>}, {transform_indices = @transform_8, window_bounds = array<i64: 1, 128, 128>}]} {
    %c0_i32 = arith.constant 0 : i32
    %0 = arith.cmpi eq, %arg2, %c0_i32 : i32
    %1 = arith.extui %0 : i1 to i32
    %c0_i32_0 = arith.constant 0 : i32
    %2 = arith.cmpi ne, %1, %c0_i32_0 : i32
    scf.if %2 {
      %c0_48 = arith.constant 0 : index
      %c0_49 = arith.constant 0 : index
      %c0_50 = arith.constant 0 : index
      %66 = vector.load %arg3[%c0_48, %c0_49, %c0_50] : memref<1x128x128xf32, #tpu.memory_space<vmem>>, vector<1x128x128xf32>
      %67 = vector.shape_cast %66 : vector<1x128x128xf32> to vector<128x128xf32>
      %c0_51 = arith.constant 0 : index
      %c0_52 = arith.constant 0 : index
      %68 = vector.load %arg5[%c0_51, %c0_52] : memref<128x256xf32, #tpu.memory_space<vmem>>, vector<128x256xf32>
      %cst_53 = arith.constant dense<0.000000e+00> : vector<128x256xf32>
      %69 = tpu.matmul %67, %68, %cst_53 {dimension_numbers = #tpu.dot_dimension_numbers<[1], [0], [0], [1], [0, 0, 1, 1], [], []>} : vector<128x128xf32>, vector<128x256xf32>, vector<128x256xf32> -> vector<128x256xf32>
      %c0_54 = arith.constant 0 : index
      %c0_55 = arith.constant 0 : index
      %70 = vector.load %arg6[%c0_54, %c0_55] : memref<1x256xf32, #tpu.memory_space<vmem>>, vector<1x256xf32>
      %71 = vector.broadcast %70 : vector<1x256xf32> to vector<128x256xf32>
      %72 = arith.addf %69, %71 : vector<128x256xf32>
      %cst_56 = arith.constant 0.0883883461 : f32
      %73 = vector.broadcast %cst_56 : f32 to vector<128x256xf32>
      %74 = arith.mulf %72, %73 : vector<128x256xf32>
      %c0_57 = arith.constant 0 : index
      %c0_58 = arith.constant 0 : index
      %75 = vector.load %arg12[%c0_57, %c0_58] : memref<128x256xf32, #tpu.memory_space<vmem>>, vector<128x256xf32>
      tpu.vector_store %arg12[%c0_57, %c0_58], %74 {strides = array<i32>} : memref<128x256xf32, #tpu.memory_space<vmem>>, vector<128x256xf32>,
      %cst_59 = arith.constant 0xFF800000 : f32
      %76 = vector.broadcast %cst_59 : f32 to vector<128x2xf32>
      %c0_60 = arith.constant 0 : index
      %c0_61 = arith.constant 0 : index
      %77 = vector.load %arg14[%c0_60, %c0_61] : memref<128x4xf32, #tpu.memory_space<vmem>>, vector<128x2xf32>
      tpu.vector_store %arg14[%c0_60, %c0_61], %76 {strides = array<i32>} : memref<128x4xf32, #tpu.memory_space<vmem>>, vector<128x2xf32>,
      %cst_62 = arith.constant 0.000000e+00 : f32
      %78 = vector.broadcast %cst_62 : f32 to vector<128x2xf32>
      %c0_63 = arith.constant 0 : index
      %c2_64 = arith.constant 2 : index
      %79 = vector.load %arg14[%c0_63, %c2_64] : memref<128x4xf32, #tpu.memory_space<vmem>>, vector<128x2xf32>
      tpu.vector_store %arg14[%c0_63, %c2_64], %78 {strides = array<i32>} : memref<128x4xf32, #tpu.memory_space<vmem>>, vector<128x2xf32>,
      %cst_65 = arith.constant 0.000000e+00 : f32
      %80 = vector.broadcast %cst_65 : f32 to vector<128x256xf32>
      %c0_66 = arith.constant 0 : index
      %c0_67 = arith.constant 0 : index
      %81 = vector.load %arg15[%c0_66, %c0_67] : memref<128x256xf32, #tpu.memory_space<vmem>>, vector<128x256xf32>
      tpu.vector_store %arg15[%c0_66, %c0_67], %80 {strides = array<i32>} : memref<128x256xf32, #tpu.memory_space<vmem>>, vector<128x256xf32>,
    } else {
    }
    %c0 = arith.constant 0 : index
    %c0_1 = arith.constant 0 : index
    %c0_2 = arith.constant 0 : index
    %3 = vector.load %arg4[%c0, %c0_1, %c0_2] : memref<1x128x128xf32, #tpu.memory_space<vmem>>, vector<1x128x128xf32>
    %4 = vector.shape_cast %3 : vector<1x128x128xf32> to vector<128x128xf32>
    %c0_3 = arith.constant 0 : index
    %c0_4 = arith.constant 0 : index
    %5 = vector.load %arg7[%c0_3, %c0_4] : memref<128x512xf32, #tpu.memory_space<vmem>>, vector<128x512xf32>
    %cst = arith.constant dense<0.000000e+00> : vector<128x512xf32>
    %6 = tpu.matmul %4, %5, %cst {dimension_numbers = #tpu.dot_dimension_numbers<[1], [0], [0], [1], [0, 0, 1, 1], [], []>} : vector<128x128xf32>, vector<128x512xf32>, vector<128x512xf32> -> vector<128x512xf32>
    %c0_5 = arith.constant 0 : index
    %c0_6 = arith.constant 0 : index
    %7 = vector.load %arg8[%c0_5, %c0_6] : memref<1x512xf32, #tpu.memory_space<vmem>>, vector<1x512xf32>
    %8 = vector.broadcast %7 : vector<1x512xf32> to vector<128x512xf32>
    %9 = arith.addf %6, %8 : vector<128x512xf32>
    %c0_7 = arith.constant 0 : index
    %c0_8 = arith.constant 0 : index
    %10 = vector.load %arg13[%c0_7, %c0_8] : memref<128x512xf32, #tpu.memory_space<vmem>>, vector<128x512xf32>
    tpu.vector_store %arg13[%c0_7, %c0_8], %9 {strides = array<i32>} : memref<128x512xf32, #tpu.memory_space<vmem>>, vector<128x512xf32>,
    %c0_9 = arith.constant 0 : index
    %c0_10 = arith.constant 0 : index
    %11 = vector.load %arg12[%c0_9, %c0_10] : memref<128x256xf32, #tpu.memory_space<vmem>>, vector<128x128xf32>
    %c0_11 = arith.constant 0 : index
    %c0_12 = arith.constant 0 : index
    %12 = vector.load %arg13[%c0_11, %c0_12] : memref<128x512xf32, #tpu.memory_space<vmem>>, vector<128x128xf32>
    %c0_13 = arith.constant 0 : index
    %c256 = arith.constant 256 : index
    %13 = vector.load %arg13[%c0_13, %c256] : memref<128x512xf32, #tpu.memory_space<vmem>>, vector<128x128xf32>
    %cst_14 = arith.constant dense<0.000000e+00> : vector<128x128xf32>
    %14 = tpu.matmul %11, %12, %cst_14 {dimension_numbers = #tpu.dot_dimension_numbers<[1], [1], [0], [0], [0, 0, 1, 0], [], []>} : vector<128x128xf32>, vector<128x128xf32>, vector<128x128xf32> -> vector<128x128xf32>
    %c0_15 = arith.constant 0 : index
    %c0_16 = arith.constant 0 : index
    %15 = vector.load %arg14[%c0_15, %c0_16] : memref<128x4xf32, #tpu.memory_space<vmem>>, vector<128x1xf32>
    %c0_17 = arith.constant 0 : index
    %c2 = arith.constant 2 : index
    %16 = vector.load %arg14[%c0_17, %c2] : memref<128x4xf32, #tpu.memory_space<vmem>>, vector<128x1xf32>
    %cst_18 = arith.constant dense<0xFF800000> : vector<128xf32>
    %17 = vector.multi_reduction <maximumf>, %14, %cst_18 [1] : vector<128x128xf32> to vector<128xf32>
    %18 = vector.shape_cast %17 : vector<128xf32> to vector<128x1xf32>
    %19 = arith.maximumf %15, %18 : vector<128x1xf32>
    %20 = arith.subf %15, %19 : vector<128x1xf32>
    %21 = math.exp %20 : vector<128x1xf32>
    %22 = vector.broadcast %19 : vector<128x1xf32> to vector<128x128xf32>
    %23 = arith.subf %14, %22 : vector<128x128xf32>
    %24 = math.exp %23 : vector<128x128xf32>
    %25 = arith.mulf %21, %16 : vector<128x1xf32>
    %cst_19 = arith.constant dense<0.000000e+00> : vector<128xf32>
    %26 = vector.multi_reduction <add>, %24, %cst_19 [1] : vector<128x128xf32> to vector<128xf32>
    %27 = vector.shape_cast %26 : vector<128xf32> to vector<128x1xf32>
    %28 = arith.addf %25, %27 : vector<128x1xf32>
    %c0_20 = arith.constant 0 : index
    %c2_21 = arith.constant 2 : index
    %29 = vector.load %arg14[%c0_20, %c2_21] : memref<128x4xf32, #tpu.memory_space<vmem>>, vector<128x1xf32>
    tpu.vector_store %arg14[%c0_20, %c2_21], %28 {strides = array<i32>} : memref<128x4xf32, #tpu.memory_space<vmem>>, vector<128x1xf32>,
    %c0_22 = arith.constant 0 : index
    %c0_23 = arith.constant 0 : index
    %30 = vector.load %arg15[%c0_22, %c0_23] : memref<128x256xf32, #tpu.memory_space<vmem>>, vector<128x128xf32>
    %31 = vector.broadcast %21 : vector<128x1xf32> to vector<128x128xf32>
    %32 = arith.mulf %31, %30 : vector<128x128xf32>
    %cst_24 = arith.constant dense<0.000000e+00> : vector<128x128xf32>
    %33 = tpu.matmul %24, %13, %cst_24 {dimension_numbers = #tpu.dot_dimension_numbers<[1], [0], [0], [1], [0, 0, 1, 1], [], []>} : vector<128x128xf32>, vector<128x128xf32>, vector<128x128xf32> -> vector<128x128xf32>
    %34 = arith.addf %32, %33 : vector<128x128xf32>
    %c0_25 = arith.constant 0 : index
    %c0_26 = arith.constant 0 : index
    %35 = vector.load %arg15[%c0_25, %c0_26] : memref<128x256xf32, #tpu.memory_space<vmem>>, vector<128x128xf32>
    tpu.vector_store %arg15[%c0_25, %c0_26], %34 {strides = array<i32>} : memref<128x256xf32, #tpu.memory_space<vmem>>, vector<128x128xf32>,
    %c0_27 = arith.constant 0 : index
    %c0_28 = arith.constant 0 : index
    %36 = vector.load %arg14[%c0_27, %c0_28] : memref<128x4xf32, #tpu.memory_space<vmem>>, vector<128x1xf32>
    tpu.vector_store %arg14[%c0_27, %c0_28], %19 {strides = array<i32>} : memref<128x4xf32, #tpu.memory_space<vmem>>, vector<128x1xf32>,
    %c0_29 = arith.constant 0 : index
    %c128 = arith.constant 128 : index
    %37 = vector.load %arg12[%c0_29, %c128] : memref<128x256xf32, #tpu.memory_space<vmem>>, vector<128x128xf32>
    %c0_30 = arith.constant 0 : index
    %c128_31 = arith.constant 128 : index
    %38 = vector.load %arg13[%c0_30, %c128_31] : memref<128x512xf32, #tpu.memory_space<vmem>>, vector<128x128xf32>
    %c0_32 = arith.constant 0 : index
    %c384 = arith.constant 384 : index
    %39 = vector.load %arg13[%c0_32, %c384] : memref<128x512xf32, #tpu.memory_space<vmem>>, vector<128x128xf32>
    %cst_33 = arith.constant dense<0.000000e+00> : vector<128x128xf32>
    %40 = tpu.matmul %37, %38, %cst_33 {dimension_numbers = #tpu.dot_dimension_numbers<[1], [1], [0], [0], [0, 0, 1, 0], [], []>} : vector<128x128xf32>, vector<128x128xf32>, vector<128x128xf32> -> vector<128x128xf32>
    %c0_34 = arith.constant 0 : index
    %c1 = arith.constant 1 : index
    %41 = vector.load %arg14[%c0_34, %c1] : memref<128x4xf32, #tpu.memory_space<vmem>>, vector<128x1xf32>
    %c0_35 = arith.constant 0 : index
    %c3 = arith.constant 3 : index
    %42 = vector.load %arg14[%c0_35, %c3] : memref<128x4xf32, #tpu.memory_space<vmem>>, vector<128x1xf32>
    %cst_36 = arith.constant dense<0xFF800000> : vector<128xf32>
    %43 = vector.multi_reduction <maximumf>, %40, %cst_36 [1] : vector<128x128xf32> to vector<128xf32>
    %44 = vector.shape_cast %43 : vector<128xf32> to vector<128x1xf32>
    %45 = arith.maximumf %41, %44 : vector<128x1xf32>
    %46 = arith.subf %41, %45 : vector<128x1xf32>
    %47 = math.exp %46 : vector<128x1xf32>
    %48 = vector.broadcast %45 : vector<128x1xf32> to vector<128x128xf32>
    %49 = arith.subf %40, %48 : vector<128x128xf32>
    %50 = math.exp %49 : vector<128x128xf32>
    %51 = arith.mulf %47, %42 : vector<128x1xf32>
    %cst_37 = arith.constant dense<0.000000e+00> : vector<128xf32>
    %52 = vector.multi_reduction <add>, %50, %cst_37 [1] : vector<128x128xf32> to vector<128xf32>
    %53 = vector.shape_cast %52 : vector<128xf32> to vector<128x1xf32>
    %54 = arith.addf %51, %53 : vector<128x1xf32>
    %c0_38 = arith.constant 0 : index
    %c3_39 = arith.constant 3 : index
    %55 = vector.load %arg14[%c0_38, %c3_39] : memref<128x4xf32, #tpu.memory_space<vmem>>, vector<128x1xf32>
    tpu.vector_store %arg14[%c0_38, %c3_39], %54 {strides = array<i32>} : memref<128x4xf32, #tpu.memory_space<vmem>>, vector<128x1xf32>,
    %c0_40 = arith.constant 0 : index
    %c128_41 = arith.constant 128 : index
    %56 = vector.load %arg15[%c0_40, %c128_41] : memref<128x256xf32, #tpu.memory_space<vmem>>, vector<128x128xf32>
    %57 = vector.broadcast %47 : vector<128x1xf32> to vector<128x128xf32>
    %58 = arith.mulf %57, %56 : vector<128x128xf32>
    %cst_42 = arith.constant dense<0.000000e+00> : vector<128x128xf32>
    %59 = tpu.matmul %50, %39, %cst_42 {dimension_numbers = #tpu.dot_dimension_numbers<[1], [0], [0], [1], [0, 0, 1, 1], [], []>} : vector<128x128xf32>, vector<128x128xf32>, vector<128x128xf32> -> vector<128x128xf32>
    %60 = arith.addf %58, %59 : vector<128x128xf32>
    %c0_43 = arith.constant 0 : index
    %c128_44 = arith.constant 128 : index
    %61 = vector.load %arg15[%c0_43, %c128_44] : memref<128x256xf32, #tpu.memory_space<vmem>>, vector<128x128xf32>
    tpu.vector_store %arg15[%c0_43, %c128_44], %60 {strides = array<i32>} : memref<128x256xf32, #tpu.memory_space<vmem>>, vector<128x128xf32>,
    %c0_45 = arith.constant 0 : index
    %c1_46 = arith.constant 1 : index
    %62 = vector.load %arg14[%c0_45, %c1_46] : memref<128x4xf32, #tpu.memory_space<vmem>>, vector<128x1xf32>
    tpu.vector_store %arg14[%c0_45, %c1_46], %45 {strides = array<i32>} : memref<128x4xf32, #tpu.memory_space<vmem>>, vector<128x1xf32>,
    %c1_i32 = arith.constant 1 : i32
    %63 = arith.cmpi eq, %arg2, %c1_i32 : i32
    %64 = arith.extui %63 : i1 to i32
    %c0_i32_47 = arith.constant 0 : i32
    %65 = arith.cmpi ne, %64, %c0_i32_47 : i32
    scf.if %65 {
      %c0_48 = arith.constant 0 : index
      %c2_49 = arith.constant 2 : index
      %66 = vector.load %arg14[%c0_48, %c2_49] : memref<128x4xf32, #tpu.memory_space<vmem>>, vector<128x1xf32>
      %67 = tpu.reciprocal %66 {approx = true} : vector<128x1xf32> -> vector<128x1xf32>
      %c0_50 = arith.constant 0 : index
      %c0_51 = arith.constant 0 : index
      %68 = vector.load %arg15[%c0_50, %c0_51] : memref<128x256xf32, #tpu.memory_space<vmem>>, vector<128x128xf32>
      %69 = vector.broadcast %67 : vector<128x1xf32> to vector<128x128xf32>
      %70 = arith.mulf %68, %69 : vector<128x128xf32>
      %c0_52 = arith.constant 0 : index
      %c0_53 = arith.constant 0 : index
      %71 = vector.load %arg15[%c0_52, %c0_53] : memref<128x256xf32, #tpu.memory_space<vmem>>, vector<128x128xf32>
      tpu.vector_store %arg15[%c0_52, %c0_53], %70 {strides = array<i32>} : memref<128x256xf32, #tpu.memory_space<vmem>>, vector<128x128xf32>,
      %c0_54 = arith.constant 0 : index
      %c3_55 = arith.constant 3 : index
      %72 = vector.load %arg14[%c0_54, %c3_55] : memref<128x4xf32, #tpu.memory_space<vmem>>, vector<128x1xf32>
      %73 = tpu.reciprocal %72 {approx = true} : vector<128x1xf32> -> vector<128x1xf32>
      %c0_56 = arith.constant 0 : index
      %c128_57 = arith.constant 128 : index
      %74 = vector.load %arg15[%c0_56, %c128_57] : memref<128x256xf32, #tpu.memory_space<vmem>>, vector<128x128xf32>
      %75 = vector.broadcast %73 : vector<128x1xf32> to vector<128x128xf32>
      %76 = arith.mulf %74, %75 : vector<128x128xf32>
      %c0_58 = arith.constant 0 : index
      %c128_59 = arith.constant 128 : index
      %77 = vector.load %arg15[%c0_58, %c128_59] : memref<128x256xf32, #tpu.memory_space<vmem>>, vector<128x128xf32>
      tpu.vector_store %arg15[%c0_58, %c128_59], %76 {strides = array<i32>} : memref<128x256xf32, #tpu.memory_space<vmem>>, vector<128x128xf32>,
      %c0_60 = arith.constant 0 : index
      %c0_61 = arith.constant 0 : index
      %78 = vector.load %arg15[%c0_60, %c0_61] : memref<128x256xf32, #tpu.memory_space<vmem>>, vector<128x256xf32>
      %c0_62 = arith.constant 0 : index
      %c0_63 = arith.constant 0 : index
      %79 = vector.load %arg9[%c0_62, %c0_63] : memref<256x128xf32, #tpu.memory_space<vmem>>, vector<256x128xf32>
      %cst_64 = arith.constant dense<0.000000e+00> : vector<128x128xf32>
      %80 = tpu.matmul %78, %79, %cst_64 {dimension_numbers = #tpu.dot_dimension_numbers<[1], [0], [0], [1], [0, 0, 1, 1], [], []>} : vector<128x256xf32>, vector<256x128xf32>, vector<128x128xf32> -> vector<128x128xf32>
      %c0_65 = arith.constant 0 : index
      %c0_66 = arith.constant 0 : index
      %81 = vector.load %arg10[%c0_65, %c0_66] : memref<1x128xf32, #tpu.memory_space<vmem>>, vector<1x128xf32>
      %82 = vector.broadcast %81 : vector<1x128xf32> to vector<128x128xf32>
      %83 = arith.addf %80, %82 : vector<128x128xf32>
      %c0_67 = arith.constant 0 : index
      %c0_68 = arith.constant 0 : index
      %c0_69 = arith.constant 0 : index
      %84 = vector.load %arg3[%c0_67, %c0_68, %c0_69] : memref<1x128x128xf32, #tpu.memory_space<vmem>>, vector<1x128x128xf32>
      %85 = vector.shape_cast %84 : vector<1x128x128xf32> to vector<128x128xf32>
      %86 = arith.addf %83, %85 : vector<128x128xf32>
      %c0_70 = arith.constant 0 : index
      %c0_71 = arith.constant 0 : index
      %c0_72 = arith.constant 0 : index
      %87 = vector.load %arg11[%c0_70, %c0_71, %c0_72] : memref<1x128x128xf32, #tpu.memory_space<vmem>>, vector<1x128x128xf32>
      %88 = vector.shape_cast %87 : vector<1x128x128xf32> to vector<128x128xf32>
      %89 = vector.shape_cast %86 : vector<128x128xf32> to vector<1x128x128xf32>
      tpu.vector_store %arg11[%c0_70, %c0_71, %c0_72], %89 {strides = array<i32>} : memref<1x128x128xf32, #tpu.memory_space<vmem>>, vector<1x128x128xf32>,
    } else {
    }
    return
  }
  func.func @transform_0(%arg0: i32, %arg1: i32, %arg2: i32) -> (i32, i32, i32) {
    %c0_i32 = arith.constant 0 : i32
    %c0_i32_0 = arith.constant 0 : i32
    return %arg0, %arg1, %c0_i32 : i32, i32, i32
  }
  func.func @transform_1(%arg0: i32, %arg1: i32, %arg2: i32) -> (i32, i32, i32) {
    %c0_i32 = arith.constant 0 : i32
    %c0_i32_0 = arith.constant 0 : i32
    return %arg0, %arg2, %c0_i32 : i32, i32, i32
  }
  func.func @transform_2(%arg0: i32, %arg1: i32, %arg2: i32) -> (i32, i32) {
    %c0_i32 = arith.constant 0 : i32
    %c0_i32_0 = arith.constant 0 : i32
    %c0_i32_1 = arith.constant 0 : i32
    return %c0_i32, %c0_i32_0 : i32, i32
  }
  func.func @transform_3(%arg0: i32, %arg1: i32, %arg2: i32) -> (i32, i32) {
    %c0_i32 = arith.constant 0 : i32
    %c0_i32_0 = arith.constant 0 : i32
    %c0_i32_1 = arith.constant 0 : i32
    return %c0_i32, %c0_i32_0 : i32, i32
  }
  func.func @transform_4(%arg0: i32, %arg1: i32, %arg2: i32) -> (i32, i32) {
    %c0_i32 = arith.constant 0 : i32
    %c0_i32_0 = arith.constant 0 : i32
    %c0_i32_1 = arith.constant 0 : i32
    return %c0_i32, %c0_i32_0 : i32, i32
  }
  func.func @transform_5(%arg0: i32, %arg1: i32, %arg2: i32) -> (i32, i32) {
    %c0_i32 = arith.constant 0 : i32
    %c0_i32_0 = arith.constant 0 : i32
    %c0_i32_1 = arith.constant 0 : i32
    return %c0_i32, %c0_i32_0 : i32, i32
  }
  func.func @transform_6(%arg0: i32, %arg1: i32, %arg2: i32) -> (i32, i32) {
    %c0_i32 = arith.constant 0 : i32
    %c0_i32_0 = arith.constant 0 : i32
    %c0_i32_1 = arith.constant 0 : i32
    return %c0_i32, %c0_i32_0 : i32, i32
  }
  func.func @transform_7(%arg0: i32, %arg1: i32, %arg2: i32) -> (i32, i32) {
    %c0_i32 = arith.constant 0 : i32
    %c0_i32_0 = arith.constant 0 : i32
    %c0_i32_1 = arith.constant 0 : i32
    return %c0_i32, %c0_i32_0 : i32, i32
  }
  func.func @transform_8(%arg0: i32, %arg1: i32, %arg2: i32) -> (i32, i32, i32) {
    %c0_i32 = arith.constant 0 : i32
    %c0_i32_0 = arith.constant 0 : i32
    return %arg0, %arg1, %c0_i32 : i32, i32, i32
  }
}

</mosaic_0001>

<bundles_post_ra>
// kernel: tpu_custom_call.1
= control target key start
LH: loop header
LB: loop body
LE: loop exit
PB: predicated region body
PF: predicated region fallthrough
CT: control target
= control target key end

     0   :  { %s6969_s0 = inlined_call_operand.hbm [shape: f32[2,256,128], index: 0, kind: input, shape index: {}]   ;;  %s6970_s1 = inlined_call_operand.hbm [shape: f32[2,256,128], index: 1, kind: input, shape index: {}]   ;;  %s6971_s2 = inlined_call_operand.hbm [shape: f32[128,256], index: 2, kind: input, shape index: {}]   ;;  %s6972_s3 = inlined_call_operand.vmem [shape: f32[1,256], index: 3, kind: input, shape index: {}]   ;;  %s6973_s4 = inlined_call_operand.hbm [shape: f32[128,512], index: 4, kind: input, shape index: {}]   ;;  %s6974_s5 = inlined_call_operand.vmem [shape: f32[1,512], index: 5, kind: input, shape index: {}]   ;;  %s6975_s6 = inlined_call_operand.hbm [shape: f32[256,128], index: 6, kind: input, shape index: {}]   ;;  %s6976_s7 = inlined_call_operand.vmem [shape: f32[1,128], index: 7, kind: input, shape index: {}]   ;;  %s6977_s8 = inlined_call_operand.hbm [shape: f32[2,256,128], index: 8, kind: output, shape index: {}]  }
   0x1   :  { %7015 = sst [smem:[#allocation59_spill]] %s6971_s2 }
   0x2   :  { %7016 = sst [smem:[#allocation60_spill]] %s6972_s3 }
   0x3   :  { %7017 = sst [smem:[#allocation61_spill]] %s6973_s4 }
   0x4   :  { %7018 = sst [smem:[#allocation62_spill]] %s6974_s5 }
   0x5   :  { %7019 = sst [smem:[#allocation63_spill]] %s6975_s6 }
   0x6   :  { %7020 = sst [smem:[#allocation64_spill]] %s6976_s7 }
   0x7   :  { %7021 = sst [smem:[#allocation65_spill]] %s6977_s8 }
   0x8   :  { %13 = vsyncpa [#allocation7], 0 }
   0x9   :  { %15 = vsyncpa [#allocation7 + $0x1], 0 }
   0xa   :  { %16 = vsyncpa [#allocation10], 0 }
   0xb   :  { %18 = vsyncpa [#allocation10 + $0x1], 0 }
   0xc   :  { %19 = vsyncpa [#allocation13], 0 }
   0xd   :  { %20 = vsyncpa [#allocation8], 0 }
   0xe   :  { %22 = vsyncpa [#allocation8 + $0x1], 0  ;;  %s5186_s27 = smov 0   ;;  %s5188_s28 = smov 0  }
   0xf   :  { %s5190_s29 = smov 0   ;;  %s5192_s30 = smov 0  }
  0x10   :  { %s5194_s9 = smov 0   ;;  %s5196_s10 = smov 0  }
  0x11   :  { %s5198_s11 = smov 0   ;;  %s5200_s12 = smov 0  }
  0x12   :  { %s5202_s13 = smov 0   ;;  %s5204_s14 = smov 0  }
  0x13   :  { %s5206_s15 = smov 0   ;;  %s5208_s16 = smov 0  }
  0x14   :  { %s5210_s17 = smov 0  }
  0x15 LB: > { %7022 = sst [smem:[#allocation21_spill]] %s5080_s30  ;;  %s5250_s18 = sadd.s32 4294967295, %s5116_s17   ;;  %s5116_s17 = sphi %s5210_s17, %s28_s17   ;;  %s5112_s16 = sphi %s5208_s16, %s7146_s16   ;;  %s5108_s15 = sphi %s5206_s15, %s7145_s15   ;;  %s5104_s14 = sphi %s5204_s14, %s7144_s14   ;;  %s5100_s13 = sphi %s5202_s13, %s7143_s13   ;;  %s5096_s12 = sphi %s5200_s12, %s7142_s12   ;;  %s5092_s11 = sphi %s5198_s11, %s7141_s11   ;;  %s5088_s10 = sphi %s5196_s10, %s7140_s10   ;;  %s5084_s9 = sphi %s5194_s9, %s7139_s9   ;;  %s5080_s30 = sphi %s5192_s30, %s7138_s30   ;;  %s5076_s29 = sphi %s5190_s29, %s7137_s29   ;;  %s5072_s28 = sphi %s5188_s28, %s7136_s28   ;;  %s5068_s27 = sphi %s5186_s27, %s7135_s27  }
  0x16   : > { %7023 = sst [smem:[#allocation22_spill]] %s5092_s11  ;;  %s3933_s19 = sadd.s32 4294967294, %s5116_s17  }
  0x17   : > { %7024 = sst [smem:[#allocation23_spill]] %s5096_s12  ;;  %p69_p0 = scmp.ne.s32.totalorder %s5084_s9, %s5080_s30 }
  0x18   : > { %7025 = sst [smem:[#allocation24_spill]] %s5100_s13  ;;  %p6981_p1 = scmp.eq.s32.totalorder %s5250_s18, 0 }
  0x19   : > { %7026 = sst [smem:[#allocation25_spill]] %s5250_s18  ;;  %p97_p2 = scmp.ne.s32.totalorder %s5072_s28, %s5068_s27 }
  0x1a   : > { %p5260_p4 = por %p6981_p1, %p69_p0  ;;  %p255_p5 = scmp.eq.s32.totalorder %s3933_s19, 7 }
  0x1b   : > { %p5266_p6 = por %p97_p2, %p6981_p1  ;;  %p3934_p7 = scmp.ge.s32.totalorder %s5116_s17, 1 }
  0x1c   : > { %s7027_s20 = scalar_select %p5260_p4, 1, 0 }
  0x1d   : > { %s7029_s21 = scalar_select %p5266_p6, 1, 0 }
  0x1e   : > { %7028 = sst [smem:[#allocation26_spill]] %s7027_s20  ;;  %p5271_p8 = por %p255_p5, %p69_p0 }
  0x1f   : > { %7030 = sst [smem:[#allocation27_spill]] %s7029_s21  ;;  %p262_p9 = scmp.lt.s32.totalorder %s5116_s17, 9 }
  0x20   : > { %s7031_s22 = scalar_select %p5271_p8, 1, 0 }
  0x21   : > { %p5276_p10 = pnand %p3934_p7, %p262_p9  ;;  %s5118_s24 = smov [#allocation11]  }
  0x22   : > { %7032 = sst [smem:[#allocation28_spill]] %s7031_s22  ;;  %s274_s25 = sshll.u32 %s5118_s24, 4  ;;  %s275_s25 = int_to_ptr.vmem [resolvable:$true] %s274_s25 }
  0x23   : > { %p4477_p11 = pneg %p5276_p10  ;;  %s5119_s27 = smov [#allocation12]  }
  0x24   : > { %s290_s19 = sshll.u32 %s5119_s27, 4  ;;  %s4845_s22 = scalar_lea.vmem %s275_s25, 4096  ;;  %s291_s19 = int_to_ptr.vmem [resolvable:$true] %s290_s19 }
  0x25   : > { %p5284_p12 = pnand %p4477_p11, %p6981_p1  ;;  %p4846_p0 = scmp.ne.s32.totalorder %s275_s25, %s4845_s22 }
  0x26   : > { %p4853_p7 = scmp.lt.s32.totalorder %s275_s25, %s275_s25  ;;  %p4854_p9 = scmp.lt.s32.totalorder %s4845_s22, %s4845_s22 }
  0x27   : > { %p4836_p13 = pneg %p5284_p12 }
  0x28   : > { %p4855_p3 = por %p4854_p9, %p4853_p7 }
  0x29   : > { %p4848_p2 = pnand %p4846_p0, %p4836_p13 }
  0x2b   : > { %p4849_p5 = pneg %p4848_p2 }
  0x2d   : > { %p4856_p11 = pnand %p4855_p3, %p4849_p5 }
  0x2f   : > { %4859 = shalt.err (!%p4856_p11)
}
  0x30   : > { %s5120_s24 = smov 256   ;;  %s5121_s30 = smov 16  }
  0x31   : > { %s7035_s2 = sld [smem:[#allocation59_spill]]  ;;  %s4871_s13 = scalar_lea.vmem %s291_s19, 8192 }
  0x32   : > { %p4872_p1 = scmp.ne.s32.totalorder %s291_s19, %s4871_s13  ;;  %p4879_p8 = scmp.lt.s32.totalorder %s291_s19, %s291_s19 }
  0x33   : > { %p4880_p6 = scmp.lt.s32.totalorder %s4871_s13, %s4871_s13 }
  0x34   : > { %p4874_p0 = pnand %p4872_p1, %p4836_p13 }
  0x35   : > { %p4881_p7 = por %p4880_p6, %p4879_p8 }
  0x36   : > { %p4875_p2 = pneg %p4874_p0 }
  0x37   : > { %4480 = dma.hbm_to_vmem [thread:$0]  (!%p5284_p12), %s7035_s2, 4096, %s275_s25, [#allocation10], %s5120_s24, %s5120_s24, %s5121_s30  }
  0x38   : > { %p4882_p3 = pnand %p4881_p7, %p4875_p2 }
  0x3a   : > { %4885 = shalt.err (!%p4882_p3)
}
  0x3b   : > { %s5122_s22 = smov 512   ;;  %s5123_s12 = smov 32  }
  0x3c   : > { %s7036_s4 = sld [smem:[#allocation61_spill]]  ;;  %s5124_s8 = smov [#allocation14]  }
  0x3d   : > { %s306_s30 = sshll.u32 %s5124_s8, 4  ;;  %s307_s30 = int_to_ptr.vmem [resolvable:$true] %s306_s30 }
  0x3e   : > { %s4897_s25 = scalar_lea.vmem %s307_s30, 4096  ;;  %p4905_p8 = scmp.lt.s32.totalorder %s307_s30, %s307_s30 }
  0x3f   : > { %p4898_p1 = scmp.ne.s32.totalorder %s307_s30, %s4897_s25  ;;  %p4906_p9 = scmp.lt.s32.totalorder %s4897_s25, %s4897_s25 }
  0x41   : > { %p4900_p5 = pnand %p4898_p1, %p4836_p13  ;;  %p4907_p11 = por %p4906_p9, %p4905_p8 }
  0x42   : > { %4483 = dma.hbm_to_vmem [thread:$0]  (!%p5284_p12), %s7036_s4, 8192, %s291_s19, [#allocation13], %s5122_s22, %s5122_s22, %s5123_s12  }
  0x43   : > { %p4901_p6 = pneg %p4900_p5 }
  0x45   : > { %p4908_p0 = pnand %p4907_p11, %p4901_p6 }
  0x47   : > { %4911 = shalt.err (!%p4908_p0)
}
  0x48   : > { %s6984_s13 = smov 128   ;;  %s6986_s5 = smov 8  }
  0x49   : > { %s7037_s6 = sld [smem:[#allocation63_spill]]  ;;  %s40_s19 = sadd.s32 1, %s5104_s14 }
  0x4a   : > { %p41_p13 = scmp.ge.s32.totalorder %s40_s19, 2  ;;  %s43_s24 = sadd.s32 1, %s5108_s15 }
  0x4b   : > { %s47_s27 = sadd.s32 1, %s5112_s16  ;;  %s56_s22 = sadd.s32 1, %s5088_s10 }
  0x4c   : > { %s7148_s19 = smov (%p41_p13, %s40_s19), 0  ;;  %s7150_s24 = smov (!%p41_p13, %s43_s24), %s5108_s15 }
  0x4d   : > { %7038 = sst [smem:[#allocation29_spill]] %s7148_s19  ;;  %p63_p2 = scmp.ne.s32.totalorder %s5088_s10, %s5084_s9 }
  0x4e   : > { %p64_p7 = scmp.eq.s32.totalorder %s5116_s17, 0  ;;  %p45_p3 = scmp.ge.s32.totalorder %s7150_s24, 2 }
  0x4f   : > { %4486 = dma.hbm_to_vmem [thread:$0]  (!%p5284_p12), %s7037_s6, 4096, %s307_s30, [#allocation13], %s6984_s13, %s6984_s13, %s6986_s5  }
  0x50   : > { %s80_s26 = ssub.s32 %s5104_s14, %s7148_s19  ;;  %p5331_p12 = por %p64_p7, %p63_p2 }
  0x51   : > { %p7040_p1 = scmp.eq.s32.totalorder %s5250_s18, 7  ;;  %s7152_s24 = smov (%p45_p3, %s7150_s24), 0 }
  0x52   : > { %7043 = sst [smem:[#allocation31_spill]] %s7152_s24  ;;  %s7154_s27 = smov (!%p45_p3, %s47_s27), %s5112_s16 }
  0x53   : > { %p5337_p5 = por %p7040_p1, %p63_p2  ;;  %s52_s25 = ssub.s32 %s5108_s15, %s7152_s24 }
  0x54   : > { %p6998_p6 = scmp.lt.s32.totalorder %s5116_s17, 8  ;;  %p49_p8 = scmp.ge.s32.totalorder %s7154_s27, 2 }
  0x55   : > { %s7041_s30 = scalar_select %p5337_p5, 1, 0 }
  0x56   : > { %s323_s7 = sand.u32 1, %s5088_s10   ;;  %s7156_s27 = smov (%p49_p8, %s7154_s27), 0 }
  0x57   : > { %7042 = sst [smem:[#allocation30_spill]] %s7041_s30  ;;  %s3939_s12 = sshll.u32 %s323_s7, 7 }
  0x58   : > { %s3940_s13 = sshll.u32 %s5108_s15, 4  ;;  %s51_s5 = ssub.s32 %s5112_s16, %s7156_s27 }
  0x59   : > { %s3941_s2 = sshll.u32 %s5112_s16, 5  ;;  %s53_s4 = sor.u32 %s52_s25, %s51_s5 }
  0x5a   : > { %s5354_s6 = sor.u32 %s80_s26, %s51_s5  ;;  %p54_p9 = scmp.eq.s32.totalorder %s53_s4, 0 }
  0x5b   : > { %p82_p11 = scmp.eq.s32.totalorder %s5354_s6, 0  ;;  %s333_s24 = sadd.s32 %s3941_s2, %s3940_s13 }
  0x5c   : > { %s327_s19 = scalar_lea.vmem [#allocation6], %s3939_s12  ;;  %s3942_s11 = sshll.u32 %s333_s24, 7 }
  0x5d   : > { %s336_s30 = sshll.u32 %s327_s19, 4  ;;  %s335_s20 = scalar_lea.hbm %s6969_s0, %s3942_s11  ;;  %s337_s30 = int_to_ptr.vmem [resolvable:$true] %s336_s30 }
  0x5e   : > { %s5358_s3 = scalar_select %p54_p9, %s5088_s10, %s56_s22  }
  0x5f   : > { %p5367_p0 = pnand %p6998_p6, %p5331_p12  ;;  %s3944_s4 = sshll.u32 %s5104_s14, 4 }
  0x60   : > { %s356_s5 = sadd.s32 %s3944_s4, %s3941_s2  ;;  %s324_s13 = scalar_lea.sflag [#allocation7], %s323_s7 }
  0x61   : > { %p4914_p13 = pneg %p5367_p0  ;;  %s4925_s19 = scalar_lea.vmem %s337_s30, 2048 }
  0x62   : > { %p4926_p2 = scmp.ne.s32.totalorder %s337_s30, %s4925_s19  ;;  %s5127_s24 = smov [#allocation6]  }
  0x63   : > { %s4930_s22 = sshll.u32 %s5127_s24, 4  ;;  %s4931_s22 = int_to_ptr.vmem [resolvable:$false] %s4930_s22 }
  0x64   : > { %p4928_p3 = pnand %p4926_p2, %p4914_p13  ;;  %s4932_s11 = scalar_lea.vmem %s4931_s22, 4096 }
  0x65   : > { %p4933_p8 = scmp.lt.s32.totalorder %s337_s30, %s4931_s22  ;;  %p4934_p9 = scmp.lt.s32.totalorder %s4932_s11, %s4925_s19 }
  0x66   : > { %p4929_p1 = pneg %p4928_p3 }
  0x67   : > { %p4935_p12 = por %p4934_p9, %p4933_p8 }
  0x69   : > { %p4936_p6 = pnand %p4935_p12, %p4929_p1 }
  0x6b   : > { %4939 = shalt.err (!%p4936_p6)
}
  0x6c   : > { %s7045_s18 = smov 8   ;;  %s7046_s2 = smov 128  }
  0x6d   : > { %4490 = dma.hbm_to_vmem [thread:$0]  (!%p5367_p0), %s335_s20, 2048, %s337_s30, %s324_s13, %s7046_s2, %s7046_s2, %s7045_s18  }
  0x6e   : > { %s3946_s21 = sshll.u32 %s356_s5, 7  ;;  %s84_s26 = sadd.s32 1, %s5076_s29 }
  0x6f   : > { %s5383_s8 = scalar_select %p82_p11, %s5076_s29, %s84_s26  }
  0x70   : > { %p91_p6 = scmp.ne.s32.totalorder %s5076_s29, %s5072_s28  ;;  %s346_s7 = sand.u32 1, %s5116_s17  }
  0x71   : > { %s358_s4 = scalar_lea.hbm %s6970_s1, %s3946_s21  ;;  %s348_s19 = sand.u32 1, %s5076_s29  }
  0x72   : > { %p93_p13 = por %p91_p6, %p64_p7  ;;  %s3943_s24 = sshll.u32 %s348_s19, 7 }
  0x73   : > { %s350_s22 = scalar_lea.vmem [#allocation9], %s3943_s24  ;;  %p7047_p2 = scmp.lt.s32.totalorder %s5116_s17, 8 }
  0x74   : > { %s359_s11 = sshll.u32 %s350_s22, 4  ;;  %s347_s6 = scalar_lea.sflag [#allocation10], %s346_s7  ;;  %s360_s11 = int_to_ptr.vmem [resolvable:$true] %s359_s11 }
  0x75   : > { %p5396_p3 = pnand %p7047_p2, %p93_p13  ;;  %s4953_s30 = scalar_lea.vmem %s360_s11, 2048 }
  0x76   : > { %p4954_p0 = scmp.ne.s32.totalorder %s360_s11, %s4953_s30  ;;  %s5128_s5 = smov [#allocation9]  }
  0x77   : > { %p4942_p11 = pneg %p5396_p3  ;;  %s4958_s13 = sshll.u32 %s5128_s5, 4  ;;  %s4959_s13 = int_to_ptr.vmem [resolvable:$false] %s4958_s13 }
  0x78   : > { %s4960_s21 = scalar_lea.vmem %s4959_s13, 4096  ;;  %p4961_p7 = scmp.lt.s32.totalorder %s360_s11, %s4959_s13 }
  0x79   : > { %p4956_p1 = pnand %p4954_p0, %p4942_p11  ;;  %p4962_p9 = scmp.lt.s32.totalorder %s4960_s21, %s4953_s30 }
  0x7b   : > { %p4957_p8 = pneg %p4956_p1  ;;  %p4963_p12 = por %p4962_p9, %p4961_p7 }
  0x7d   : > { %p4964_p6 = pnand %p4963_p12, %p4957_p8 }
  0x7f   : > { %4967 = shalt.err (!%p4964_p6)
}
  0x80   : > { %4493 = dma.hbm_to_vmem [thread:$0]  (!%p5396_p3), %s358_s4, 2048, %s360_s11, %s347_s6, %s7046_s2, %s7046_s2, %s7045_s18  }
  0x81   : > { %371 = sbr.rel (%p5276_p10) target bundleno = 2505 (0x9c9), region = 52 }
  0x86   : > { %s5410_s7 = sand.u32 1, %s5084_s9  }
  0x87   : > { %s3948_s12 = sshll.u32 %s5410_s7, 7  ;;  %s374_s25 = scalar_lea.sflag [#allocation7], %s5410_s7 }
  0x88   : > { %s5414_s19 = scalar_lea.vmem [#allocation6], %s3948_s12 }
  0x89   : > { %5047 = dma.done.wait (%p5260_p4), %s374_s25, 2048  }
  0x8a   : > { %5049 = vsyncadd (%p5260_p4), %s374_s25, 4294965248  ;;  %s7050_s24 = sld [smem:[#allocation25_spill]]  ;;  %s384_s2 = sand.u32 1, %s5072_s28  }
  0x8b   : > { %s7051_s18 = sld [smem:[#allocation27_spill]]  ;;  %s3949_s4 = sshll.u32 %s384_s2, 7 }
  0x8c   : > { %s5422_s11 = scalar_lea.vmem [#allocation9], %s3949_s4 }
  0x90   : > { %s382_s23 = sand.u32 1, %s7050_s24  }
  0x91   : > { %s383_s22 = scalar_lea.sflag [#allocation10], %s382_s23  ;;  %p7052_p10 = scmp.ne.s32.totalorder %s7051_s18, 0 }
  0x93   : > { %5051 = dma.done.wait (%p7052_p10), %s383_s22, 2048  }
  0x94   : > { %5053 = vsyncadd (%p7052_p10), %s383_s22, 4294965248  ;;  %p7053_p13 = scmp.eq.s32.totalorder %s7050_s24, 0 }
  0x96   : > { %5055 = dma.done.wait (%p7053_p13), [#allocation10], 4096   ;;  %p7054_p2 = pmov %p7053_p13 }
  0x98   : > { %5057 = vsyncadd (%p7054_p2), [#allocation10], 4294963200  ;;  %p7055_p4 = pmov %p7054_p2 }
  0x99   : > { %p7056_p3 = pmov %p7054_p2 }
  0x9a   : > { %5059 = dma.done.wait (%p7055_p4), [#allocation13], 12288  }
  0x9b   : > { %5061 = vsyncadd (%p7056_p3), [#allocation13], 4294955008  ;;  %s5436_s20 = scalar_lea.vmem [#allocation15], %s3948_s12  ;;  %s7057_s6 = sld [smem:[#allocation22_spill]] }
  0xa1   : > { %p3954_p11 = scmp.ne.s32.totalorder %s7057_s6, 0 }
  0xa2   : > { %s7058_s13 = sld [smem:[#allocation60_spill]] (!%p3954_p11) }
  0xa3   : > { %442 = sbr.rel (%p3954_p11) target bundleno = 430 (0x1ae), region = 76 }
  0xa8   : > { %v490_v0 = vld [vmem:[#allocation11 + $0xf8] sm:$0xff]  ;;  %v489_v1 = vld [vmem:[#allocation11 + $0xf0] sm:$0xff]  ;;  %v5439_v2 = vld [vmem:[#allocation11 + $0xe8] sm:$0xff]  ;;  %vm728_vm0 = vcmask 15360   ;;  %v5129_v4 = vmov -inf   ;;  %vm745_vm1 = vcmask 31760   ;;  %v493_v50 = vlaneseq }
  0xa9   : > { %503 = vmatprep.subr.mxu0 %v490_v0  ;;  %4395 = vmatprep.subr.mxu1 %v490_v0  ;;  %v5441_v3 = vld [vmem:[#allocation11 + $0xe0] sm:$0xff]  ;;  %729 = vst.msk [vmem:[#allocation4] sm:$0xff] %vm728_vm0, %v5129_v4  ;;  %730 = vst.msk [vmem:[#allocation4 + $0x8] sm:$0xff] %vm728_vm0, %v5129_v4  ;;  %v5130_v5 = vmov 0.0   ;;  %v486_v6 = vld [vmem:[#allocation11 + $0xd8] sm:$0xff] }
  0xaa   : > { %731 = vst.msk [vmem:[#allocation4 + $0x10] sm:$0xff] %vm728_vm0, %v5129_v4  ;;  %732 = vst.msk [vmem:[#allocation4 + $0x18] sm:$0xff] %vm728_vm0, %v5129_v4  ;;  %504 = vmatpush1.msra.mxu0 %v489_v1  ;;  %4411 = vmatpush1.msra.mxu1 %v489_v1  ;;  %v485_v7 = vld [vmem:[#allocation11 + $0xd0] sm:$0xff]  ;;  %v484_v8 = vld [vmem:[#allocation11 + $0xc8] sm:$0xff]  ;;  %v494_v51 = vshrl.u32 %v493_v50, 7 }
  0xab   : > { %733 = vst.msk [vmem:[#allocation4 + $0x20] sm:$0xff] %vm728_vm0, %v5129_v4  ;;  %734 = vst.msk [vmem:[#allocation4 + $0x28] sm:$0xff] %vm728_vm0, %v5129_v4  ;;  %505 = vmatprep.subr.mxu0 %v5439_v2  ;;  %4396 = vmatprep.subr.mxu1 %v5439_v2  ;;  %v483_v9 = vld [vmem:[#allocation11 + $0xc0] sm:$0xff]  ;;  %v482_v10 = vld [vmem:[#allocation11 + $0xb8] sm:$0xff] }
  0xac   : > { %735 = vst.msk [vmem:[#allocation4 + $0x30] sm:$0xff] %vm728_vm0, %v5129_v4  ;;  %736 = vst.msk [vmem:[#allocation4 + $0x38] sm:$0xff] %vm728_vm0, %v5129_v4  ;;  %506 = vmatpush1.msra.mxu0 %v5441_v3  ;;  %4412 = vmatpush1.msra.mxu1 %v5441_v3  ;;  %v481_v11 = vld [vmem:[#allocation11 + $0xb0] sm:$0xff]  ;;  %v480_v12 = vld [vmem:[#allocation11 + $0xa8] sm:$0xff]  ;;  %v495_v52 = vsub.s32 0, %v494_v51  ;;  %v499_v54 = vsub.s32 1, %v494_v51 }
  0xad   : > { %737 = vst.msk [vmem:[#allocation4 + $0x40] sm:$0xff] %vm728_vm0, %v5129_v4  ;;  %738 = vst.msk [vmem:[#allocation4 + $0x48] sm:$0xff] %vm728_vm0, %v5129_v4  ;;  %507 = vmatprep.subr.mxu0 %v486_v6  ;;  %4397 = vmatprep.subr.mxu1 %v486_v6  ;;  %v479_v13 = vld [vmem:[#allocation11 + $0xa0] sm:$0xff]  ;;  %v478_v14 = vld [vmem:[#allocation11 + $0x98] sm:$0xff] }
  0xae   : > { %739 = vst.msk [vmem:[#allocation4 + $0x50] sm:$0xff] %vm728_vm0, %v5129_v4  ;;  %740 = vst.msk [vmem:[#allocation4 + $0x58] sm:$0xff] %vm728_vm0, %v5129_v4  ;;  %508 = vmatpush1.msra.mxu0 %v485_v7  ;;  %4413 = vmatpush1.msra.mxu1 %v485_v7  ;;  %v477_v15 = vld [vmem:[#allocation11 + $0x90] sm:$0xff]  ;;  %v476_v16 = vld [vmem:[#allocation11 + $0x88] sm:$0xff] }
  0xaf   : > { %741 = vst.msk [vmem:[#allocation4 + $0x60] sm:$0xff] %vm728_vm0, %v5129_v4  ;;  %742 = vst.msk [vmem:[#allocation4 + $0x68] sm:$0xff] %vm728_vm0, %v5129_v4  ;;  %509 = vmatprep.subr.mxu0 %v484_v8  ;;  %4398 = vmatprep.subr.mxu1 %v484_v8  ;;  %v475_v17 = vld [vmem:[#allocation11 + $0x80] sm:$0xff]  ;;  %v474_v18 = vld [vmem:[#allocation11 + $0x78] sm:$0xff] }
  0xb0   : > { %743 = vst.msk [vmem:[#allocation4 + $0x70] sm:$0xff] %vm728_vm0, %v5129_v4  ;;  %744 = vst.msk [vmem:[#allocation4 + $0x78] sm:$0xff] %vm728_vm0, %v5129_v4  ;;  %510 = vmatpush1.msra.mxu0 %v483_v9  ;;  %4414 = vmatpush1.msra.mxu1 %v483_v9  ;;  %v473_v19 = vld [vmem:[#allocation11 + $0x70] sm:$0xff]  ;;  %v472_v20 = vld [vmem:[#allocation11 + $0x68] sm:$0xff] }
  0xb1   : > { %762 = vst [vmem:[#allocation5 + $0x80] sm:$0xff] %v5130_v5  ;;  %763 = vst [vmem:[#allocation5 + $0xc8] sm:$0xff] %v5130_v5  ;;  %511 = vmatprep.subr.mxu0 %v482_v10  ;;  %4399 = vmatprep.subr.mxu1 %v482_v10  ;;  %v471_v21 = vld [vmem:[#allocation11 + $0x60] sm:$0xff]  ;;  %v470_v22 = vld [vmem:[#allocation11 + $0x58] sm:$0xff] }
  0xb2   : > { %764 = vst [vmem:[#allocation5 + $0xe8] sm:$0xff] %v5130_v5  ;;  %765 = vst [vmem:[#allocation5 + $0x78] sm:$0xff] %v5130_v5  ;;  %512 = vmatpush1.msra.mxu0 %v481_v11  ;;  %4415 = vmatpush1.msra.mxu1 %v481_v11  ;;  %v469_v23 = vld [vmem:[#allocation11 + $0x50] sm:$0xff]  ;;  %v468_v24 = vld [vmem:[#allocation11 + $0x48] sm:$0xff] }
  0xb3   : > { %766 = vst [vmem:[#allocation5 + $0x8] sm:$0xff] %v5130_v5  ;;  %767 = vst [vmem:[#allocation5 + $0x90] sm:$0xff] %v5130_v5  ;;  %513 = vmatprep.subr.mxu0 %v480_v12  ;;  %4400 = vmatprep.subr.mxu1 %v480_v12  ;;  %v467_v25 = vld [vmem:[#allocation11 + $0x40] sm:$0xff]  ;;  %v466_v26 = vld [vmem:[#allocation11 + $0x38] sm:$0xff] }
  0xb4   : > { %768 = vst [vmem:[#allocation5 + $0x58] sm:$0xff] %v5130_v5  ;;  %769 = vst [vmem:[#allocation5 + $0xa8] sm:$0xff] %v5130_v5  ;;  %514 = vmatpush1.msra.mxu0 %v479_v13  ;;  %4416 = vmatpush1.msra.mxu1 %v479_v13  ;;  %v465_v27 = vld [vmem:[#allocation11 + $0x30] sm:$0xff]  ;;  %v464_v28 = vld [vmem:[#allocation11 + $0x28] sm:$0xff] }
  0xb5   : > { %770 = vst [vmem:[#allocation5 + $0xd0] sm:$0xff] %v5130_v5  ;;  %771 = vst [vmem:[#allocation5 + $0xb0] sm:$0xff] %v5130_v5  ;;  %515 = vmatprep.subr.mxu0 %v478_v14  ;;  %4401 = vmatprep.subr.mxu1 %v478_v14  ;;  %v463_v29 = vld [vmem:[#allocation11 + $0x20] sm:$0xff]  ;;  %v462_v30 = vld [vmem:[#allocation11 + $0x18] sm:$0xff] }
  0xb6   : > { %772 = vst [vmem:[#allocation5 + $0x38] sm:$0xff] %v5130_v5  ;;  %773 = vst [vmem:[#allocation5 + $0x40] sm:$0xff] %v5130_v5  ;;  %516 = vmatpush1.msra.mxu0 %v477_v15  ;;  %4417 = vmatpush1.msra.mxu1 %v477_v15  ;;  %v461_v31 = vld [vmem:[#allocation11 + $0x10] sm:$0xff]  ;;  %v460_v32 = vld [vmem:[#allocation11 + $0x8] sm:$0xff] }
  0xb7   : > { %774 = vst [vmem:[#allocation5 + $0xe0] sm:$0xff] %v5130_v5  ;;  %775 = vst [vmem:[#allocation5 + $0x60] sm:$0xff] %v5130_v5  ;;  %517 = vmatprep.subr.mxu0 %v476_v16  ;;  %4402 = vmatprep.subr.mxu1 %v476_v16  ;;  %v459_v33 = vld [vmem:[#allocation11] sm:$0xff]  ;;  %v444_v36 = vld [vmem:[%s5414_s19 + $0x8] sm:$0xff] }
  0xb8   : > { %776 = vst [vmem:[#allocation5 + $0x18] sm:$0xff] %v5130_v5  ;;  %777 = vst [vmem:[#allocation5 + $0x68] sm:$0xff] %v5130_v5  ;;  %518 = vmatpush1.msra.mxu0 %v475_v17  ;;  %4418 = vmatpush1.msra.mxu1 %v475_v17  ;;  %v443_v34 = vld [vmem:[%s5414_s19] sm:$0xff]  ;;  %v452_v37 = vld [vmem:[%s5414_s19 + $0x48] sm:$0xff] }
  0xb9   : > { %778 = vst [vmem:[#allocation5 + $0x10] sm:$0xff] %v5130_v5  ;;  %779 = vst [vmem:[#allocation5 + $0x70] sm:$0xff] %v5130_v5  ;;  %519 = vmatprep.subr.mxu0 %v474_v18  ;;  %4403 = vmatprep.subr.mxu1 %v474_v18  ;;  %v451_v35 = vld [vmem:[%s5414_s19 + $0x40] sm:$0xff]  ;;  %v445_v38 = vld [vmem:[%s5414_s19 + $0x10] sm:$0xff] }
  0xba   : > { %780 = vst [vmem:[#allocation5 + $0x50] sm:$0xff] %v5130_v5  ;;  %781 = vst [vmem:[#allocation5 + $0xa0] sm:$0xff] %v5130_v5  ;;  %520 = vmatpush1.msra.mxu0 %v473_v19  ;;  %4419 = vmatpush1.msra.mxu1 %v473_v19  ;;  %v453_v39 = vld [vmem:[%s5414_s19 + $0x50] sm:$0xff]  ;;  %v446_v40 = vld [vmem:[%s5414_s19 + $0x18] sm:$0xff] }
  0xbb   : > { %782 = vst [vmem:[#allocation5 + $0xd8] sm:$0xff] %v5130_v5  ;;  %783 = vst [vmem:[#allocation5 + $0x30] sm:$0xff] %v5130_v5  ;;  %521 = vmatprep.subr.mxu0 %v472_v20  ;;  %4404 = vmatprep.subr.mxu1 %v472_v20  ;;  %v454_v41 = vld [vmem:[%s5414_s19 + $0x58] sm:$0xff]  ;;  %v447_v42 = vld [vmem:[%s5414_s19 + $0x20] sm:$0xff] }
  0xbc   : > { %784 = vst [vmem:[#allocation5 + $0x20] sm:$0xff] %v5130_v5  ;;  %785 = vst [vmem:[#allocation5 + $0xf0] sm:$0xff] %v5130_v5  ;;  %522 = vmatpush1.msra.mxu0 %v471_v21  ;;  %4420 = vmatpush1.msra.mxu1 %v471_v21  ;;  %v455_v43 = vld [vmem:[%s5414_s19 + $0x60] sm:$0xff]  ;;  %v448_v44 = vld [vmem:[%s5414_s19 + $0x28] sm:$0xff] }
  0xbd   : > { %786 = vst [vmem:[#allocation5 + $0x88] sm:$0xff] %v5130_v5  ;;  %787 = vst [vmem:[#allocation5 + $0x48] sm:$0xff] %v5130_v5  ;;  %523 = vmatprep.subr.mxu0 %v470_v22  ;;  %4405 = vmatprep.subr.mxu1 %v470_v22  ;;  %v456_v45 = vld [vmem:[%s5414_s19 + $0x68] sm:$0xff]  ;;  %v449_v46 = vld [vmem:[%s5414_s19 + $0x30] sm:$0xff] }
  0xbe   : > { %788 = vst [vmem:[#allocation5 + $0xf8] sm:$0xff] %v5130_v5  ;;  %789 = vst [vmem:[#allocation5 + $0xc0] sm:$0xff] %v5130_v5  ;;  %524 = vmatpush1.msra.mxu0 %v469_v23  ;;  %4421 = vmatpush1.msra.mxu1 %v469_v23  ;;  %v457_v47 = vld [vmem:[%s5414_s19 + $0x70] sm:$0xff]  ;;  %v450_v48 = vld [vmem:[%s5414_s19 + $0x38] sm:$0xff] }
  0xbf   : > { %790 = vst [vmem:[#allocation5 + $0xb8] sm:$0xff] %v5130_v5  ;;  %791 = vst [vmem:[#allocation5] sm:$0xff] %v5130_v5  ;;  %525 = vmatprep.subr.mxu0 %v468_v24  ;;  %4406 = vmatprep.subr.mxu1 %v468_v24  ;;  %v458_v49 = vld [vmem:[%s5414_s19 + $0x78] sm:$0xff]  ;;  %v491_v53 = vld [vmem:[%s7058_s13] sm:$0x3] }
  0xc0   : > { %792 = vst [vmem:[#allocation5 + $0x28] sm:$0xff] %v5130_v5  ;;  %793 = vst [vmem:[#allocation5 + $0x98] sm:$0xff] %v5130_v5  ;;  %526 = vmatpush1.msra.mxu0 %v467_v25  ;;  %4422 = vmatpush1.msra.mxu1 %v467_v25  ;;  %v5562_v55 = vrot.slane %v491_v53, %v495_v52  ;;  %v5564_v56 = vrot.slane %v491_v53, %v499_v54 }
  0xc1   : > { %746 = vst.msk [vmem:[#allocation4] sm:$0xff] %vm745_vm1, %v5130_v5  ;;  %747 = vst.msk [vmem:[#allocation4 + $0x8] sm:$0xff] %vm745_vm1, %v5130_v5  ;;  %527 = vmatprep.subr.mxu0 %v466_v26  ;;  %4407 = vmatprep.subr.mxu1 %v466_v26 }
  0xc2   : > { %748 = vst.msk [vmem:[#allocation4 + $0x10] sm:$0xff] %vm745_vm1, %v5130_v5  ;;  %749 = vst.msk [vmem:[#allocation4 + $0x18] sm:$0xff] %vm745_vm1, %v5130_v5  ;;  %528 = vmatpush1.msra.mxu0 %v465_v27  ;;  %4423 = vmatpush1.msra.mxu1 %v465_v27 }
  0xc3   : > { %750 = vst.msk [vmem:[#allocation4 + $0x20] sm:$0xff] %vm745_vm1, %v5130_v5  ;;  %751 = vst.msk [vmem:[#allocation4 + $0x28] sm:$0xff] %vm745_vm1, %v5130_v5  ;;  %529 = vmatprep.subr.mxu0 %v464_v28  ;;  %4408 = vmatprep.subr.mxu1 %v464_v28 }
  0xc4   : > { %752 = vst.msk [vmem:[#allocation4 + $0x30] sm:$0xff] %vm745_vm1, %v5130_v5  ;;  %753 = vst.msk [vmem:[#allocation4 + $0x38] sm:$0xff] %vm745_vm1, %v5130_v5  ;;  %530 = vmatpush1.msra.mxu0 %v463_v29  ;;  %4424 = vmatpush1.msra.mxu1 %v463_v29 }
  0xc5   : > { %754 = vst.msk [vmem:[#allocation4 + $0x40] sm:$0xff] %vm745_vm1, %v5130_v5  ;;  %755 = vst.msk [vmem:[#allocation4 + $0x48] sm:$0xff] %vm745_vm1, %v5130_v5  ;;  %531 = vmatprep.subr.mxu0 %v462_v30  ;;  %4409 = vmatprep.subr.mxu1 %v462_v30 }
  0xc6   : > { %756 = vst.msk [vmem:[#allocation4 + $0x50] sm:$0xff] %vm745_vm1, %v5130_v5  ;;  %757 = vst.msk [vmem:[#allocation4 + $0x58] sm:$0xff] %vm745_vm1, %v5130_v5  ;;  %532 = vmatpush1.msra.mxu0 %v461_v31  ;;  %4425 = vmatpush1.msra.mxu1 %v461_v31 }
  0xc7   : > { %758 = vst.msk [vmem:[#allocation4 + $0x60] sm:$0xff] %vm745_vm1, %v5130_v5  ;;  %759 = vst.msk [vmem:[#allocation4 + $0x68] sm:$0xff] %vm745_vm1, %v5130_v5  ;;  %533 = vmatprep.subr.mxu0 %v460_v32  ;;  %4410 = vmatprep.subr.mxu1 %v460_v32 }
  0xc8   : > { %760 = vst.msk [vmem:[#allocation4 + $0x70] sm:$0xff] %vm745_vm1, %v5130_v5  ;;  %761 = vst.msk [vmem:[#allocation4 + $0x78] sm:$0xff] %vm745_vm1, %v5130_v5  ;;  %534 = vmatpush1.msra.mxu0 %v459_v33  ;;  %4426 = vmatpush1.msra.mxu1 %v459_v33 }
  0xc9   : > { %567 = vmatprep.mubr.f32.mxu0 %v5130_v5  ;;  %615 = vmatprep.mubr.f32.mxu1 %v5130_v5 }
  0xca   : > { %568 = vmatmul.mubr.f32.vlgmr.msra.gmra.mxu0 %v443_v34  ;;  %616 = vmatmul.mubr.f32.vlgmr.msra.gmra.mxu1 %v451_v35 }
  0xcb   : > { %573 = vmatprep.mubr.f32.mxu0 %v5130_v5  ;;  %621 = vmatprep.mubr.f32.mxu1 %v5130_v5 }
  0xce   : > { %574 = vmatmul.mubr.f32.gmra.mxu0 %v444_v36  ;;  %622 = vmatmul.mubr.f32.gmra.mxu1 %v452_v37 }
  0xcf   : > { %579 = vmatprep.mubr.f32.mxu0 %v5130_v5  ;;  %627 = vmatprep.mubr.f32.mxu1 %v5130_v5 }
  0xd2   : > { %580 = vmatmul.mubr.f32.gmra.mxu0 %v445_v38  ;;  %628 = vmatmul.mubr.f32.gmra.mxu1 %v453_v39 }
  0xd3   : > { %585 = vmatprep.mubr.f32.mxu0 %v5130_v5  ;;  %633 = vmatprep.mubr.f32.mxu1 %v5130_v5 }
  0xd6   : > { %586 = vmatmul.mubr.f32.gmra.mxu0 %v446_v40  ;;  %634 = vmatmul.mubr.f32.gmra.mxu1 %v454_v41 }
  0xd7   : > { %591 = vmatprep.mubr.f32.mxu0 %v5130_v5  ;;  %639 = vmatprep.mubr.f32.mxu1 %v5130_v5 }
  0xda   : > { %592 = vmatmul.mubr.f32.gmra.mxu0 %v447_v42  ;;  %640 = vmatmul.mubr.f32.gmra.mxu1 %v455_v43 }
  0xdb   : > { %597 = vmatprep.mubr.f32.mxu0 %v5130_v5  ;;  %645 = vmatprep.mubr.f32.mxu1 %v5130_v5 }
  0xde   : > { %598 = vmatmul.mubr.f32.gmra.mxu0 %v448_v44  ;;  %646 = vmatmul.mubr.f32.gmra.mxu1 %v456_v45 }
  0xdf   : > { %603 = vmatprep.mubr.f32.mxu0 %v5130_v5  ;;  %651 = vmatprep.mubr.f32.mxu1 %v5130_v5 }
  0xe2   : > { %604 = vmatmul.mubr.f32.gmra.mxu0 %v449_v46  ;;  %652 = vmatmul.mubr.f32.gmra.mxu1 %v457_v47 }
  0xe3   : > { %609 = vmatprep.mubr.f32.mxu0 %v5130_v5  ;;  %657 = vmatprep.mubr.f32.mxu1 %v5130_v5 }
  0xe6   : > { %610 = vmatmul.mubr.f32.gmra.mxu0 %v450_v48  ;;  %658 = vmatmul.mubr.f32.gmra.mxu1 %v458_v49 }
 0x18a   : > { %v569_v57 = vpop.f32.mrf.mxu0  ;;  %v617_v58 = vpop.f32.mrf.mxu1 }
 0x18b   : > { %v570_v59 = vadd.f32 %v569_v57, %v5562_v55  ;;  %v618_v60 = vadd.f32 %v617_v58, %v5562_v55 }
 0x18c   : > { %v571_v61 = vpop.f32.mrf.mxu0  ;;  %v619_v62 = vpop.f32.mrf.mxu1 }
 0x18d   : > { %v664_v63 = vmul.f32 0.088388346, %v570_v59  ;;  %v680_v0 = vmul.f32 0.088388346, %v618_v60  ;;  %v572_v1 = vadd.f32 %v571_v61, %v5564_v56  ;;  %v620_v2 = vadd.f32 %v619_v62, %v5564_v56 }
 0x18e   : > { %v575_v3 = vpop.f32.mrf.mxu0  ;;  %v623_v4 = vpop.f32.mrf.mxu1 }
 0x18f   : > { %696 = vst [vmem:[#allocation2 + $0xb0] sm:$0xff] %v664_v63  ;;  %712 = vst [vmem:[#allocation2 + $0x38] sm:$0xff] %v680_v0  ;;  %v665_v5 = vmul.f32 0.088388346, %v572_v1  ;;  %v681_v6 = vmul.f32 0.088388346, %v620_v2  ;;  %v576_v7 = vadd.f32 %v575_v3, %v5562_v55  ;;  %v624_v8 = vadd.f32 %v623_v4, %v5562_v55 }
 0x190   : > { %v577_v9 = vpop.f32.mrf.mxu0  ;;  %v625_v10 = vpop.f32.mrf.mxu1 }
 0x191   : > { %697 = vst [vmem:[#allocation2] sm:$0xff] %v665_v5  ;;  %713 = vst [vmem:[#allocation2 + $0x58] sm:$0xff] %v681_v6  ;;  %v666_v11 = vmul.f32 0.088388346, %v576_v7  ;;  %v682_v12 = vmul.f32 0.088388346, %v624_v8  ;;  %v578_v13 = vadd.f32 %v577_v9, %v5564_v56  ;;  %v626_v14 = vadd.f32 %v625_v10, %v5564_v56 }
 0x192   : > { %v581_v15 = vpop.f32.mrf.mxu0  ;;  %v629_v16 = vpop.f32.mrf.mxu1 }
 0x193   : > { %698 = vst [vmem:[#allocation2 + $0xd8] sm:$0xff] %v666_v11  ;;  %714 = vst [vmem:[#allocation2 + $0x40] sm:$0xff] %v682_v12  ;;  %v667_v17 = vmul.f32 0.088388346, %v578_v13  ;;  %v683_v18 = vmul.f32 0.088388346, %v626_v14  ;;  %v582_v19 = vadd.f32 %v581_v15, %v5562_v55  ;;  %v630_v20 = vadd.f32 %v629_v16, %v5562_v55 }
 0x194   : > { %v583_v21 = vpop.f32.mrf.mxu0  ;;  %v631_v22 = vpop.f32.mrf.mxu1 }
 0x195   : > { %699 = vst [vmem:[#allocation2 + $0x18] sm:$0xff] %v667_v17  ;;  %715 = vst [vmem:[#allocation2 + $0xc8] sm:$0xff] %v683_v18  ;;  %v668_v23 = vmul.f32 0.088388346, %v582_v19  ;;  %v684_v24 = vmul.f32 0.088388346, %v630_v20  ;;  %v584_v25 = vadd.f32 %v583_v21, %v5564_v56  ;;  %v632_v26 = vadd.f32 %v631_v22, %v5564_v56 }
 0x196   : > { %v587_v27 = vpop.f32.mrf.mxu0  ;;  %v635_v28 = vpop.f32.mrf.mxu1 }
 0x197   : > { %700 = vst [vmem:[#allocation2 + $0x50] sm:$0xff] %v668_v23  ;;  %716 = vst [vmem:[#allocation2 + $0xe0] sm:$0xff] %v684_v24  ;;  %v669_v29 = vmul.f32 0.088388346, %v584_v25  ;;  %v685_v30 = vmul.f32 0.088388346, %v632_v26  ;;  %v588_v31 = vadd.f32 %v587_v27, %v5562_v55  ;;  %v636_v32 = vadd.f32 %v635_v28, %v5562_v55 }
 0x198   : > { %v589_v33 = vpop.f32.mrf.mxu0  ;;  %v637_v34 = vpop.f32.mrf.mxu1 }
 0x199   : > { %701 = vst [vmem:[#allocation2 + $0x68] sm:$0xff] %v669_v29  ;;  %717 = vst [vmem:[#allocation2 + $0x90] sm:$0xff] %v685_v30  ;;  %v670_v35 = vmul.f32 0.088388346, %v588_v31  ;;  %v686_v36 = vmul.f32 0.088388346, %v636_v32  ;;  %v590_v37 = vadd.f32 %v589_v33, %v5564_v56  ;;  %v638_v38 = vadd.f32 %v637_v34, %v5564_v56 }
 0x19a   : > { %v593_v39 = vpop.f32.mrf.mxu0  ;;  %v641_v40 = vpop.f32.mrf.mxu1 }
 0x19b   : > { %702 = vst [vmem:[#allocation2 + $0x30] sm:$0xff] %v670_v35  ;;  %718 = vst [vmem:[#allocation2 + $0x70] sm:$0xff] %v686_v36  ;;  %v671_v41 = vmul.f32 0.088388346, %v590_v37  ;;  %v687_v42 = vmul.f32 0.088388346, %v638_v38  ;;  %v594_v43 = vadd.f32 %v593_v39, %v5562_v55  ;;  %v642_v44 = vadd.f32 %v641_v40, %v5562_v55 }
 0x19c   : > { %v595_v45 = vpop.f32.mrf.mxu0  ;;  %v643_v46 = vpop.f32.mrf.mxu1 }
 0x19d   : > { %703 = vst [vmem:[#allocation2 + $0x48] sm:$0xff] %v671_v41  ;;  %719 = vst [vmem:[#allocation2 + $0xc0] sm:$0xff] %v687_v42  ;;  %v672_v47 = vmul.f32 0.088388346, %v594_v43  ;;  %v688_v48 = vmul.f32 0.088388346, %v642_v44  ;;  %v596_v49 = vadd.f32 %v595_v45, %v5564_v56  ;;  %v644_v50 = vadd.f32 %v643_v46, %v5564_v56 }
 0x19e   : > { %v599_v51 = vpop.f32.mrf.mxu0  ;;  %v647_v52 = vpop.f32.mrf.mxu1 }
 0x19f   : > { %704 = vst [vmem:[#allocation2 + $0x80] sm:$0xff] %v672_v47  ;;  %720 = vst [vmem:[#allocation2 + $0xa8] sm:$0xff] %v688_v48  ;;  %v673_v53 = vmul.f32 0.088388346, %v596_v49  ;;  %v689_v54 = vmul.f32 0.088388346, %v644_v50  ;;  %v600_v57 = vadd.f32 %v599_v51, %v5562_v55  ;;  %v648_v58 = vadd.f32 %v647_v52, %v5562_v55 }
 0x1a0   : > { %v601_v59 = vpop.f32.mrf.mxu0  ;;  %v649_v60 = vpop.f32.mrf.mxu1 }
 0x1a1   : > { %705 = vst [vmem:[#allocation2 + $0x88] sm:$0xff] %v673_v53  ;;  %721 = vst [vmem:[#allocation2 + $0xd0] sm:$0xff] %v689_v54  ;;  %v674_v61 = vmul.f32 0.088388346, %v600_v57  ;;  %v690_v62 = vmul.f32 0.088388346, %v648_v58  ;;  %v602_v63 = vadd.f32 %v601_v59, %v5564_v56  ;;  %v650_v0 = vadd.f32 %v649_v60, %v5564_v56 }
 0x1a2   : > { %v605_v1 = vpop.f32.mrf.mxu0  ;;  %v653_v2 = vpop.f32.mrf.mxu1 }
 0x1a3   : > { %706 = vst [vmem:[#allocation2 + $0xe8] sm:$0xff] %v674_v61  ;;  %722 = vst [vmem:[#allocation2 + $0x10] sm:$0xff] %v690_v62  ;;  %v675_v3 = vmul.f32 0.088388346, %v602_v63  ;;  %v691_v4 = vmul.f32 0.088388346, %v650_v0  ;;  %v606_v5 = vadd.f32 %v605_v1, %v5562_v55  ;;  %v654_v6 = vadd.f32 %v653_v2, %v5562_v55 }
 0x1a4   : > { %v607_v7 = vpop.f32.mrf.mxu0  ;;  %v655_v8 = vpop.f32.mrf.mxu1 }
 0x1a5   : > { %707 = vst [vmem:[#allocation2 + $0xb8] sm:$0xff] %v675_v3  ;;  %723 = vst [vmem:[#allocation2 + $0x28] sm:$0xff] %v691_v4  ;;  %v676_v9 = vmul.f32 0.088388346, %v606_v5  ;;  %v692_v10 = vmul.f32 0.088388346, %v654_v6  ;;  %v608_v11 = vadd.f32 %v607_v7, %v5564_v56  ;;  %v656_v12 = vadd.f32 %v655_v8, %v5564_v56 }
 0x1a6   : > { %v611_v13 = vpop.f32.mrf.mxu0  ;;  %v659_v14 = vpop.f32.mrf.mxu1 }
 0x1a7   : > { %708 = vst [vmem:[#allocation2 + $0x60] sm:$0xff] %v676_v9  ;;  %724 = vst [vmem:[#allocation2 + $0xa0] sm:$0xff] %v692_v10  ;;  %v677_v15 = vmul.f32 0.088388346, %v608_v11  ;;  %v693_v16 = vmul.f32 0.088388346, %v656_v12  ;;  %v612_v17 = vadd.f32 %v611_v13, %v5562_v55  ;;  %v660_v18 = vadd.f32 %v659_v14, %v5562_v55 }
 0x1a8   : > { %v613_v19 = vpop.f32.mrf.mxu0  ;;  %v661_v20 = vpop.f32.mrf.mxu1 }
 0x1a9   : > { %709 = vst [vmem:[#allocation2 + $0xf0] sm:$0xff] %v677_v15  ;;  %725 = vst [vmem:[#allocation2 + $0xf8] sm:$0xff] %v693_v16  ;;  %v678_v21 = vmul.f32 0.088388346, %v612_v17  ;;  %v694_v22 = vmul.f32 0.088388346, %v660_v18  ;;  %v614_v23 = vadd.f32 %v613_v19, %v5564_v56  ;;  %v662_v24 = vadd.f32 %v661_v20, %v5564_v56 }
 0x1ab   : > { %710 = vst [vmem:[#allocation2 + $0x8] sm:$0xff] %v678_v21  ;;  %726 = vst [vmem:[#allocation2 + $0x20] sm:$0xff] %v694_v22  ;;  %v679_v25 = vmul.f32 0.088388346, %v614_v23  ;;  %v695_v26 = vmul.f32 0.088388346, %v662_v24 }
 0x1ad   : > { %711 = vst [vmem:[#allocation2 + $0x78] sm:$0xff] %v679_v25  ;;  %727 = vst [vmem:[#allocation2 + $0x98] sm:$0xff] %v695_v26 }
 0x1ae PF: > { %v871_v27 = vld [vmem:[#allocation12 + $0x1e8] sm:$0xff]  ;;  %v870_v28 = vld [vmem:[#allocation12 + $0x1e0] sm:$0xff]  ;;  %v6999_v30 = vmov 0.0   ;;  %v5611_v62 = vld [vmem:[%s5422_s11 + $0x10] sm:$0xff]  ;;  %s7059_s12 = sld [smem:[#allocation62_spill]]  ;;  %s5132_s24 = smov 126  }
 0x1af   : > { %v867_v55 = vld [vmem:[#allocation12 + $0x1c8] sm:$0xff]  ;;  %896 = vmatprep.subr.mxu0 %v871_v27  ;;  %v866_v29 = vld [vmem:[#allocation12 + $0x1c0] sm:$0xff]  ;;  %960 = vmatprep.mubr.f32.mxu0 %v6999_v30  ;;  %v5616_v63 = vld [vmem:[%s5422_s11 + $0x18] sm:$0xff]  ;;  %s5135_s2 = smov 2   ;;  %vm1907_vm2 = vcmask 23568   ;;  %vm2213_vm3 = vcmask 7168  }
 0x1b0   : > { %897 = vmatpush1.msra.mxu0 %v870_v28  ;;  %v863_v31 = vld [vmem:[#allocation12 + $0x1a8] sm:$0xff]  ;;  %1121 = vmatprep.mubr.f32.mxu1 %v6999_v30  ;;  %v862_v56 = vld [vmem:[#allocation12 + $0x1a0] sm:$0xff]  ;;  %v5631_v2 = vld [vmem:[%s5422_s11 + $0x30] sm:$0xff]  ;;  %vm2855_vm4 = vcmask 31768   ;;  %vm3161_vm5 = vcmask 15368   ;;  %s7122_s4 = sld [smem:[#allocation22_spill]] }
 0x1b1   : > { %898 = vmatprep.subr.mxu0 %v867_v55  ;;  %v859_v32 = vld [vmem:[#allocation12 + $0x188] sm:$0xff]  ;;  %v858_v33 = vld [vmem:[#allocation12 + $0x180] sm:$0xff]  ;;  %v5636_v3 = vld [vmem:[%s5422_s11 + $0x38] sm:$0xff] }
 0x1b2   : > { %899 = vmatpush1.msra.mxu0 %v866_v29  ;;  %v855_v34 = vld [vmem:[#allocation12 + $0x168] sm:$0xff]  ;;  %v854_v35 = vld [vmem:[#allocation12 + $0x160] sm:$0xff]  ;;  %v5651_v6 = vld [vmem:[%s5422_s11 + $0x50] sm:$0xff] }
 0x1b3   : > { %900 = vmatprep.subr.mxu0 %v863_v31  ;;  %v851_v36 = vld [vmem:[#allocation12 + $0x148] sm:$0xff]  ;;  %v850_v37 = vld [vmem:[#allocation12 + $0x140] sm:$0xff]  ;;  %v5656_v7 = vld [vmem:[%s5422_s11 + $0x58] sm:$0xff] }
 0x1b4   : > { %901 = vmatpush1.msra.mxu0 %v862_v56  ;;  %v847_v38 = vld [vmem:[#allocation12 + $0x128] sm:$0xff]  ;;  %v846_v39 = vld [vmem:[#allocation12 + $0x120] sm:$0xff]  ;;  %v5671_v10 = vld [vmem:[%s5422_s11 + $0x70] sm:$0xff]  ;;  %s7060_s25 = smov %s7059_s12 }
 0x1b5   : > { %902 = vmatprep.subr.mxu0 %v859_v32  ;;  %v843_v40 = vld [vmem:[#allocation12 + $0x108] sm:$0xff]  ;;  %v842_v41 = vld [vmem:[#allocation12 + $0x100] sm:$0xff]  ;;  %v5676_v11 = vld [vmem:[%s5422_s11 + $0x78] sm:$0xff] }
 0x1b6   : > { %903 = vmatpush1.msra.mxu0 %v858_v33  ;;  %v839_v42 = vld [vmem:[#allocation12 + $0xe8] sm:$0xff]  ;;  %v838_v43 = vld [vmem:[#allocation12 + $0xe0] sm:$0xff]  ;;  %v1282_v12 = vld [vmem:[#allocation2 + $0xb0] sm:$0xff]  ;;  %p3955_p0 = scmp.ne.s32.totalorder %s7122_s4, 1 }
 0x1b7   : > { %904 = vmatprep.subr.mxu0 %v855_v34  ;;  %v835_v44 = vld [vmem:[#allocation12 + $0xc8] sm:$0xff]  ;;  %v834_v45 = vld [vmem:[#allocation12 + $0xc0] sm:$0xff]  ;;  %s7123_s6 = sld [smem:[#allocation64_spill]] (!%p3955_p0) }
 0x1b8   : > { %905 = vmatpush1.msra.mxu0 %v854_v35  ;;  %v831_v46 = vld [vmem:[#allocation12 + $0xa8] sm:$0xff]  ;;  %v830_v47 = vld [vmem:[#allocation12 + $0xa0] sm:$0xff] }
 0x1b9   : > { %906 = vmatprep.subr.mxu0 %v851_v36  ;;  %v827_v48 = vld [vmem:[#allocation12 + $0x88] sm:$0xff]  ;;  %v826_v49 = vld [vmem:[#allocation12 + $0x80] sm:$0xff]  ;;  %v876_v36 = vlaneseq }
 0x1ba   : > { %907 = vmatpush1.msra.mxu0 %v850_v37  ;;  %v823_v50 = vld [vmem:[#allocation12 + $0x68] sm:$0xff]  ;;  %v822_v51 = vld [vmem:[#allocation12 + $0x60] sm:$0xff] }
 0x1bb   : > { %908 = vmatprep.subr.mxu0 %v847_v38  ;;  %v819_v52 = vld [vmem:[#allocation12 + $0x48] sm:$0xff]  ;;  %v818_v53 = vld [vmem:[#allocation12 + $0x40] sm:$0xff] }
 0x1bc   : > { %909 = vmatpush1.msra.mxu0 %v846_v39  ;;  %v815_v54 = vld [vmem:[#allocation12 + $0x28] sm:$0xff]  ;;  %v814_v57 = vld [vmem:[#allocation12 + $0x20] sm:$0xff]  ;;  %v5721_v39 = vshrl.u32 %v876_v36, 7 }
 0x1bd   : > { %910 = vmatprep.subr.mxu0 %v843_v40  ;;  %v811_v58 = vld [vmem:[#allocation12 + $0x8] sm:$0xff]  ;;  %v810_v59 = vld [vmem:[#allocation12] sm:$0xff] }
 0x1be   : > { %911 = vmatpush1.msra.mxu0 %v842_v41  ;;  %v5601_v60 = vld [vmem:[%s5422_s11] sm:$0xff]  ;;  %v5606_v61 = vld [vmem:[%s5422_s11 + $0x8] sm:$0xff] }
 0x1bf   : > { %912 = vmatprep.subr.mxu0 %v839_v42  ;;  %v5621_v0 = vld [vmem:[%s5422_s11 + $0x20] sm:$0xff]  ;;  %v5626_v1 = vld [vmem:[%s5422_s11 + $0x28] sm:$0xff]  ;;  %v878_v42 = vsub.s32 0, %v5721_v39 }
 0x1c0   : > { %913 = vmatpush1.msra.mxu0 %v838_v43  ;;  %v5641_v4 = vld [vmem:[%s5422_s11 + $0x40] sm:$0xff]  ;;  %v5646_v5 = vld [vmem:[%s5422_s11 + $0x48] sm:$0xff] }
 0x1c1   : > { %914 = vmatprep.subr.mxu0 %v835_v44  ;;  %v5661_v8 = vld [vmem:[%s5422_s11 + $0x60] sm:$0xff]  ;;  %v5666_v9 = vld [vmem:[%s5422_s11 + $0x68] sm:$0xff] }
 0x1c2   : > { %915 = vmatpush1.msra.mxu0 %v834_v45  ;;  %v5729_v43 = vld [vmem:[%s7059_s12] sm:$0xf] }
 0x1c3   : > { %916 = vmatprep.subr.mxu0 %v831_v46  ;;  %v5734_v46 = vrot.slane %v5729_v43, %v878_v42  ;;  %v5758_v36 = vld [vmem:[#allocation4 + $0x20] sm:$0xff]  ;;  %v869_v42 = vld [vmem:[#allocation12 + $0x1d8] sm:$0xff] }
 0x1c4   : > { %917 = vmatpush1.msra.mxu0 %v830_v47 }
 0x1c5   : > { %918 = vmatprep.subr.mxu0 %v827_v48 }
 0x1c6   : > { %919 = vmatpush1.msra.mxu0 %v826_v49 }
 0x1c7   : > { %920 = vmatprep.subr.mxu0 %v823_v50 }
 0x1c8   : > { %921 = vmatpush1.msra.mxu0 %v822_v51 }
 0x1c9   : > { %922 = vmatprep.subr.mxu0 %v819_v52 }
 0x1ca   : > { %923 = vmatpush1.msra.mxu0 %v818_v53  ;;  %v5741_v53 = vld [vmem:[#allocation4] sm:$0xff] }
 0x1cb   : > { %924 = vmatprep.subr.mxu0 %v815_v54  ;;  %v5743_v54 = vld [vmem:[#allocation4 + $0x8] sm:$0xff]  ;;  %1731 = vrot.lane.b32.xlu1 %v5741_v53, %s5132_s24 }
 0x1cc   : > { %925 = vmatpush1.msra.mxu0 %v814_v57  ;;  %1733 = vrot.lane.b32.xlu0 %v5743_v54, %s5132_s24  ;;  %v5749_v57 = vld [vmem:[#allocation4 + $0x10] sm:$0xff] }
 0x1cd   : > { %926 = vmatprep.subr.mxu0 %v811_v58  ;;  %v5751_v58 = vld [vmem:[#allocation4 + $0x18] sm:$0xff] }
 0x1ce   : > { %927 = vmatpush1.msra.mxu0 %v810_v59 }
 0x1cf   : > { %961 = vmatmul.mubr.f32.vlgmr.msra.gmra.mxu0 %v5601_v60  ;;  %1735 = vrot.lane.b32.xlu1 %v5749_v57, %s5132_s24 }
 0x1d0   : > { %966 = vmatprep.mubr.f32.mxu0 %v6999_v30  ;;  %1737 = vrot.lane.b32.xlu0 %v5751_v58, %s5132_s24 }
 0x1d3   : > { %967 = vmatmul.mubr.f32.gmra.mxu0 %v5606_v61  ;;  %1739 = vrot.lane.b32.xlu1 %v5758_v36, %s5132_s24 }
 0x1d4   : > { %972 = vmatprep.mubr.f32.mxu0 %v6999_v30 }
 0x1d7   : > { %973 = vmatmul.mubr.f32.gmra.mxu0 %v5611_v62 }
 0x1d8   : > { %978 = vmatprep.mubr.f32.mxu0 %v6999_v30 }
 0x1db   : > { %979 = vmatmul.mubr.f32.gmra.mxu0 %v5616_v63 }
 0x1dc   : > { %984 = vmatprep.mubr.f32.mxu0 %v6999_v30 }
 0x1df   : > { %985 = vmatmul.mubr.f32.gmra.mxu0 %v5621_v0 }
 0x1e0   : > { %990 = vmatprep.mubr.f32.mxu0 %v6999_v30 }
 0x1e3   : > { %991 = vmatmul.mubr.f32.gmra.mxu0 %v5626_v1 }
 0x1e4   : > { %996 = vmatprep.mubr.f32.mxu0 %v6999_v30 }
 0x1e7   : > { %997 = vmatmul.mubr.f32.gmra.mxu0 %v5631_v2 }
 0x1e8   : > { %1002 = vmatprep.mubr.f32.mxu0 %v6999_v30 }
 0x1eb   : > { %1003 = vmatmul.mubr.f32.gmra.mxu0 %v5636_v3 }
 0x1ec   : > { %1008 = vmatprep.mubr.f32.mxu0 %v6999_v30 }
 0x1ef   : > { %1009 = vmatmul.mubr.f32.gmra.mxu0 %v5641_v4 }
 0x1f0   : > { %1014 = vmatprep.mubr.f32.mxu0 %v6999_v30 }
 0x1f3   : > { %1015 = vmatmul.mubr.f32.gmra.mxu0 %v5646_v5 }
 0x1f4   : > { %1020 = vmatprep.mubr.f32.mxu0 %v6999_v30 }
 0x1f7   : > { %1021 = vmatmul.mubr.f32.gmra.mxu0 %v5651_v6 }
 0x1f8   : > { %1026 = vmatprep.mubr.f32.mxu0 %v6999_v30 }
 0x1fb   : > { %1027 = vmatmul.mubr.f32.gmra.mxu0 %v5656_v7 }
 0x1fc   : > { %1032 = vmatprep.mubr.f32.mxu0 %v6999_v30 }
 0x1ff   : > { %1033 = vmatmul.mubr.f32.gmra.mxu0 %v5661_v8 }
 0x200   : > { %1038 = vmatprep.mubr.f32.mxu0 %v6999_v30 }
 0x203   : > { %1039 = vmatmul.mubr.f32.gmra.mxu0 %v5666_v9 }
 0x204   : > { %1044 = vmatprep.mubr.f32.mxu0 %v6999_v30 }
 0x207   : > { %1045 = vmatmul.mubr.f32.gmra.mxu0 %v5671_v10 }
 0x208   : > { %1050 = vmatprep.mubr.f32.mxu0 %v6999_v30  ;;  %v841_v30 = vld [vmem:[#allocation12 + $0xf8] sm:$0xff] }
 0x20b   : > { %1051 = vmatmul.mubr.f32.gmra.mxu0 %v5676_v11 }
 0x20c   : > { %4203 = vmatprep.mubr.f32.mxu0 %v1282_v12  ;;  %v873_v12 = vld [vmem:[#allocation12 + $0x1f8] sm:$0xff] }
 0x20d   : > { %1057 = vmatprep.subr.mxu1 %v873_v12  ;;  %v5786_v12 = vld [vmem:[#allocation4 + $0x50] sm:$0xff] }
 0x28f   : > { %v5679_v13 = vpop.f32.mrf.mxu0 }
 0x291   : > { %v5681_v14 = vpop.f32.mrf.mxu0 }
 0x293   : > { %v5683_v15 = vpop.f32.mrf.mxu0 }
 0x295   : > { %v5685_v16 = vpop.f32.mrf.mxu0 }
 0x297   : > { %v5687_v17 = vpop.f32.mrf.mxu0 }
 0x299   : > { %v5689_v18 = vpop.f32.mrf.mxu0 }
 0x29b   : > { %v5691_v19 = vpop.f32.mrf.mxu0 }
 0x29d   : > { %v5693_v20 = vpop.f32.mrf.mxu0 }
 0x29f   : > { %v5695_v21 = vpop.f32.mrf.mxu0 }
 0x2a1   : > { %v5697_v22 = vpop.f32.mrf.mxu0 }
 0x2a3   : > { %v5699_v23 = vpop.f32.mrf.mxu0 }
 0x2a5   : > { %v5701_v24 = vpop.f32.mrf.mxu0 }
 0x2a7   : > { %v5703_v25 = vpop.f32.mrf.mxu0 }
 0x2a9   : > { %v5705_v26 = vpop.f32.mrf.mxu0 }
 0x2ab   : > { %v5707_v27 = vpop.f32.mrf.mxu0 }
 0x2ad   : > { %v5709_v28 = vpop.f32.mrf.mxu0 }
 0x2af   : > { %v1010_v55 = vpop.f32.mrf.mxu0 }
 0x2b1   : > { %v5711_v29 = vpop.f32.mrf.mxu0 }
 0x2b3   : > { %v1016_v31 = vpop.f32.mrf.mxu0 }
 0x2b5   : > { %v5713_v56 = vpop.f32.mrf.mxu0 }
 0x2b7   : > { %v1022_v32 = vpop.f32.mrf.mxu0 }
 0x2b8   : > { %v1023_v59 = vadd.f32 %v1022_v32, %v5734_v46  ;;  %v868_v32 = vld [vmem:[#allocation12 + $0x1d0] sm:$0xff] }
 0x2b9   : > { %v5715_v33 = vpop.f32.mrf.mxu0 }
 0x2bb   : > { %v1028_v34 = vpop.f32.mrf.mxu0 }
 0x2bc   : > { %v1029_v52 = vadd.f32 %v1028_v34, %v5734_v46  ;;  %v872_v34 = vld [vmem:[#allocation12 + $0x1f0] sm:$0xff] }
 0x2bd   : > { %v5717_v35 = vpop.f32.mrf.mxu0  ;;  %1058 = vmatpush1.msra.mxu1 %v872_v34  ;;  %v5788_v34 = vld [vmem:[#allocation4 + $0x58] sm:$0xff] }
 0x2be   : > { %1059 = vmatprep.subr.mxu1 %v869_v42  ;;  %v856_v42 = vld [vmem:[#allocation12 + $0x170] sm:$0xff] }
 0x2bf   : > { %v1034_v37 = vpop.f32.mrf.mxu0  ;;  %1060 = vmatpush1.msra.mxu1 %v868_v32  ;;  %v5796_v32 = vld [vmem:[#allocation4 + $0x60] sm:$0xff] }
 0x2c0   : > { %v1035_v51 = vadd.f32 %v1034_v37, %v5734_v46  ;;  %v5760_v37 = vld [vmem:[#allocation4 + $0x28] sm:$0xff] }
 0x2c1   : > { %v5719_v38 = vpop.f32.mrf.mxu0  ;;  %1741 = vrot.lane.b32.xlu0 %v5760_v37, %s5132_s24 }
 0x2c3   : > { %v1040_v40 = vpop.f32.mrf.mxu0 }
 0x2c4   : > { %v1041_v50 = vadd.f32 %v1040_v40, %v5734_v46  ;;  %v1017_v40 = vadd.f32 %v1016_v31, %v5734_v46  ;;  %v865_v31 = vld [vmem:[#allocation12 + $0x1b8] sm:$0xff] }
 0x2c5   : > { %v5723_v41 = vpop.f32.mrf.mxu0  ;;  %1061 = vmatprep.subr.mxu1 %v865_v31  ;;  %v993_v31 = vadd.f32 %v5699_v23, %v5734_v46  ;;  %v849_v23 = vld [vmem:[#allocation12 + $0x138] sm:$0xff] }
 0x2c7   : > { %v1046_v44 = vpop.f32.mrf.mxu0 }
 0x2c8   : > { %v1047_v49 = vadd.f32 %v1046_v44, %v5734_v46  ;;  %v5767_v44 = vld [vmem:[#allocation4 + $0x30] sm:$0xff] }
 0x2c9   : > { %v5731_v45 = vpop.f32.mrf.mxu0  ;;  %1743 = vrot.lane.b32.xlu1 %v5767_v44, %s5132_s24 }
 0x2cb   : > { %v1052_v47 = vpop.f32.mrf.mxu0 }
 0x2cc   : > { %v1053_v48 = vadd.f32 %v1052_v47, %v5734_v46  ;;  %v5769_v47 = vld [vmem:[#allocation4 + $0x38] sm:$0xff] }
 0x2cd   : > { %1745 = vrot.lane.b32.xlu0 %v5769_v47, %s5132_s24 }
 0x2ce   : > { %4171 = vmatprep.subr.mxu0 %v1053_v48 }
 0x2cf   : > { %4172 = vmatpush3.xpose.msra.mxu0 %v1053_v48  ;;  %v1011_v48 = vadd.f32 %v1010_v55, %v5734_v46  ;;  %v861_v55 = vld [vmem:[#allocation12 + $0x198] sm:$0xff] }
 0x2d0   : > { %4173 = vmatprep.subr.mxu0 %v1047_v49 }
 0x2d3   : > { %4174 = vmatpush3.xpose.msra.mxu0 %v1047_v49  ;;  %v864_v49 = vld [vmem:[#allocation12 + $0x1b0] sm:$0xff] }
 0x2d4   : > { %4175 = vmatprep.subr.mxu0 %v1041_v50  ;;  %1062 = vmatpush1.msra.mxu1 %v864_v49  ;;  %v852_v49 = vld [vmem:[#allocation12 + $0x150] sm:$0xff] }
 0x2d5   : > { %1063 = vmatprep.subr.mxu1 %v861_v55  ;;  %v5808_v55 = vld [vmem:[#allocation4 + $0x78] sm:$0xff] }
 0x2d6   : > { %7062 = vst [vmem:[#allocation33_spill] sm:$0xff] %v5808_v55 }
 0x2d7   : > { %4176 = vmatpush3.xpose.msra.mxu0 %v1041_v50  ;;  %v5776_v50 = vld [vmem:[#allocation4 + $0x40] sm:$0xff] }
 0x2d8   : > { %4177 = vmatprep.subr.mxu0 %v1035_v51  ;;  %1747 = vrot.lane.b32.xlu1 %v5776_v50, %s5132_s24 }
 0x2db   : > { %4178 = vmatpush3.xpose.msra.mxu0 %v1035_v51  ;;  %v5778_v51 = vld [vmem:[#allocation4 + $0x48] sm:$0xff] }
 0x2dc   : > { %4179 = vmatprep.subr.mxu0 %v1029_v52  ;;  %1749 = vrot.lane.b32.xlu0 %v5778_v51, %s5132_s24 }
 0x2dd   : > { %1751 = vrot.lane.b32.xlu1 %v5786_v12, %s5132_s24 }
 0x2df   : > { %4180 = vmatpush3.xpose.msra.mxu0 %v1029_v52  ;;  %v1005_v52 = vadd.f32 %v5707_v27, %v5734_v46  ;;  %v857_v27 = vld [vmem:[#allocation12 + $0x178] sm:$0xff] }
 0x2e0   : > { %4181 = vmatprep.subr.mxu0 %v1023_v59  ;;  %1753 = vrot.lane.b32.xlu0 %v5788_v34, %s5132_s24 }
 0x2e1   : > { %1755 = vrot.lane.b32.xlu1 %v5796_v32, %s5132_s24 }
 0x2e3   : > { %4182 = vmatpush3.xpose.msra.mxu0 %v1023_v59  ;;  %v860_v59 = vld [vmem:[#allocation12 + $0x190] sm:$0xff] }
 0x2e4   : > { %4183 = vmatprep.subr.mxu0 %v1017_v40  ;;  %1064 = vmatpush1.msra.mxu1 %v860_v59  ;;  %v987_v59 = vadd.f32 %v5695_v21, %v5734_v46  ;;  %v840_v21 = vld [vmem:[#allocation12 + $0xf0] sm:$0xff] }
 0x2e5   : > { %1065 = vmatprep.subr.mxu1 %v857_v27  ;;  %v845_v27 = vld [vmem:[#allocation12 + $0x118] sm:$0xff] }
 0x2e6   : > { %1066 = vmatpush1.msra.mxu1 %v856_v42  ;;  %v844_v42 = vld [vmem:[#allocation12 + $0x110] sm:$0xff] }
 0x2e7   : > { %4184 = vmatpush3.xpose.msra.mxu0 %v1017_v40  ;;  %v999_v40 = vadd.f32 %v5703_v25, %v5734_v46  ;;  %v853_v25 = vld [vmem:[#allocation12 + $0x158] sm:$0xff] }
 0x2e8   : > { %4185 = vmatprep.subr.mxu0 %v1011_v48  ;;  %1067 = vmatprep.subr.mxu1 %v853_v25  ;;  %v981_v25 = vadd.f32 %v5691_v19, %v5734_v46  ;;  %v829_v19 = vld [vmem:[#allocation12 + $0x98] sm:$0xff] }
 0x2e9   : > { %1068 = vmatpush1.msra.mxu1 %v852_v49  ;;  %v836_v49 = vld [vmem:[#allocation12 + $0xd0] sm:$0xff] }
 0x2ea   : > { %1069 = vmatprep.subr.mxu1 %v849_v23  ;;  %v832_v23 = vld [vmem:[#allocation12 + $0xb0] sm:$0xff] }
 0x2eb   : > { %4186 = vmatpush3.xpose.msra.mxu0 %v1011_v48  ;;  %v5798_v48 = vld [vmem:[#allocation4 + $0x68] sm:$0xff] }
 0x2ec   : > { %4187 = vmatprep.subr.mxu0 %v1005_v52  ;;  %7061 = vst [vmem:[#allocation32_spill] sm:$0xff] %v5798_v48  ;;  %1757 = vrot.lane.b32.xlu0 %v5798_v48, %s5132_s24  ;;  %v975_v48 = vadd.f32 %v5687_v17, %v5734_v46  ;;  %v882_v17 = vsub.s32 1, %v5721_v39 }
 0x2ef   : > { %4188 = vmatpush3.xpose.msra.mxu0 %v1005_v52  ;;  %v5806_v52 = vld [vmem:[#allocation4 + $0x70] sm:$0xff] }
 0x2f0   : > { %4189 = vmatprep.subr.mxu0 %v999_v40  ;;  %1759 = vrot.lane.b32.xlu1 %v5806_v52, %s5132_s24 }
 0x2f1   : > { %1761 = vrot.lane.b32.xlu0 %v5808_v55, %s5132_s24  ;;  %v833_v55 = vld [vmem:[#allocation12 + $0xb8] sm:$0xff] }
 0x2f3   : > { %4190 = vmatpush3.xpose.msra.mxu0 %v999_v40  ;;  %v848_v40 = vld [vmem:[#allocation12 + $0x130] sm:$0xff] }
 0x2f4   : > { %4191 = vmatprep.subr.mxu0 %v993_v31  ;;  %1070 = vmatpush1.msra.mxu1 %v848_v40  ;;  %v969_v40 = vadd.f32 %v5683_v15, %v5734_v46  ;;  %v816_v15 = vld [vmem:[#allocation12 + $0x30] sm:$0xff] }
 0x2f5   : > { %1071 = vmatprep.subr.mxu1 %v845_v27  ;;  %v825_v27 = vld [vmem:[#allocation12 + $0x78] sm:$0xff] }
 0x2f6   : > { %1072 = vmatpush1.msra.mxu1 %v844_v42  ;;  %v821_v42 = vld [vmem:[#allocation12 + $0x58] sm:$0xff] }
 0x2f7   : > { %4192 = vmatpush3.xpose.msra.mxu0 %v993_v31  ;;  %v837_v31 = vld [vmem:[#allocation12 + $0xd8] sm:$0xff]  ;;  %1073 = vmatprep.subr.mxu1 %v841_v30  ;;  %v824_v30 = vld [vmem:[#allocation12 + $0x70] sm:$0xff] }
 0x2f8   : > { %4193 = vmatprep.subr.mxu0 %v987_v59  ;;  %1074 = vmatpush1.msra.mxu1 %v840_v21  ;;  %v963_v21 = vadd.f32 %v5679_v13, %v5734_v46  ;;  %v1284_v13 = vld [vmem:[#allocation2 + $0x50] sm:$0xff] }
 0x2f9   : > { %1075 = vmatprep.subr.mxu1 %v837_v31  ;;  %v1054_v31 = vpop.f32.mrf.mxu0 }
 0x2fa   : > { %1076 = vmatpush1.msra.mxu1 %v836_v49  ;;  %v813_v49 = vld [vmem:[#allocation12 + $0x18] sm:$0xff] }
 0x2fb   : > { %4194 = vmatpush3.xpose.msra.mxu0 %v987_v59  ;;  %1077 = vmatprep.subr.mxu1 %v833_v55  ;;  %v828_v59 = vld [vmem:[#allocation12 + $0x90] sm:$0xff]  ;;  %v817_v55 = vld [vmem:[#allocation12 + $0x38] sm:$0xff] }
 0x2fc   : > { %4195 = vmatprep.subr.mxu0 %v981_v25  ;;  %1078 = vmatpush1.msra.mxu1 %v832_v23  ;;  %v812_v23 = vld [vmem:[#allocation12 + $0x10] sm:$0xff] }
 0x2fd   : > { %1079 = vmatprep.subr.mxu1 %v829_v19 }
 0x2fe   : > { %1080 = vmatpush1.msra.mxu1 %v828_v59  ;;  %v1283_v59 = vld [vmem:[#allocation2 + $0xd8] sm:$0xff] }
 0x2ff   : > { %4196 = vmatpush3.xpose.msra.mxu0 %v981_v25  ;;  %1081 = vmatprep.subr.mxu1 %v825_v27  ;;  %v820_v25 = vld [vmem:[#allocation12 + $0x50] sm:$0xff] }
 0x300   : > { %4197 = vmatprep.subr.mxu0 %v975_v48  ;;  %1082 = vmatpush1.msra.mxu1 %v824_v30  ;;  %v1285_v27 = vld [vmem:[#allocation2 + $0x30] sm:$0xff]  ;;  %v1286_v30 = vld [vmem:[#allocation2 + $0x80] sm:$0xff] }
 0x301   : > { %1083 = vmatprep.subr.mxu1 %v821_v42 }
 0x302   : > { %1084 = vmatpush1.msra.mxu1 %v820_v25 }
 0x303   : > { %4198 = vmatpush3.xpose.msra.mxu0 %v975_v48  ;;  %v5826_v48 = vrot.slane %v5729_v43, %v882_v17  ;;  %1085 = vmatprep.subr.mxu1 %v817_v55 }
 0x304   : > { %4199 = vmatprep.subr.mxu0 %v969_v40  ;;  %1086 = vmatpush1.msra.mxu1 %v816_v15 }
 0x305   : > { %v1055_v19 = vadd.f32 %v1054_v31, %v5826_v48  ;;  %1087 = vmatprep.subr.mxu1 %v813_v49  ;;  %v1049_v46 = vadd.f32 %v5731_v45, %v5826_v48  ;;  %v1043_v17 = vadd.f32 %v5723_v41, %v5826_v48  ;;  %v1288_v45 = vld [vmem:[#allocation2 + $0x60] sm:$0xff]  ;;  %v1037_v42 = vadd.f32 %v5719_v38, %v5826_v48  ;;  %v1290_v41 = vld [vmem:[#allocation2 + $0x38] sm:$0xff] }
 0x306   : > { %1088 = vmatpush1.msra.mxu1 %v812_v23  ;;  %v1031_v25 = vadd.f32 %v5717_v35, %v5826_v48  ;;  %v1292_v38 = vld [vmem:[#allocation2 + $0xe0] sm:$0xff]  ;;  %v1294_v35 = vld [vmem:[#allocation2 + $0xa8] sm:$0xff]  ;;  %v1019_v55 = vadd.f32 %v5713_v56, %v5826_v48  ;;  %v1013_v31 = vadd.f32 %v5711_v29, %v5826_v48  ;;  %v1007_v15 = vadd.f32 %v5709_v28, %v5826_v48 }
 0x307   : > { %4200 = vmatpush3.xpose.msra.mxu0 %v969_v40  ;;  %1122 = vmatmul.mubr.f32.vlgmr.msra.gmra.mxu1 %v5601_v60  ;;  %v7063_v40 = vmov 0.0   ;;  %v1287_v60 = vld [vmem:[#allocation2 + $0xe8] sm:$0xff]  ;;  %v2230_v56 = vld [vmem:[#allocation2] sm:$0xff]  ;;  %v7003_v23 = vmov 0  }
 0x308   : > { %4201 = vmatprep.subr.mxu0 %v963_v21  ;;  %1127 = vmatprep.mubr.f32.mxu1 %v7063_v40 }
 0x309   : > { %4631 = vset.pattern.permute.xlu1 %v7003_v23  ;;  %4630 = vset.pattern.permute.xlu0 %v7003_v23 }
 0x30b   : > { %4202 = vmatpush3.xpose.msra.mxu0 %v963_v21  ;;  %1128 = vmatmul.mubr.f32.gmra.mxu1 %v5606_v61  ;;  %v1289_v61 = vld [vmem:[#allocation2 + $0x8] sm:$0xff]  ;;  %v1025_v21 = vadd.f32 %v5715_v33, %v5826_v48  ;;  %v1296_v33 = vld [vmem:[#allocation2 + $0xa0] sm:$0xff] }
 0x30c   : > { %4283 = vmatprep.subr.mxu0 %v1055_v19  ;;  %1133 = vmatprep.mubr.f32.mxu1 %v7063_v40 }
 0x30e   : > { %4204 = vmatmul.mubr.f32.vlgmr.msra.gmra.mxu0 %v1283_v59 }
 0x30f   : > { %4284 = vmatpush3.xpose.msra.mxu0 %v1055_v19  ;;  %4206 = vmatprep.mubr.f32.mxu0 %v1284_v13 }
 0x310   : > { %4285 = vmatprep.subr.mxu0 %v1049_v46  ;;  %1134 = vmatmul.mubr.f32.gmra.mxu1 %v5611_v62  ;;  %v1291_v62 = vld [vmem:[#allocation2 + $0x40] sm:$0xff] }
 0x311   : > { %1139 = vmatprep.mubr.f32.mxu1 %v7063_v40 }
 0x312   : > { %4207 = vmatmul.mubr.f32.gmra.mxu0 %v1285_v27 }
 0x313   : > { %4286 = vmatpush3.xpose.msra.mxu0 %v1049_v46  ;;  %4209 = vmatprep.mubr.f32.mxu0 %v1286_v30 }
 0x314   : > { %4287 = vmatprep.subr.mxu0 %v1043_v17  ;;  %1140 = vmatmul.mubr.f32.gmra.mxu1 %v5616_v63  ;;  %v1293_v63 = vld [vmem:[#allocation2 + $0x70] sm:$0xff] }
 0x315   : > { %1145 = vmatprep.mubr.f32.mxu1 %v7063_v40 }
 0x316   : > { %4210 = vmatmul.mubr.f32.gmra.mxu0 %v1287_v60 }
 0x317   : > { %4288 = vmatpush3.xpose.msra.mxu0 %v1043_v17  ;;  %4212 = vmatprep.mubr.f32.mxu0 %v1288_v45  ;;  %v2238_v45 = vld [vmem:[#allocation2 + $0x58] sm:$0xff] }
 0x318   : > { %4289 = vmatprep.subr.mxu0 %v1037_v42  ;;  %1146 = vmatmul.mubr.f32.gmra.mxu1 %v5621_v0  ;;  %v1295_v0 = vld [vmem:[#allocation2 + $0x10] sm:$0xff] }
 0x319   : > { %1151 = vmatprep.mubr.f32.mxu1 %v7063_v40 }
 0x31a   : > { %4213 = vmatmul.mubr.f32.gmra.mxu0 %v1289_v61  ;;  %v2240_v61 = vld [vmem:[#allocation2 + $0x90] sm:$0xff] }
 0x31b   : > { %4290 = vmatpush3.xpose.msra.mxu0 %v1037_v42  ;;  %4215 = vmatprep.mubr.f32.mxu0 %v1290_v41  ;;  %v2239_v42 = vld [vmem:[#allocation2 + $0xc8] sm:$0xff] }
 0x31c   : > { %4291 = vmatprep.subr.mxu0 %v1031_v25  ;;  %1152 = vmatmul.mubr.f32.gmra.mxu1 %v5626_v1  ;;  %v1297_v1 = vld [vmem:[#allocation2 + $0x20] sm:$0xff] }
 0x31d   : > { %1157 = vmatprep.mubr.f32.mxu1 %v7063_v40 }
 0x31e   : > { %4216 = vmatmul.mubr.f32.gmra.mxu0 %v1291_v62 }
 0x31f   : > { %4292 = vmatpush3.xpose.msra.mxu0 %v1031_v25  ;;  %4218 = vmatprep.mubr.f32.mxu0 %v1292_v38  ;;  %v2241_v25 = vld [vmem:[#allocation2 + $0xc0] sm:$0xff] }
 0x320   : > { %4293 = vmatprep.subr.mxu0 %v1025_v21  ;;  %1158 = vmatmul.mubr.f32.gmra.mxu1 %v5631_v2  ;;  %v1001_v2 = vadd.f32 %v5705_v26, %v5826_v48 }
 0x321   : > { %1163 = vmatprep.mubr.f32.mxu1 %v7063_v40 }
 0x322   : > { %4219 = vmatmul.mubr.f32.gmra.mxu0 %v1293_v63 }
 0x323   : > { %4294 = vmatpush3.xpose.msra.mxu0 %v1025_v21  ;;  %4221 = vmatprep.mubr.f32.mxu0 %v1294_v35 }
 0x324   : > { %4295 = vmatprep.subr.mxu0 %v1019_v55  ;;  %1164 = vmatmul.mubr.f32.gmra.mxu1 %v5636_v3  ;;  %v995_v3 = vadd.f32 %v5701_v24, %v5826_v48 }
 0x325   : > { %1169 = vmatprep.mubr.f32.mxu1 %v7063_v40 }
 0x326   : > { %4222 = vmatmul.mubr.f32.gmra.mxu0 %v1295_v0 }
 0x327   : > { %4296 = vmatpush3.xpose.msra.mxu0 %v1019_v55  ;;  %4224 = vmatprep.mubr.f32.mxu0 %v1296_v33  ;;  %v2242_v33 = vld [vmem:[#allocation2 + $0xd0] sm:$0xff] }
 0x328   : > { %4297 = vmatprep.subr.mxu0 %v1013_v31  ;;  %1170 = vmatmul.mubr.f32.gmra.mxu1 %v5641_v4  ;;  %v989_v4 = vadd.f32 %v5697_v22, %v5826_v48  ;;  %v2235_v22 = vld [vmem:[#allocation2 + $0xb8] sm:$0xff] }
 0x329   : > { %1175 = vmatprep.mubr.f32.mxu1 %v7063_v40 }
 0x32a   : > { %4225 = vmatmul.mubr.f32.gmra.mxu0 %v1297_v1 }
 0x32b   : > { %4298 = vmatpush3.xpose.msra.mxu0 %v1013_v31  ;;  %4315 = vmatprep.mubr.f32.mxu0 %v2230_v56  ;;  %v2243_v31 = vld [vmem:[#allocation2 + $0x28] sm:$0xff] }
 0x32c   : > { %4299 = vmatprep.subr.mxu0 %v1007_v15  ;;  %1176 = vmatmul.mubr.f32.gmra.mxu1 %v5646_v5  ;;  %v983_v5 = vadd.f32 %v5693_v20, %v5826_v48  ;;  %v2234_v20 = vld [vmem:[#allocation2 + $0x88] sm:$0xff] }
 0x32d   : > { %1181 = vmatprep.mubr.f32.mxu1 %v7063_v40 }
 0x32f   : > { %4300 = vmatpush3.xpose.msra.mxu0 %v1007_v15 }
 0x330   : > { %4301 = vmatprep.subr.mxu0 %v1001_v2  ;;  %1182 = vmatmul.mubr.f32.gmra.mxu1 %v5651_v6  ;;  %v977_v6 = vadd.f32 %v5689_v18, %v5826_v48  ;;  %v2232_v18 = vld [vmem:[#allocation2 + $0x68] sm:$0xff] }
 0x331   : > { %1187 = vmatprep.mubr.f32.mxu1 %v7063_v40 }
 0x333   : > { %4302 = vmatpush3.xpose.msra.mxu0 %v1001_v2 }
 0x334   : > { %4303 = vmatprep.subr.mxu0 %v995_v3  ;;  %1188 = vmatmul.mubr.f32.gmra.mxu1 %v5656_v7  ;;  %v971_v7 = vadd.f32 %v5685_v16, %v5826_v48  ;;  %v2233_v16 = vld [vmem:[#allocation2 + $0x48] sm:$0xff] }
 0x335   : > { %1193 = vmatprep.mubr.f32.mxu1 %v7063_v40 }
 0x337   : > { %4304 = vmatpush3.xpose.msra.mxu0 %v995_v3  ;;  %v2244_v3 = vld [vmem:[#allocation2 + $0xf8] sm:$0xff] }
 0x338   : > { %4305 = vmatprep.subr.mxu0 %v989_v4  ;;  %1194 = vmatmul.mubr.f32.gmra.mxu1 %v5661_v8  ;;  %v965_v8 = vadd.f32 %v5681_v14, %v5826_v48  ;;  %v2237_v14 = vld [vmem:[#allocation2 + $0x78] sm:$0xff] }
 0x339   : > { %1199 = vmatprep.mubr.f32.mxu1 %v7063_v40 }
 0x33b   : > { %4306 = vmatpush3.xpose.msra.mxu0 %v989_v4  ;;  %v2245_v4 = vld [vmem:[#allocation2 + $0x98] sm:$0xff] }
 0x33c   : > { %4307 = vmatprep.subr.mxu0 %v983_v5  ;;  %1200 = vmatmul.mubr.f32.gmra.mxu1 %v5666_v9  ;;  %v2231_v9 = vld [vmem:[#allocation2 + $0x18] sm:$0xff] }
 0x33d   : > { %1205 = vmatprep.mubr.f32.mxu1 %v7063_v40 }
 0x33f   : > { %4308 = vmatpush3.xpose.msra.mxu0 %v983_v5 }
 0x340   : > { %4309 = vmatprep.subr.mxu0 %v977_v6  ;;  %1206 = vmatmul.mubr.f32.gmra.mxu1 %v5671_v10  ;;  %v2236_v10 = vld [vmem:[#allocation2 + $0xf0] sm:$0xff] }
 0x341   : > { %1211 = vmatprep.mubr.f32.mxu1 %v7063_v40 }
 0x343   : > { %4310 = vmatpush3.xpose.msra.mxu0 %v977_v6 }
 0x344   : > { %4311 = vmatprep.subr.mxu0 %v971_v7  ;;  %1212 = vmatmul.mubr.f32.gmra.mxu1 %v5676_v11 }
 0x347   : > { %4312 = vmatpush3.xpose.msra.mxu0 %v971_v7 }
 0x348   : > { %4313 = vmatprep.subr.mxu0 %v965_v8 }
 0x34b   : > { %4314 = vmatpush3.xpose.msra.mxu0 %v965_v8 }
 0x34e   : > { %4316 = vmatmul.mubr.f32.vlgmr.msra.gmra.mxu0 %v2231_v9 }
 0x34f   : > { %4318 = vmatprep.mubr.f32.mxu0 %v2232_v18 }
 0x352   : > { %4319 = vmatmul.mubr.f32.gmra.mxu0 %v2233_v16 }
 0x353   : > { %4321 = vmatprep.mubr.f32.mxu0 %v2234_v20 }
 0x356   : > { %4322 = vmatmul.mubr.f32.gmra.mxu0 %v2235_v22 }
 0x357   : > { %4324 = vmatprep.mubr.f32.mxu0 %v2236_v10  ;;  %v5987_v10 = vpop.permute.xlu0 %1733 }
 0x358   : > { %7076 = vst [vmem:[#allocation46_spill] sm:$0xff] %v5987_v10 }
 0x35a   : > { %4325 = vmatmul.mubr.f32.gmra.mxu0 %v2237_v14 }
 0x35b   : > { %4327 = vmatprep.mubr.f32.mxu0 %v2238_v45 }
 0x35e   : > { %4328 = vmatmul.mubr.f32.gmra.mxu0 %v2239_v42  ;;  %v5991_v42 = vpop.permute.xlu1 %1731 }
 0x35f   : > { %4330 = vmatprep.mubr.f32.mxu0 %v2240_v61  ;;  %7078 = vst [vmem:[#allocation48_spill] sm:$0xff] %v5991_v42 }
 0x362   : > { %4331 = vmatmul.mubr.f32.gmra.mxu0 %v2241_v25  ;;  %v5993_v25 = vpop.permute.xlu0 %1737 }
 0x363   : > { %4333 = vmatprep.mubr.f32.mxu0 %v2242_v33  ;;  %7079 = vst [vmem:[#allocation49_spill] sm:$0xff] %v5993_v25 }
 0x366   : > { %4334 = vmatmul.mubr.f32.gmra.mxu0 %v2243_v31  ;;  %v6001_v23 = vpop.permute.xlu0 %1741 }
 0x367   : > { %4336 = vmatprep.mubr.f32.mxu0 %v2244_v3  ;;  %v5997_v3 = vpop.permute.xlu1 %1735  ;;  %7083 = vst [vmem:[#allocation53_spill] sm:$0xff] %v6001_v23  ;;  %v886_v23 = vsub.s32 2, %v5721_v39 }
 0x368   : > { %7081 = vst [vmem:[#allocation51_spill] sm:$0xff] %v5997_v3 }
 0x36a   : > { %4337 = vmatmul.mubr.f32.gmra.mxu0 %v2245_v4 }
 0x3c7   : > { %v5940_v41 = vpop.f32.mrf.mxu1 }
 0x3c9   : > { %v5942_v62 = vpop.f32.mrf.mxu1 }
 0x3ca   : > { %7064 = vst [vmem:[#allocation34_spill] sm:$0xff] %v5942_v62 }
 0x3cb   : > { %v5949_v63 = vpop.f32.mrf.mxu1 }
 0x3cd   : > { %v5956_v0 = vpop.f32.mrf.mxu1 }
 0x3ce   : > { %v5890_v24 = vpop.f32.mrf.mxu0  ;;  %7068 = vst [vmem:[#allocation38_spill] sm:$0xff] %v5956_v0 }
 0x3cf   : > { %1493 = vmax.xlane.f32.xlu0 %v5890_v24 }
 0x3d0   : > { %v5893_v11 = vpop.f32.mrf.mxu0  ;;  %v5961_v56 = vpop.f32.mrf.mxu1 }
 0x3d2   : > { %v5895_v26 = vpop.f32.mrf.mxu0  ;;  %v5965_v2 = vpop.f32.mrf.mxu1 }
 0x3d3   : > { %1491 = vmax.xlane.f32.xlu0 %v5893_v11  ;;  %1497 = vmax.xlane.f32.xlu1 %v5895_v26  ;;  %7070 = vst [vmem:[#allocation40_spill] sm:$0xff] %v5965_v2 }
 0x3d4   : > { %v5899_v28 = vpop.f32.mrf.mxu0  ;;  %v5970_v6 = vpop.f32.mrf.mxu1 }
 0x3d6   : > { %v5901_v29 = vpop.f32.mrf.mxu0  ;;  %v5972_v7 = vpop.f32.mrf.mxu1 }
 0x3d7   : > { %1495 = vmax.xlane.f32.xlu1 %v5899_v28  ;;  %7072 = vst [vmem:[#allocation42_spill] sm:$0xff] %v5972_v7 }
 0x3d8   : > { %v5904_v48 = vpop.f32.mrf.mxu0  ;;  %v5975_v8 = vpop.f32.mrf.mxu1 }
 0x3d9   : > { %1499 = vmax.xlane.f32.xlu0 %v5904_v48 }
 0x3da   : > { %v5907_v49 = vpop.f32.mrf.mxu0  ;;  %v5977_v9 = vpop.f32.mrf.mxu1 }
 0x3db   : > { %1501 = vmax.xlane.f32.xlu1 %v5901_v29  ;;  %7073 = vst [vmem:[#allocation43_spill] sm:$0xff] %v5977_v9  ;;  %v6023_v9 = vrot.slane %v5729_v43, %v886_v23 }
 0x3dc   : > { %v5912_v19 = vpop.f32.mrf.mxu0  ;;  %v5979_v18 = vpop.f32.mrf.mxu1 }
 0x3dd   : > { %1503 = vmax.xlane.f32.xlu0 %v5912_v19 }
 0x3de   : > { %v5915_v59 = vpop.f32.mrf.mxu0  ;;  %v5981_v16 = vpop.f32.mrf.mxu1 }
 0x3df   : > { %1505 = vmax.xlane.f32.xlu1 %v5907_v49  ;;  %7074 = vst [vmem:[#allocation44_spill] sm:$0xff] %v5981_v16 }
 0x3e0   : > { %v5918_v13 = vpop.f32.mrf.mxu0  ;;  %v5983_v20 = vpop.f32.mrf.mxu1 }
 0x3e1   : > { %1507 = vmax.xlane.f32.xlu0 %v5918_v13 }
 0x3e2   : > { %v5921_v46 = vpop.f32.mrf.mxu0  ;;  %v5985_v22 = vpop.f32.mrf.mxu1 }
 0x3e3   : > { %1509 = vmax.xlane.f32.xlu1 %v5915_v59  ;;  %7075 = vst [vmem:[#allocation45_spill] sm:$0xff] %v5985_v22 }
 0x3e4   : > { %v5924_v40 = vpop.f32.mrf.mxu0  ;;  %v1165_v14 = vpop.f32.mrf.mxu1 }
 0x3e5   : > { %1511 = vmax.xlane.f32.xlu0 %v5924_v40 }
 0x3e6   : > { %v5927_v27 = vpop.f32.mrf.mxu0  ;;  %v5989_v45 = vpop.f32.mrf.mxu1 }
 0x3e7   : > { %1513 = vmax.xlane.f32.xlu1 %v5921_v46  ;;  %7077 = vst [vmem:[#allocation47_spill] sm:$0xff] %v5989_v45 }
 0x3e8   : > { %v5930_v30 = vpop.f32.mrf.mxu0  ;;  %v1171_v61 = vpop.f32.mrf.mxu1 }
 0x3e9   : > { %1515 = vmax.xlane.f32.xlu0 %v5930_v30 }
 0x3ea   : > { %v5933_v17 = vpop.f32.mrf.mxu0  ;;  %v5995_v33 = vpop.f32.mrf.mxu1 }
 0x3eb   : > { %1517 = vmax.xlane.f32.xlu1 %v5927_v27  ;;  %7080 = vst [vmem:[#allocation50_spill] sm:$0xff] %v5995_v33 }
 0x3ec   : > { %v5936_v60 = vpop.f32.mrf.mxu0  ;;  %v1177_v31 = vpop.f32.mrf.mxu1 }
 0x3ed   : > { %1519 = vmax.xlane.f32.xlu0 %v5936_v60 }
 0x3ee   : > { %v5999_v4 = vpop.f32.mrf.mxu1 }
 0x3ef   : > { %1521 = vmax.xlane.f32.xlu1 %v5933_v17  ;;  %7082 = vst [vmem:[#allocation52_spill] sm:$0xff] %v5999_v4 }
 0x40e   : > { %v5944_v38 = vpop.f32.mrf.mxu0 }
 0x40f   : > { %7065 = vst [vmem:[#allocation35_spill] sm:$0xff] %v5944_v38  ;;  %2441 = vmax.xlane.f32.xlu0 %v5944_v38  ;;  %v6007_v38 = vpop.permute.xlu0 %1745 }
 0x410   : > { %v5947_v21 = vpop.f32.mrf.mxu0  ;;  %7085 = vst [vmem:[#allocation55_spill] sm:$0xff] %v6007_v38 }
 0x411   : > { %7066 = vst [vmem:[#allocation36_spill] sm:$0xff] %v5947_v21  ;;  %2439 = vmax.xlane.f32.xlu1 %v5947_v21 }
 0x412   : > { %v5952_v35 = vpop.f32.mrf.mxu0 }
 0x413   : > { %7067 = vst [vmem:[#allocation37_spill] sm:$0xff] %v5952_v35  ;;  %v6015_v3 = vpop.permute.xlu0 %1749 }
 0x414   : > { %v5954_v55 = vpop.f32.mrf.mxu0  ;;  %7087 = vst [vmem:[#allocation57_spill] sm:$0xff] %v6015_v3 }
 0x415   : > { %2445 = vmax.xlane.f32.xlu1 %v5952_v35  ;;  %v6005_v35 = vpop.permute.xlu1 %1739 }
 0x416   : > { %v5959_v1 = vpop.f32.mrf.mxu0  ;;  %7084 = vst [vmem:[#allocation54_spill] sm:$0xff] %v6005_v35 }
 0x417   : > { %7069 = vst [vmem:[#allocation39_spill] sm:$0xff] %v5959_v1  ;;  %v6025_v38 = vpop.permute.xlu0 %1753 }
 0x418   : > { %v5963_v15 = vpop.f32.mrf.mxu0  ;;  %7088 = vst [vmem:[#allocation58_spill] sm:$0xff] %v6025_v38 }
 0x419   : > { %2449 = vmax.xlane.f32.xlu1 %v5959_v1  ;;  %v6011_v10 = vpop.permute.xlu1 %1743 }
 0x41a   : > { %v5968_v5 = vpop.f32.mrf.mxu0  ;;  %7086 = vst [vmem:[#allocation56_spill] sm:$0xff] %v6011_v10 }
 0x41b   : > { %7071 = vst [vmem:[#allocation41_spill] sm:$0xff] %v5968_v5  ;;  %v6034_v4 = vpop.permute.xlu0 %1757 }
 0x41d   : > { %2453 = vmax.xlane.f32.xlu1 %v5968_v5  ;;  %v1183_v5 = vpop.f32.mrf.mxu1  ;;  %v6020_v7 = vpop.permute.xlu1 %1747 }
 0x41f   : > { %v6003_v1 = vpop.f32.mrf.mxu1 }
 0x421   : > { %v1189_v21 = vpop.f32.mrf.mxu1  ;;  %v6031_v45 = vpop.permute.xlu1 %1751 }
 0x422   : > { %v1190_v23 = vadd.f32 %v1189_v21, %v6023_v9 }
 0x423   : > { %v6009_v42 = vpop.f32.mrf.mxu1 }
 0x425   : > { %v1195_v25 = vpop.f32.mrf.mxu1  ;;  %v6038_v38 = vpop.permute.xlu1 %1755 }
 0x426   : > { %v1196_v43 = vadd.f32 %v1195_v25, %v6023_v9  ;;  %v1172_v25 = vadd.f32 %v1171_v61, %v6023_v9 }
 0x427   : > { %v6013_v62 = vpop.f32.mrf.mxu1 }
 0x429   : > { %v1201_v0 = vpop.f32.mrf.mxu1 }
 0x42a   : > { %v1202_v33 = vadd.f32 %v1201_v0, %v6023_v9  ;;  %v1178_v0 = vadd.f32 %v1177_v31, %v6023_v9 }
 0x42b   : > { %v6018_v2 = vpop.f32.mrf.mxu1 }
 0x42d   : > { %v1207_v35 = vpop.f32.mrf.mxu1 }
 0x42e   : > { %v1208_v22 = vadd.f32 %v1207_v35, %v6023_v9  ;;  %v1184_v35 = vadd.f32 %v1183_v5, %v6023_v9  ;;  %v1166_v5 = vadd.f32 %v1165_v14, %v6023_v9  ;;  %v1148_v14 = vadd.f32 %v5975_v8, %v6023_v9 }
 0x42f   : > { %v6027_v16 = vpop.f32.mrf.mxu1 }
 0x431   : > { %v1213_v10 = vpop.f32.mrf.mxu1 }
 0x432   : > { %v1214_v3 = vadd.f32 %v1213_v10, %v6023_v9  ;;  %v6041_v10 = vpop.permute.xlu0 %1761 }
 0x434   : > { %4227 = vmatprep.subr.mxu1 %v1214_v3 }
 0x435   : > { %4228 = vmatpush3.msra.mxu1 %v1214_v3 }
 0x436   : > { %4229 = vmatprep.subr.mxu1 %v1208_v22 }
 0x437   : > { %4230 = vmatpush3.msra.mxu1 %v1208_v22  ;;  %v6045_v22 = vpop.permute.xlu1 %1759 }
 0x438   : > { %4231 = vmatprep.subr.mxu1 %v1202_v33 }
 0x439   : > { %4232 = vmatpush3.msra.mxu1 %v1202_v33  ;;  %v1160_v33 = vadd.f32 %v5983_v20, %v6023_v9 }
 0x43a   : > { %4233 = vmatprep.subr.mxu1 %v1196_v43 }
 0x43b   : > { %4234 = vmatpush3.msra.mxu1 %v1196_v43 }
 0x43c   : > { %4235 = vmatprep.subr.mxu1 %v1190_v23 }
 0x43d   : > { %4236 = vmatpush3.msra.mxu1 %v1190_v23 }
 0x43e   : > { %4237 = vmatprep.subr.mxu1 %v1184_v35 }
 0x43f   : > { %4238 = vmatpush3.msra.mxu1 %v1184_v35 }
 0x440   : > { %4239 = vmatprep.subr.mxu1 %v1178_v0 }
 0x441   : > { %4240 = vmatpush3.msra.mxu1 %v1178_v0 }
 0x442   : > { %4241 = vmatprep.subr.mxu1 %v1172_v25 }
 0x443   : > { %4242 = vmatpush3.msra.mxu1 %v1172_v25 }
 0x444   : > { %4243 = vmatprep.subr.mxu1 %v1166_v5 }
 0x445   : > { %4244 = vmatpush3.msra.mxu1 %v1166_v5 }
 0x446   : > { %4245 = vmatprep.subr.mxu1 %v1160_v33 }
 0x447   : > { %4246 = vmatpush3.msra.mxu1 %v1160_v33 }
 0x458   : > { %v1494_v21 = vpop.xlane.xlu0 %1493 }
 0x459   : > { %v6048_v3 = vmax.f32 %v5743_v54, %v1494_v21  ;;  %v1154_v54 = vadd.f32 %v5979_v18, %v6023_v9  ;;  %v1136_v18 = vadd.f32 %v5961_v56, %v6023_v9 }
 0x45b   : > { %1594 = vperm.xlu1 %4631, %v6048_v3   ;;  %4247 = vmatprep.subr.mxu1 %v1154_v54 }
 0x45c   : > { %v1492_v31 = vpop.xlane.xlu0 %1491  ;;  %v1498_v61 = vpop.xlane.xlu1 %1497  ;;  %4248 = vmatpush3.msra.mxu1 %v1154_v54 }
 0x45d   : > { %v6055_v43 = vmax.f32 %v5741_v53, %v1492_v31  ;;  %v1142_v53 = vadd.f32 %v5970_v6, %v6023_v9  ;;  %4249 = vmatprep.subr.mxu1 %v1148_v14  ;;  %v6071_v8 = vmax.f32 %v5751_v58, %v1498_v61  ;;  %v1124_v6 = vadd.f32 %v5940_v41, %v6023_v9 }
 0x45e   : > { %4250 = vmatpush3.msra.mxu1 %v1148_v14 }
 0x45f   : > { %1589 = vperm.xlu0 %4630, %v6055_v43   ;;  %4251 = vmatprep.subr.mxu1 %v1142_v53 }
 0x460   : > { %v1496_v23 = vpop.xlane.xlu1 %1495  ;;  %4252 = vmatpush3.msra.mxu1 %v1142_v53  ;;  %v7090_v53 = vld [vmem:[#allocation33_spill] sm:$0xff] }
 0x461   : > { %v6063_v20 = vmax.f32 %v5749_v57, %v1496_v23  ;;  %v1130_v57 = vadd.f32 %v5949_v63, %v6023_v9  ;;  %4253 = vmatprep.subr.mxu1 %v1136_v18 }
 0x462   : > { %v1500_v35 = vpop.xlane.xlu0 %1499  ;;  %4254 = vmatpush3.msra.mxu1 %v1136_v18 }
 0x463   : > { %1599 = vperm.xlu1 %4631, %v6063_v20   ;;  %v6079_v56 = vmax.f32 %v5758_v36, %v1500_v35  ;;  %4255 = vmatprep.subr.mxu1 %v1130_v57  ;;  %v6130_v35 = vpop.f32.mrf.mxu0 }
 0x464   : > { %v1502_v0 = vpop.xlane.xlu1 %1501  ;;  %4256 = vmatpush3.msra.mxu1 %v1130_v57 }
 0x465   : > { %4257 = vmatprep.subr.mxu1 %v1124_v6  ;;  %v6083_v58 = vmax.f32 %v5760_v37, %v1502_v0 }
 0x466   : > { %v1504_v25 = vpop.xlane.xlu0 %1503  ;;  %4258 = vmatpush3.msra.mxu1 %v1124_v6 }
 0x467   : > { %1604 = vperm.xlu1 %4631, %v6071_v8   ;;  %v6087_v41 = vmax.f32 %v5767_v44, %v1504_v25 }
 0x468   : > { %v1506_v9 = vpop.xlane.xlu1 %1505 }
 0x469   : > { %v6091_v36 = vmax.f32 %v5769_v47, %v1506_v9 }
 0x46a   : > { %v1508_v63 = vpop.xlane.xlu0 %1507 }
 0x46b   : > { %1609 = vperm.xlu1 %4631, %v6079_v56   ;;  %v6095_v5 = vmax.f32 %v5776_v50, %v1508_v63 }
 0x46c   : > { %v1510_v50 = vpop.xlane.xlu1 %1509 }
 0x46e   : > { %v1512_v21 = vpop.xlane.xlu0 %1511 }
 0x46f   : > { %1614 = vperm.xlu1 %4631, %v6083_v58   ;;  %v6099_v33 = vmax.f32 %v5786_v12, %v1512_v21  ;;  %v6112_v12 = vmax.f32 %v5778_v51, %v1510_v50 }
 0x470   : > { %v1514_v61 = vpop.xlane.xlu1 %1513 }
 0x471   : > { %v6116_v14 = vmax.f32 %v5788_v34, %v1514_v61 }
 0x472   : > { %v1516_v37 = vpop.xlane.xlu0 %1515 }
 0x473   : > { %1619 = vperm.xlu1 %4631, %v6087_v41   ;;  %v6104_v44 = vmax.f32 %v5796_v32, %v1516_v37  ;;  %v7089_v32 = vld [vmem:[#allocation32_spill] sm:$0xff] }
 0x474   : > { %v1518_v54 = vpop.xlane.xlu1 %1517  ;;  %7091 = vst [vmem:[#allocation32_spill] sm:$0xff] %v6130_v35 }
 0x475   : > { %v6120_v23 = vmax.f32 %v7089_v32, %v1518_v54 }
 0x476   : > { %v1520_v47 = vpop.xlane.xlu0 %1519 }
 0x477   : > { %1624 = vperm.xlu1 %4631, %v6091_v36   ;;  %v6108_v31 = vmax.f32 %v5806_v52, %v1520_v47 }
 0x478   : > { %v1522_v52 = vpop.xlane.xlu1 %1521 }
 0x479   : > { %v6124_v18 = vmax.f32 %v7090_v53, %v1522_v52 }
 0x47b   : > { %1629 = vperm.xlu1 %4631, %v6095_v5  }
 0x47e   : > { %2443 = vmax.xlane.f32.xlu0 %v5954_v55 }
 0x47f   : > { %1639 = vperm.xlu1 %4631, %v6099_v33  }
 0x483   : > { %1649 = vperm.xlu1 %4631, %v6104_v44  }
 0x487   : > { %1659 = vperm.xlu1 %4631, %v6108_v31  }
 0x494   : > { %1634 = vperm.xlu0 %4630, %v6112_v12  }
 0x498   : > { %1644 = vperm.xlu0 %4630, %v6116_v14   ;;  %v6139_v0 = vpop.xlane.xlu0 %2441 }
 0x49a   : > { %v6127_v51 = vpop.xlane.xlu1 %2439 }
 0x49c   : > { %1654 = vperm.xlu0 %4630, %v6120_v23  }
 0x49e   : > { %v6133_v34 = vpop.xlane.xlu1 %2445 }
 0x4a0   : > { %1664 = vperm.xlu0 %4630, %v6124_v18  }
 0x4a2   : > { %v6135_v57 = vpop.xlane.xlu1 %2449 }
 0x4a6   : > { %v6137_v6 = vpop.xlane.xlu1 %2453 }
 0x4bf   : > { %2447 = vmax.xlane.f32.xlu0 %v5963_v15 }
 0x4c3   : > { %2451 = vmax.xlane.f32.xlu0 %v6130_v35 }
 0x4d6   : > { %v1595_v25 = vpop.permute.xlu1 %1594 }
 0x4d7   : > { %v1668_v63 = vsub.f32 %v5890_v24, %v1595_v25 }
 0x4d9   : > { %v1685_v9 = vmul.f32 1.442695, %v1668_v63 }
 0x4da   : > { %v1590_v21 = vpop.permute.xlu0 %1589 }
 0x4db   : > { %4638 = vpow2.f32 %v1685_v9  ;;  %v1667_v37 = vsub.f32 %v5893_v11, %v1590_v21 }
 0x4dd   : > { %v1683_v47 = vmul.f32 1.442695, %v1667_v37 }
 0x4de   : > { %v1600_v50 = vpop.permute.xlu1 %1599 }
 0x4df   : > { %4640 = vpow2.f32 %v1683_v47  ;;  %v1669_v61 = vsub.f32 %v5899_v28, %v1600_v50 }
 0x4e1   : > { %v1687_v54 = vmul.f32 1.442695, %v1669_v61 }
 0x4e2   : > { %v1605_v32 = vpop.permute.xlu1 %1604 }
 0x4e3   : > { %4642 = vpow2.f32 %v1687_v54  ;;  %v1670_v52 = vsub.f32 %v5895_v26, %v1605_v32 }
 0x4e5   : > { %v1689_v53 = vmul.f32 1.442695, %v1670_v52 }
 0x4e6   : > { %v1610_v35 = vpop.permute.xlu1 %1609 }
 0x4e7   : > { %4644 = vpow2.f32 %v1689_v53  ;;  %v1671_v24 = vsub.f32 %v5904_v48, %v1610_v35 }
 0x4e8   : > { %v4639_v25 = vpop.eup %4638 }
 0x4e9   : > { %v1691_v63 = vmul.f32 1.442695, %v1671_v24  ;;  %1797 = vadd.xlane.f32.xlu0 %v4639_v25 }
 0x4ea   : > { %v1615_v9 = vpop.permute.xlu1 %1614 }
 0x4eb   : > { %4646 = vpow2.f32 %v1691_v63  ;;  %v1672_v11 = vsub.f32 %v5901_v29, %v1615_v9 }
 0x4ec   : > { %v4641_v21 = vpop.eup %4640 }
 0x4ed   : > { %v1693_v37 = vmul.f32 1.442695, %v1672_v11  ;;  %4259 = vmatprep.mubr.f32.mxu1 %v4641_v21  ;;  %1795 = vadd.xlane.f32.xlu1 %v4641_v21 }
 0x4ee   : > { %4260 = vmatmul.mubr.f32.vlgmr.msra.gmra.mxu1 %v4639_v25  ;;  %v1620_v28 = vpop.permute.xlu1 %1619 }
 0x4ef   : > { %4648 = vpow2.f32 %v1693_v37  ;;  %v1673_v26 = vsub.f32 %v5912_v19, %v1620_v28 }
 0x4f0   : > { %v4643_v47 = vpop.eup %4642 }
 0x4f1   : > { %v1695_v50 = vmul.f32 1.442695, %v1673_v26  ;;  %4262 = vmatprep.mubr.f32.mxu1 %v4643_v47  ;;  %1799 = vadd.xlane.f32.xlu0 %v4643_v47 }
 0x4f2   : > { %v1625_v48 = vpop.permute.xlu1 %1624 }
 0x4f3   : > { %4650 = vpow2.f32 %v1695_v50  ;;  %v1674_v35 = vsub.f32 %v5907_v49, %v1625_v48 }
 0x4f4   : > { %v4645_v61 = vpop.eup %4644 }
 0x4f5   : > { %v1697_v54 = vmul.f32 1.442695, %v1674_v35  ;;  %1801 = vadd.xlane.f32.xlu1 %v4645_v61  ;;  %4263 = vmatmul.mubr.f32.gmra.mxu1 %v4645_v61 }
 0x4f6   : > { %v1630_v29 = vpop.permute.xlu1 %1629 }
 0x4f7   : > { %4652 = vpow2.f32 %v1697_v54  ;;  %v1675_v32 = vsub.f32 %v5918_v13, %v1630_v29 }
 0x4f8   : > { %v4647_v52 = vpop.eup %4646 }
 0x4f9   : > { %v1699_v53 = vmul.f32 1.442695, %v1675_v32  ;;  %4265 = vmatprep.mubr.f32.mxu1 %v4647_v52  ;;  %1803 = vadd.xlane.f32.xlu0 %v4647_v52 }
 0x4fa   : > { %v1640_v19 = vpop.permute.xlu1 %1639 }
 0x4fb   : > { %4654 = vpow2.f32 %v1699_v53  ;;  %v1677_v24 = vsub.f32 %v5924_v40, %v1640_v19  ;;  %v6153_v40 = vpop.f32.mrf.mxu0 }
 0x4fc   : > { %v4649_v25 = vpop.eup %4648 }
 0x4fd   : > { %v1703_v63 = vmul.f32 1.442695, %v1677_v24  ;;  %1805 = vadd.xlane.f32.xlu1 %v4649_v25  ;;  %4266 = vmatmul.mubr.f32.gmra.mxu1 %v4649_v25  ;;  %v6155_v50 = vpop.f32.mrf.mxu0 }
 0x4fe   : > { %v1650_v49 = vpop.permute.xlu1 %1649 }
 0x4ff   : > { %4656 = vpow2.f32 %v1703_v63  ;;  %v1679_v9 = vsub.f32 %v5930_v30, %v1650_v49  ;;  %v6159_v35 = vpop.f32.mrf.mxu0 }
 0x500   : > { %v4651_v11 = vpop.eup %4650 }
 0x501   : > { %v1707_v21 = vmul.f32 1.442695, %v1679_v9  ;;  %4268 = vmatprep.mubr.f32.mxu1 %v4651_v11  ;;  %1807 = vadd.xlane.f32.xlu0 %v4651_v11  ;;  %v6162_v32 = vpop.f32.mrf.mxu0 }
 0x502   : > { %v1660_v13 = vpop.permute.xlu1 %1659 }
 0x503   : > { %4658 = vpow2.f32 %v1707_v21  ;;  %v1681_v37 = vsub.f32 %v5936_v60, %v1660_v13  ;;  %v6165_v25 = vpop.f32.mrf.mxu0 }
 0x504   : > { %v4653_v28 = vpop.eup %4652 }
 0x505   : > { %v1711_v26 = vmul.f32 1.442695, %v1681_v37  ;;  %1809 = vadd.xlane.f32.xlu1 %v4653_v28  ;;  %4269 = vmatmul.mubr.f32.gmra.mxu1 %v4653_v28  ;;  %v6169_v9 = vpop.f32.mrf.mxu0 }
 0x507   : > { %4660 = vpow2.f32 %v1711_v26  ;;  %v6157_v30 = vpop.xlane.xlu0 %2443  ;;  %v6173_v13 = vpop.f32.mrf.mxu0  ;;  %v890_v26 = vsub.s32 3, %v5721_v39 }
 0x508   : > { %v4655_v47 = vpop.eup %4654 }
 0x509   : > { %4271 = vmatprep.mubr.f32.mxu1 %v4655_v47  ;;  %1811 = vadd.xlane.f32.xlu0 %v4655_v47  ;;  %v4766_v47 = vld [vmem:[%s7060_s25] sm:$0xf] }
 0x50c   : > { %v4657_v48 = vpop.eup %4656 }
 0x50d   : > { %1815 = vadd.xlane.f32.xlu0 %v4657_v48 }
 0x50f   : > { %v1635_v61 = vpop.permute.xlu0 %1634 }
 0x510   : > { %v4659_v60 = vpop.eup %4658  ;;  %v1676_v54 = vsub.f32 %v5915_v59, %v1635_v61  ;;  %v891_v61 = vrot.slane %v4766_v47, %v890_v26  ;;  %v7099_v26 = vld [vmem:[#allocation40_spill] sm:$0xff]  ;;  %v7100_v47 = vld [vmem:[#allocation38_spill] sm:$0xff] }
 0x511   : > { %1819 = vadd.xlane.f32.xlu0 %v4659_v60 }
 0x512   : > { %v1701_v29 = vmul.f32 1.442695, %v1676_v54  ;;  %v1215_v54 = vpop.f32.mrf.mxu1  ;;  %v1204_v39 = vadd.f32 %v6018_v2, %v891_v61 }
 0x513   : > { %v1645_v52 = vpop.permute.xlu0 %1644 }
 0x514   : > { %v4661_v53 = vpop.eup %4660  ;;  %4662 = vpow2.f32 %v1701_v29  ;;  %v1678_v19 = vsub.f32 %v5921_v46, %v1645_v52  ;;  %v1216_v52 = vadd.f32 %v1215_v54, %v891_v61  ;;  %v1132_v54 = vadd.f32 %v7100_v47, %v891_v61 }
 0x515   : > { %1823 = vadd.xlane.f32.xlu0 %v4661_v53 }
 0x516   : > { %v1705_v24 = vmul.f32 1.442695, %v1678_v19  ;;  %4339 = vmatprep.subr.mxu1 %v1216_v52  ;;  %v1192_v19 = vadd.f32 %v6009_v42, %v891_v61 }
 0x517   : > { %v1655_v63 = vpop.permute.xlu0 %1654  ;;  %4340 = vmatpush3.msra.mxu1 %v1216_v52  ;;  %v4767_v52 = vld [vmem:[#allocation4 + $0x8] sm:$0xff] }
 0x518   : > { %4664 = vpow2.f32 %v1705_v24  ;;  %v1680_v49 = vsub.f32 %v5927_v27, %v1655_v63  ;;  %v6176_v27 = vpop.f32.mrf.mxu0  ;;  %v7093_v24 = vld [vmem:[#allocation50_spill] sm:$0xff]  ;;  %v7094_v63 = vld [vmem:[#allocation47_spill] sm:$0xff] }
 0x519   : > { %2455 = vmax.xlane.f32.xlu0 %v6155_v50  ;;  %v1168_v42 = vadd.f32 %v7094_v63, %v891_v61 }
 0x51a   : > { %v1709_v59 = vmul.f32 1.442695, %v1680_v49  ;;  %v7095_v49 = vld [vmem:[#allocation45_spill] sm:$0xff] }
 0x51b   : > { %v1665_v11 = vpop.permute.xlu0 %1664 }
 0x51c   : > { %4666 = vpow2.f32 %v1709_v59  ;;  %v1682_v21 = vsub.f32 %v5933_v17, %v1665_v11  ;;  %v7096_v59 = vld [vmem:[#allocation44_spill] sm:$0xff] }
 0x51d   : > { %2459 = vmax.xlane.f32.xlu0 %v6162_v32  ;;  %v1156_v11 = vadd.f32 %v7096_v59, %v891_v61 }
 0x51e   : > { %v1713_v46 = vmul.f32 1.442695, %v1682_v21  ;;  %v7097_v21 = vld [vmem:[#allocation43_spill] sm:$0xff] }
 0x520   : > { %4668 = vpow2.f32 %v1713_v46  ;;  %v1150_v46 = vadd.f32 %v7097_v21, %v891_v61  ;;  %v4772_v21 = vld [vmem:[#allocation4 + $0x28] sm:$0xff] }
 0x521   : > { %v4663_v37 = vpop.eup %4662  ;;  %2463 = vmax.xlane.f32.xlu0 %v6169_v9 }
 0x522   : > { %1813 = vadd.xlane.f32.xlu1 %v4663_v37  ;;  %4272 = vmatmul.mubr.f32.gmra.mxu1 %v4663_v37  ;;  %v7098_v37 = vld [vmem:[#allocation42_spill] sm:$0xff] }
 0x523   : > { %4274 = vmatprep.mubr.f32.mxu1 %v4657_v48  ;;  %v1210_v48 = vadd.f32 %v6027_v16, %v891_v61  ;;  %v7092_v16 = vld [vmem:[#allocation52_spill] sm:$0xff] }
 0x524   : > { %v1180_v2 = vadd.f32 %v7092_v16, %v891_v61 }
 0x525   : > { %v4665_v28 = vpop.eup %4664  ;;  %2467 = vmax.xlane.f32.xlu0 %v6176_v27  ;;  %4341 = vmatprep.subr.mxu1 %v1210_v48 }
 0x526   : > { %1817 = vadd.xlane.f32.xlu1 %v4665_v28  ;;  %4275 = vmatmul.mubr.f32.gmra.mxu1 %v4665_v28  ;;  %v1144_v28 = vadd.f32 %v7098_v37, %v891_v61 }
 0x527   : > { %4277 = vmatprep.mubr.f32.mxu1 %v4659_v60  ;;  %v1198_v60 = vadd.f32 %v6013_v62, %v891_v61  ;;  %4342 = vmatpush3.msra.mxu1 %v1210_v48  ;;  %v1174_v62 = vadd.f32 %v7093_v24, %v891_v61 }
 0x528   : > { %4343 = vmatprep.subr.mxu1 %v1204_v39 }
 0x529   : > { %v4667_v17 = vpop.eup %4666  ;;  %4344 = vmatpush3.msra.mxu1 %v1204_v39  ;;  %v1540_v39 = vsub.f32 %v4767_v52, %v6048_v3 }
 0x52a   : > { %1821 = vadd.xlane.f32.xlu1 %v4667_v17  ;;  %4278 = vmatmul.mubr.f32.gmra.mxu1 %v4667_v17  ;;  %v1138_v17 = vadd.f32 %v7099_v26, %v891_v61 }
 0x52b   : > { %4280 = vmatprep.mubr.f32.mxu1 %v4661_v53  ;;  %v1186_v53 = vadd.f32 %v6003_v1, %v891_v61  ;;  %4345 = vmatprep.subr.mxu1 %v1198_v60  ;;  %v1162_v1 = vadd.f32 %v7095_v49, %v891_v61 }
 0x52c   : > { %4346 = vmatpush3.msra.mxu1 %v1198_v60  ;;  %v1557_v60 = vmul.f32 1.442695, %v1540_v39  ;;  %v7011_v39 = vmov 1  }
 0x52d   : > { %v4669_v29 = vpop.eup %4668  ;;  %4347 = vmatprep.subr.mxu1 %v1192_v19  ;;  %4632 = vset.pattern.permute.xlu0 %v7011_v39 }
 0x52e   : > { %1825 = vadd.xlane.f32.xlu1 %v4669_v29  ;;  %4281 = vmatmul.mubr.f32.gmra.mxu1 %v4669_v29  ;;  %v7101_v29 = vld [vmem:[#allocation34_spill] sm:$0xff]  ;;  %4670 = vpow2.f32 %v1557_v60 }
 0x52f   : > { %4348 = vmatpush3.msra.mxu1 %v1192_v19  ;;  %v1126_v48 = vadd.f32 %v7101_v29, %v891_v61  ;;  %v4768_v19 = vld [vmem:[#allocation4] sm:$0xff]  ;;  %v4770_v61 = vld [vmem:[#allocation4 + $0x18] sm:$0xff] }
 0x530   : > { %4349 = vmatprep.subr.mxu1 %v1186_v53 }
 0x531   : > { %4350 = vmatpush3.msra.mxu1 %v1186_v53  ;;  %v1539_v53 = vsub.f32 %v4768_v19, %v6055_v43 }
 0x532   : > { %2457 = vmax.xlane.f32.xlu1 %v6153_v40  ;;  %4351 = vmatprep.subr.mxu1 %v1180_v2 }
 0x533   : > { %4352 = vmatpush3.msra.mxu1 %v1180_v2  ;;  %v1555_v16 = vmul.f32 1.442695, %v1539_v53  ;;  %v4769_v2 = vld [vmem:[#allocation4 + $0x10] sm:$0xff]  ;;  %v4774_v53 = vld [vmem:[#allocation4 + $0x38] sm:$0xff] }
 0x534   : > { %4353 = vmatprep.subr.mxu1 %v1174_v62  ;;  %v1541_v24 = vsub.f32 %v4769_v2, %v6063_v20  ;;  %v7103_v2 = vld [vmem:[#allocation48_spill] sm:$0xff] }
 0x535   : > { %4354 = vmatpush3.msra.mxu1 %v1174_v62  ;;  %4672 = vpow2.f32 %v1555_v16  ;;  %v1542_v62 = vsub.f32 %v4770_v61, %v6071_v8  ;;  %v1546_v16 = vsub.f32 %v4774_v53, %v6091_v36 }
 0x536   : > { %2461 = vmax.xlane.f32.xlu1 %v6159_v35  ;;  %4355 = vmatprep.subr.mxu1 %v1168_v42  ;;  %v1559_v63 = vmul.f32 1.442695, %v1541_v24 }
 0x537   : > { %4356 = vmatpush3.msra.mxu1 %v1168_v42  ;;  %v4771_v42 = vld [vmem:[#allocation4 + $0x20] sm:$0xff]  ;;  %v1561_v59 = vmul.f32 1.442695, %v1542_v62 }
 0x538   : > { %4357 = vmatprep.subr.mxu1 %v1162_v1  ;;  %v1543_v49 = vsub.f32 %v4771_v42, %v6079_v56  ;;  %4674 = vpow2.f32 %v1559_v63  ;;  %v1569_v42 = vmul.f32 1.442695, %v1546_v16 }
 0x539   : > { %4358 = vmatpush3.msra.mxu1 %v1162_v1  ;;  %4676 = vpow2.f32 %v1561_v59 }
 0x53a   : > { %2465 = vmax.xlane.f32.xlu1 %v6165_v25  ;;  %4359 = vmatprep.subr.mxu1 %v1156_v11 }
 0x53b   : > { %4360 = vmatpush3.msra.mxu1 %v1156_v11  ;;  %v1563_v11 = vmul.f32 1.442695, %v1543_v49  ;;  %v6209_v37 = vpop.eup %4670  ;;  %v4775_v49 = vld [vmem:[#allocation4 + $0x40] sm:$0xff] }
 0x53c   : > { %4361 = vmatprep.subr.mxu1 %v1150_v46  ;;  %v1547_v59 = vsub.f32 %v4775_v49, %v6095_v5 }
 0x53d   : > { %4362 = vmatpush3.msra.mxu1 %v1150_v46  ;;  %v1544_v46 = vsub.f32 %v4772_v21, %v6083_v58  ;;  %4678 = vpow2.f32 %v1563_v11  ;;  %v7104_v11 = vld [vmem:[#allocation51_spill] sm:$0xff] }
 0x53e   : > { %4363 = vmatprep.subr.mxu1 %v1144_v28 }
 0x53f   : > { %4364 = vmatpush3.msra.mxu1 %v1144_v28  ;;  %v1565_v26 = vmul.f32 1.442695, %v1544_v46 }
 0x540   : > { %4365 = vmatprep.subr.mxu1 %v1138_v17 }
 0x541   : > { %4366 = vmatpush3.msra.mxu1 %v1138_v17  ;;  %v4773_v17 = vld [vmem:[#allocation4 + $0x30] sm:$0xff]  ;;  %4680 = vpow2.f32 %v1565_v26 }
 0x542   : > { %4367 = vmatprep.subr.mxu1 %v1132_v54  ;;  %v1545_v47 = vsub.f32 %v4773_v17, %v6087_v41 }
 0x543   : > { %4368 = vmatpush3.msra.mxu1 %v1132_v54  ;;  %v7102_v54 = vld [vmem:[#allocation46_spill] sm:$0xff] }
 0x544   : > { %4369 = vmatprep.subr.mxu1 %v1126_v48  ;;  %v1780_v29 = vmul.f32 %v6209_v37, %v7102_v54  ;;  %v1567_v19 = vmul.f32 1.442695, %v1545_v47  ;;  %v1571_v54 = vmul.f32 1.442695, %v1547_v59 }
 0x545   : > { %4370 = vmatpush3.msra.mxu1 %v1126_v48  ;;  %v6216_v48 = vpop.eup %4672 }
 0x546   : > { %v1779_v24 = vmul.f32 %v6216_v48, %v7103_v2  ;;  %v6223_v61 = vpop.eup %4674  ;;  %4682 = vpow2.f32 %v1567_v19 }
 0x547   : > { %v1781_v21 = vmul.f32 %v6223_v61, %v7104_v11  ;;  %v6229_v46 = vpop.eup %4676  ;;  %4684 = vpow2.f32 %v1569_v42 }
 0x548   : > { %v6206_v1 = vpop.xlane.xlu0 %2447  ;;  %4686 = vpow2.f32 %v1571_v54 }
 0x54a   : > { %v6231_v47 = vpop.eup %4678 }
 0x54c   : > { %v6211_v28 = vpop.xlane.xlu0 %2451 }
 0x54e   : > { %v6241_v49 = vpop.eup %4680 }
 0x553   : > { %v6246_v54 = vpop.eup %4682 }
 0x572   : > { %v1798_v52 = vpop.xlane.xlu0 %1797 }
 0x573   : > { %v1828_v60 = vadd.f32 %v1798_v52, %v1780_v29  ;;  %v4776_v29 = vld [vmem:[#allocation4 + $0x50] sm:$0xff] }
 0x574   : > { %v1549_v52 = vsub.f32 %v4776_v29, %v6099_v33 }
 0x575   : > { %1861 = vrot.lane.b32.xlu1 %v1828_v60, %s5135_s2  ;;  %v7105_v60 = vld [vmem:[#allocation49_spill] sm:$0xff] }
 0x576   : > { %v1796_v62 = vpop.xlane.xlu1 %1795  ;;  %v1782_v19 = vmul.f32 %v6229_v46, %v7105_v60  ;;  %v1575_v2 = vmul.f32 1.442695, %v1549_v52  ;;  %v7108_v60 = vld [vmem:[#allocation56_spill] sm:$0xff] }
 0x577   : > { %v1827_v63 = vadd.f32 %v1796_v62, %v1779_v24  ;;  %v4777_v24 = vld [vmem:[#allocation4 + $0x60] sm:$0xff] }
 0x578   : > { %v1551_v62 = vsub.f32 %v4777_v24, %v6104_v44  ;;  %4688 = vpow2.f32 %v1575_v2  ;;  %v7109_v24 = vld [vmem:[#allocation55_spill] sm:$0xff] }
 0x579   : > { %1859 = vrot.lane.b32.xlu0 %v1827_v63, %s5135_s2  ;;  %v7106_v63 = vld [vmem:[#allocation54_spill] sm:$0xff] }
 0x57a   : > { %v1800_v26 = vpop.xlane.xlu0 %1799  ;;  %v1783_v42 = vmul.f32 %v6231_v47, %v7106_v63 }
 0x57b   : > { %v1829_v17 = vadd.f32 %v1800_v26, %v1781_v21  ;;  %v1579_v21 = vmul.f32 1.442695, %v1551_v62  ;;  %v7107_v26 = vld [vmem:[#allocation53_spill] sm:$0xff] }
 0x57d   : > { %1863 = vrot.lane.b32.xlu1 %v1829_v17, %s5135_s2  ;;  %v1784_v17 = vmul.f32 %v6241_v49, %v7107_v26  ;;  %4690 = vpow2.f32 %v1579_v21  ;;  %v4778_v26 = vld [vmem:[#allocation4 + $0x48] sm:$0xff] }
 0x57e   : > { %v1802_v53 = vpop.xlane.xlu1 %1801 }
 0x57f   : > { %v1830_v16 = vadd.f32 %v1802_v53, %v1782_v19  ;;  %v1785_v19 = vmul.f32 %v6246_v54, %v7108_v60  ;;  %v6251_v53 = vpop.eup %4684 }
 0x580   : > { %v1786_v62 = vmul.f32 %v6251_v53, %v7109_v24  ;;  %v6256_v63 = vpop.eup %4686 }
 0x581   : > { %1865 = vrot.lane.b32.xlu0 %v1830_v16, %s5135_s2 }
 0x582   : > { %v1804_v59 = vpop.xlane.xlu0 %1803 }
 0x583   : > { %v1831_v11 = vadd.f32 %v1804_v59, %v1783_v42 }
 0x585   : > { %1867 = vrot.lane.b32.xlu1 %v1831_v11, %s5135_s2  ;;  %v1787_v11 = vmul.f32 %v6256_v63, %v6020_v7  ;;  %v6261_v21 = vpop.eup %4688 }
 0x586   : > { %v1806_v29 = vpop.xlane.xlu1 %1805  ;;  %v1789_v60 = vmul.f32 %v6261_v21, %v6031_v45 }
 0x587   : > { %v1832_v52 = vadd.f32 %v1806_v29, %v1784_v17  ;;  %v1548_v17 = vsub.f32 %v4778_v26, %v6112_v12 }
 0x589   : > { %1869 = vrot.lane.b32.xlu0 %v1832_v52, %s5135_s2 }
 0x58a   : > { %v1808_v16 = vpop.xlane.xlu0 %1807 }
 0x58b   : > { %v1833_v2 = vadd.f32 %v1808_v16, %v1785_v19  ;;  %v6267_v19 = vpop.eup %4690  ;;  %v1573_v16 = vmul.f32 1.442695, %v1548_v17 }
 0x58d   : > { %1871 = vrot.lane.b32.xlu1 %v1833_v2, %s5135_s2  ;;  %v4779_v2 = vld [vmem:[#allocation4 + $0x58] sm:$0xff]  ;;  %4692 = vpow2.f32 %v1573_v16 }
 0x58e   : > { %v1810_v42 = vpop.xlane.xlu1 %1809  ;;  %v1550_v24 = vsub.f32 %v4779_v2, %v6116_v14 }
 0x58f   : > { %v1834_v59 = vadd.f32 %v1810_v42, %v1786_v62  ;;  %v1791_v42 = vmul.f32 %v6267_v19, %v6038_v38  ;;  %v7110_v38 = vld [vmem:[#allocation57_spill] sm:$0xff] }
 0x591   : > { %1873 = vrot.lane.b32.xlu0 %v1834_v59, %s5135_s2  ;;  %v1577_v59 = vmul.f32 1.442695, %v1550_v24 }
 0x592   : > { %v1812_v29 = vpop.xlane.xlu0 %1811 }
 0x593   : > { %v1835_v52 = vadd.f32 %v1812_v29, %v1787_v11  ;;  %v4780_v11 = vld [vmem:[#allocation4 + $0x68] sm:$0xff]  ;;  %4694 = vpow2.f32 %v1577_v59 }
 0x594   : > { %v1552_v26 = vsub.f32 %v4780_v11, %v6120_v23 }
 0x595   : > { %1875 = vrot.lane.b32.xlu1 %v1835_v52, %s5135_s2  ;;  %v4781_v52 = vld [vmem:[#allocation4 + $0x70] sm:$0xff] }
 0x596   : > { %v1816_v62 = vpop.xlane.xlu0 %1815  ;;  %v1581_v17 = vmul.f32 1.442695, %v1552_v26  ;;  %v1553_v2 = vsub.f32 %v4781_v52, %v6108_v31 }
 0x597   : > { %v1837_v7 = vadd.f32 %v1816_v62, %v1789_v60 }
 0x598   : > { %4696 = vpow2.f32 %v1581_v17  ;;  %v1583_v60 = vmul.f32 1.442695, %v1553_v2 }
 0x599   : > { %1879 = vrot.lane.b32.xlu1 %v1837_v7, %s5135_s2 }
 0x59a   : > { %v1820_v29 = vpop.xlane.xlu0 %1819  ;;  %4698 = vpow2.f32 %v1583_v60  ;;  %v6276_v62 = vpop.eup %4692 }
 0x59b   : > { %v1839_v45 = vadd.f32 %v1820_v29, %v1791_v42  ;;  %v1788_v16 = vmul.f32 %v6276_v62, %v7110_v38  ;;  %v7111_v42 = vld [vmem:[#allocation58_spill] sm:$0xff] }
 0x59d   : > { %1883 = vrot.lane.b32.xlu1 %v1839_v45, %s5135_s2 }
 0x59e   : > { %v1824_v38 = vpop.xlane.xlu0 %1823 }
 0x5a0   : > { %v6280_v24 = vpop.eup %4694 }
 0x5a1   : > { %v1790_v59 = vmul.f32 %v6280_v24, %v7111_v42 }
 0x5a5   : > { %v6285_v26 = vpop.eup %4696 }
 0x5a6   : > { %v1792_v17 = vmul.f32 %v6285_v26, %v6034_v4 }
 0x5a7   : > { %v6290_v52 = vpop.eup %4698 }
 0x5ab   : > { %v1814_v7 = vpop.xlane.xlu1 %1813 }
 0x5ac   : > { %v1836_v11 = vadd.f32 %v1814_v7, %v1788_v16  ;;  %v4782_v16 = vld [vmem:[#allocation4 + $0x78] sm:$0xff] }
 0x5ad   : > { %v1554_v7 = vsub.f32 %v4782_v16, %v6124_v18 }
 0x5ae   : > { %1877 = vrot.lane.b32.xlu0 %v1836_v11, %s5135_s2  ;;  %v1793_v11 = vmul.f32 %v6290_v52, %v6045_v22 }
 0x5af   : > { %v1818_v29 = vpop.xlane.xlu1 %1817 }
 0x5b0   : > { %v1838_v45 = vadd.f32 %v1818_v29, %v1790_v59  ;;  %v1841_v42 = vadd.f32 %v1824_v38, %v1793_v11  ;;  %v1585_v59 = vmul.f32 1.442695, %v1554_v7 }
 0x5b2   : > { %1881 = vrot.lane.b32.xlu0 %v1838_v45, %s5135_s2  ;;  %4700 = vpow2.f32 %v1585_v59 }
 0x5b3   : > { %v1822_v2 = vpop.xlane.xlu1 %1821 }
 0x5b4   : > { %v1840_v60 = vadd.f32 %v1822_v2, %v1792_v17  ;;  %v6303_v2 = vpop.xlane.xlu0 %2455 }
 0x5b6   : > { %1885 = vrot.lane.b32.xlu0 %v1840_v60, %s5135_s2 }
 0x5b7   : > { %v1826_v29 = vpop.xlane.xlu1 %1825 }
 0x5b8   : > { %v6308_v60 = vpop.xlane.xlu0 %2459 }
 0x5ba   : > { %1887 = vrot.lane.b32.xlu0 %v1841_v42, %s5135_s2 }
 0x5bb   : > { %v6305_v22 = vpop.xlane.xlu1 %2457 }
 0x5bc   : > { %v6314_v16 = vpop.xlane.xlu0 %2463 }
 0x5bf   : > { %v6298_v4 = vpop.eup %4700  ;;  %v6311_v38 = vpop.xlane.xlu1 %2461 }
 0x5c0   : > { %v1794_v45 = vmul.f32 %v6298_v4, %v6041_v10  ;;  %v6318_v7 = vpop.xlane.xlu0 %2467 }
 0x5c1   : > { %2469 = vmax.xlane.f32.xlu1 %v6173_v13 }
 0x5c2   : > { %v1842_v17 = vadd.f32 %v1826_v29, %v1794_v45 }
 0x5c3   : > { %v6316_v10 = vpop.xlane.xlu1 %2465 }
 0x5d2   : > { %1889 = vrot.lane.b32.xlu1 %v1842_v17, %s5135_s2 }
 0x5d6   : > { %1942 = vperm.xlu1 %4631, %v6216_v48  }
 0x5da   : > { %1952 = vperm.xlu1 %4631, %v6223_v61  }
 0x5de   : > { %4633 = vset.pattern.permute.xlu1 %v7011_v39 }
 0x5e7   : > { %v1862_v11 = vpop.permute.xlu1 %1861 }
 0x5e8   : > { %1909 = vst.msk [vmem:[#allocation4 + $0x8] sm:$0xff] %vm1907_vm2, %v1862_v11 }
 0x5e9   : > { %2215 = vst.msk [vmem:[#allocation4 + $0x8] sm:$0xff] %vm2213_vm3, %v6048_v3 }
 0x5eb   : > { %v1860_v48 = vpop.permute.xlu0 %1859 }
 0x5ec   : > { %1908 = vst.msk [vmem:[#allocation4] sm:$0xff] %vm1907_vm2, %v1860_v48 }
 0x5ed   : > { %2214 = vst.msk [vmem:[#allocation4] sm:$0xff] %vm2213_vm3, %v6055_v43 }
 0x5ef   : > { %v1864_v61 = vpop.permute.xlu1 %1863 }
 0x5f0   : > { %1910 = vst.msk [vmem:[#allocation4 + $0x10] sm:$0xff] %vm1907_vm2, %v1864_v61  ;;  %v6327_v42 = vld [vmem:[#allocation4 + $0x8] sm:$0xff] }
 0x5f1   : > { %2216 = vst.msk [vmem:[#allocation4 + $0x10] sm:$0xff] %vm2213_vm3, %v6063_v20  ;;  %v6333_v59 = vmax.f32 %v6327_v42, %v6139_v0 }
 0x5f3   : > { %2542 = vperm.xlu0 %4632, %v6333_v59   ;;  %v1866_v3 = vpop.permute.xlu0 %1865 }
 0x5f4   : > { %1911 = vst.msk [vmem:[#allocation4 + $0x18] sm:$0xff] %vm1907_vm2, %v1866_v3  ;;  %v6337_v29 = vld [vmem:[#allocation4] sm:$0xff] }
 0x5f5   : > { %2217 = vst.msk [vmem:[#allocation4 + $0x18] sm:$0xff] %vm2213_vm3, %v6071_v8  ;;  %v6343_v43 = vmax.f32 %v6337_v29, %v6127_v51 }
 0x5f7   : > { %v1868_v45 = vpop.permute.xlu1 %1867  ;;  %2537 = vperm.xlu1 %4633, %v6343_v43  }
 0x5f8   : > { %1912 = vst.msk [vmem:[#allocation4 + $0x20] sm:$0xff] %vm1907_vm2, %v1868_v45  ;;  %v6347_v20 = vld [vmem:[#allocation4 + $0x10] sm:$0xff] }
 0x5f9   : > { %2218 = vst.msk [vmem:[#allocation4 + $0x20] sm:$0xff] %vm2213_vm3, %v6079_v56  ;;  %v6353_v0 = vmax.f32 %v6347_v20, %v6157_v30 }
 0x5fb   : > { %2547 = vperm.xlu1 %4633, %v6353_v0   ;;  %v1870_v8 = vpop.permute.xlu0 %1869 }
 0x5fc   : > { %1913 = vst.msk [vmem:[#allocation4 + $0x28] sm:$0xff] %vm1907_vm2, %v1870_v8  ;;  %v6357_v51 = vld [vmem:[#allocation4 + $0x18] sm:$0xff] }
 0x5fd   : > { %2219 = vst.msk [vmem:[#allocation4 + $0x28] sm:$0xff] %vm2213_vm3, %v6083_v58  ;;  %v6363_v17 = vmax.f32 %v6357_v51, %v6133_v34 }
 0x5ff   : > { %v1872_v11 = vpop.permute.xlu1 %1871  ;;  %2552 = vperm.xlu1 %4633, %v6363_v17  }
 0x600   : > { %1914 = vst.msk [vmem:[#allocation4 + $0x30] sm:$0xff] %vm1907_vm2, %v1872_v11  ;;  %v6367_v56 = vld [vmem:[#allocation4 + $0x20] sm:$0xff] }
 0x601   : > { %2220 = vst.msk [vmem:[#allocation4 + $0x30] sm:$0xff] %vm2213_vm3, %v6087_v41  ;;  %v6373_v30 = vmax.f32 %v6367_v56, %v6206_v1 }
 0x603   : > { %2557 = vperm.xlu0 %4632, %v6373_v30   ;;  %v1874_v58 = vpop.permute.xlu0 %1873 }
 0x604   : > { %1915 = vst.msk [vmem:[#allocation4 + $0x38] sm:$0xff] %vm1907_vm2, %v1874_v58  ;;  %v6377_v34 = vld [vmem:[#allocation4 + $0x28] sm:$0xff] }
 0x605   : > { %2221 = vst.msk [vmem:[#allocation4 + $0x38] sm:$0xff] %vm2213_vm3, %v6091_v36  ;;  %v6383_v48 = vmax.f32 %v6377_v34, %v6135_v57 }
 0x607   : > { %v1876_v61 = vpop.permute.xlu1 %1875  ;;  %2562 = vperm.xlu1 %4633, %v6383_v48  }
 0x608   : > { %1916 = vst.msk [vmem:[#allocation4 + $0x40] sm:$0xff] %vm1907_vm2, %v1876_v61  ;;  %v6387_v41 = vld [vmem:[#allocation4 + $0x30] sm:$0xff] }
 0x609   : > { %2222 = vst.msk [vmem:[#allocation4 + $0x40] sm:$0xff] %vm2213_vm3, %v6095_v5  ;;  %v6393_v1 = vmax.f32 %v6387_v41, %v6211_v28 }
 0x60b   : > { %v1880_v3 = vpop.permute.xlu1 %1879  ;;  %2567 = vperm.xlu0 %4632, %v6393_v1  }
 0x60c   : > { %1918 = vst.msk [vmem:[#allocation4 + $0x50] sm:$0xff] %vm1907_vm2, %v1880_v3  ;;  %v6397_v36 = vld [vmem:[#allocation4 + $0x38] sm:$0xff] }
 0x60d   : > { %2224 = vst.msk [vmem:[#allocation4 + $0x50] sm:$0xff] %vm2213_vm3, %v6099_v33  ;;  %v6403_v57 = vmax.f32 %v6397_v36, %v6137_v6 }
 0x60f   : > { %v1884_v45 = vpop.permute.xlu1 %1883  ;;  %2572 = vperm.xlu1 %4633, %v6403_v57  }
 0x610   : > { %1920 = vst.msk [vmem:[#allocation4 + $0x60] sm:$0xff] %vm1907_vm2, %v1884_v45  ;;  %v6407_v5 = vld [vmem:[#allocation4 + $0x40] sm:$0xff] }
 0x611   : > { %2226 = vst.msk [vmem:[#allocation4 + $0x60] sm:$0xff] %vm2213_vm3, %v6104_v44  ;;  %v6413_v28 = vmax.f32 %v6407_v5, %v6303_v2 }
 0x613   : > { %2577 = vperm.xlu0 %4632, %v6413_v28  }
 0x614   : > { %v6416_v33 = vld [vmem:[#allocation4 + $0x50] sm:$0xff] }
 0x615   : > { %v6420_v6 = vmax.f32 %v6416_v33, %v6308_v60 }
 0x617   : > { %2587 = vperm.xlu0 %4632, %v6420_v6  }
 0x618   : > { %v6423_v8 = vld [vmem:[#allocation4 + $0x60] sm:$0xff] }
 0x619   : > { %v6427_v11 = vmax.f32 %v6423_v8, %v6314_v16 }
 0x61b   : > { %2597 = vperm.xlu0 %4632, %v6427_v11  }
 0x620   : > { %v1878_v44 = vpop.permute.xlu0 %1877 }
 0x621   : > { %1917 = vst.msk [vmem:[#allocation4 + $0x48] sm:$0xff] %vm1907_vm2, %v1878_v44 }
 0x622   : > { %2223 = vst.msk [vmem:[#allocation4 + $0x48] sm:$0xff] %vm2213_vm3, %v6112_v12 }
 0x624   : > { %v1882_v2 = vpop.permute.xlu0 %1881 }
 0x625   : > { %1919 = vst.msk [vmem:[#allocation4 + $0x58] sm:$0xff] %vm1907_vm2, %v1882_v2 }
 0x626   : > { %2225 = vst.msk [vmem:[#allocation4 + $0x58] sm:$0xff] %vm2213_vm3, %v6116_v14 }
 0x628   : > { %v1886_v60 = vpop.permute.xlu0 %1885 }
 0x629   : > { %1921 = vst.msk [vmem:[#allocation4 + $0x68] sm:$0xff] %vm1907_vm2, %v1886_v60  ;;  %v6437_v58 = vld [vmem:[#allocation4 + $0x48] sm:$0xff] }
 0x62a   : > { %2227 = vst.msk [vmem:[#allocation4 + $0x68] sm:$0xff] %vm2213_vm3, %v6120_v23  ;;  %v6443_v16 = vmax.f32 %v6437_v58, %v6305_v22 }
 0x62c   : > { %2582 = vperm.xlu1 %4633, %v6443_v16   ;;  %v1888_v12 = vpop.permute.xlu0 %1887 }
 0x62d   : > { %1922 = vst.msk [vmem:[#allocation4 + $0x70] sm:$0xff] %vm1907_vm2, %v1888_v12  ;;  %v6447_v61 = vld [vmem:[#allocation4 + $0x58] sm:$0xff] }
 0x62e   : > { %2228 = vst.msk [vmem:[#allocation4 + $0x70] sm:$0xff] %vm2213_vm3, %v6108_v31  ;;  %v6453_v14 = vmax.f32 %v6447_v61, %v6311_v38  ;;  %v7113_v31 = vmov 0  }
 0x630   : > { %2592 = vperm.xlu1 %4633, %v6453_v14  }
 0x631   : > { %v6456_v23 = vld [vmem:[#allocation4 + $0x68] sm:$0xff] }
 0x632   : > { %v6460_v22 = vmax.f32 %v6456_v23, %v6316_v10  ;;  %v6476_v10 = vpop.f32.mrf.mxu1 }
 0x634   : > { %2602 = vperm.xlu1 %4633, %v6460_v22  }
 0x635   : > { %v6463_v3 = vld [vmem:[#allocation4 + $0x70] sm:$0xff] }
 0x636   : > { %v6467_v45 = vmax.f32 %v6463_v3, %v6318_v7  ;;  %v1924_v7 = vld [vmem:[#allocation5 + $0x80] sm:$0xff] }
 0x638   : > { %7112 = vst [vmem:[#allocation33_spill] sm:$0xff] %v6467_v45  ;;  %2607 = vperm.xlu0 %4632, %v6467_v45  }
 0x63c   : > { %4634 = vset.pattern.permute.xlu0 %v7113_v31 }
 0x63d   : > { %1947 = vperm.xlu0 %4634, %v6209_v37   ;;  %v2102_v37 = vpop.f32.mrf.mxu1 }
 0x641   : > { %1957 = vperm.xlu0 %4634, %v6229_v46  }
 0x645   : > { %1962 = vperm.xlu0 %4634, %v6231_v47   ;;  %v6482_v47 = vpop.f32.mrf.mxu1 }
 0x649   : > { %1977 = vperm.xlu0 %4634, %v6251_v53   ;;  %v1926_v53 = vld [vmem:[#allocation5 + $0x8] sm:$0xff] }
 0x64a   : > { %v2470_v38 = vpop.xlane.xlu1 %2469 }
 0x64d   : > { %1987 = vperm.xlu0 %4634, %v6276_v62  }
 0x64e   : > { %v1890_v44 = vpop.permute.xlu1 %1889 }
 0x64f   : > { %1923 = vst.msk [vmem:[#allocation4 + $0x78] sm:$0xff] %vm1907_vm2, %v1890_v44  ;;  %v2112_v44 = vpop.f32.mrf.mxu1 }
 0x650   : > { %2229 = vst.msk [vmem:[#allocation4 + $0x78] sm:$0xff] %vm2213_vm3, %v6124_v18 }
 0x651   : > { %1997 = vperm.xlu0 %4634, %v6280_v24   ;;  %v7114_v24 = vmov 1  }
 0x652   : > { %v1943_v46 = vpop.permute.xlu1 %1942 }
 0x653   : > { %v2020_v2 = vmul.f32 %v1943_v46, %v1924_v7 }
 0x655   : > { %v2181_v60 = vadd.f32 %v2102_v37, %v2020_v2  ;;  %2007 = vperm.xlu0 %4634, %v6285_v26   ;;  %v2488_v26 = vsub.f32 %v6327_v42, %v6333_v59  ;;  %v7116_v37 = vld [vmem:[#allocation36_spill] sm:$0xff] }
 0x656   : > { %v1953_v62 = vpop.permute.xlu1 %1952 }
 0x657   : > { %2197 = vst [vmem:[#allocation5 + $0x80] sm:$0xff] %v2181_v60  ;;  %v2022_v12 = vmul.f32 %v1953_v62, %v1926_v53  ;;  %v6485_v39 = vld [vmem:[#allocation4 + $0x78] sm:$0xff]  ;;  %v2497_v60 = vsub.f32 %v6416_v33, %v6420_v6 }
 0x658   : > { %v6488_v18 = vmax.f32 %v6485_v39, %v2470_v38 }
 0x659   : > { %v2183_v45 = vadd.f32 %v2112_v44, %v2022_v12  ;;  %2017 = vperm.xlu0 %4634, %v6298_v4   ;;  %v2505_v4 = vmul.f32 1.442695, %v2488_v26  ;;  %v2523_v44 = vmul.f32 1.442695, %v2497_v60 }
 0x65a   : > { %2612 = vperm.xlu1 %4633, %v6488_v18  }
 0x65b   : > { %2199 = vst [vmem:[#allocation5 + $0x8] sm:$0xff] %v2183_v45  ;;  %4702 = vpow2.f32 %v2505_v4  ;;  %v7117_v4 = vld [vmem:[#allocation37_spill] sm:$0xff] }
 0x65d   : > { %2681 = vrot.lane.b32.xlu0 %v6327_v42, %s5132_s24 }
 0x65e   : > { %4635 = vset.pattern.permute.xlu1 %v7113_v31  ;;  %4637 = vset.pattern.permute.xlu0 %v7114_v24 }
 0x65f   : > { %1967 = vperm.xlu1 %4635, %v6241_v49   ;;  %v2491_v49 = vsub.f32 %v6367_v56, %v6373_v30 }
 0x661   : > { %2685 = vrot.lane.b32.xlu0 %v6357_v51, %s5132_s24  ;;  %v2511_v42 = vmul.f32 1.442695, %v2491_v49 }
 0x663   : > { %1972 = vperm.xlu1 %4635, %v6246_v54   ;;  %v2493_v54 = vsub.f32 %v6387_v41, %v6393_v1  ;;  %4704 = vpow2.f32 %v2511_v42 }
 0x665   : > { %2689 = vrot.lane.b32.xlu0 %v6377_v34, %s5132_s24  ;;  %v2515_v38 = vmul.f32 1.442695, %v2493_v54 }
 0x667   : > { %1982 = vperm.xlu1 %4635, %v6256_v63   ;;  %v7115_v63 = vld [vmem:[#allocation35_spill] sm:$0xff]  ;;  %4706 = vpow2.f32 %v2515_v38 }
 0x669   : > { %2693 = vrot.lane.b32.xlu0 %v6397_v36, %s5132_s24 }
 0x66b   : > { %1992 = vperm.xlu1 %4635, %v6261_v21   ;;  %v2495_v21 = vsub.f32 %v6407_v5, %v6413_v28 }
 0x66d   : > { %2697 = vrot.lane.b32.xlu0 %v6437_v58, %s5132_s24 }
 0x66e   : > { %v2543_v45 = vpop.permute.xlu0 %2542 }
 0x66f   : > { %2002 = vperm.xlu1 %4635, %v6267_v19   ;;  %v2616_v31 = vsub.f32 %v7115_v63, %v2543_v45  ;;  %v2519_v19 = vmul.f32 1.442695, %v2495_v21  ;;  %v2487_v63 = vsub.f32 %v6337_v29, %v6343_v43 }
 0x671   : > { %2701 = vrot.lane.b32.xlu0 %v6447_v61, %s5132_s24  ;;  %v2633_v2 = vmul.f32 1.442695, %v2616_v31 }
 0x672   : > { %v2538_v7 = vpop.permute.xlu1 %2537 }
 0x673   : > { %v2615_v46 = vsub.f32 %v7116_v37, %v2538_v7  ;;  %2012 = vperm.xlu1 %4635, %v6290_v52   ;;  %v7118_v7 = vld [vmem:[#allocation39_spill] sm:$0xff] }
 0x675   : > { %v2631_v53 = vmul.f32 1.442695, %v2615_v46  ;;  %2705 = vrot.lane.b32.xlu0 %v6456_v23, %s5132_s24  ;;  %v2503_v46 = vmul.f32 1.442695, %v2487_v63 }
 0x676   : > { %v2548_v62 = vpop.permute.xlu1 %2547 }
 0x677   : > { %4708 = vpow2.f32 %v2631_v53  ;;  %v2617_v12 = vsub.f32 %v5954_v55, %v2548_v62  ;;  %2679 = vrot.lane.b32.xlu1 %v6337_v29, %s5132_s24  ;;  %v6535_v55 = vpop.eup %4702  ;;  %v2489_v29 = vsub.f32 %v6347_v20, %v6353_v0 }
 0x678   : > { %4710 = vpow2.f32 %v2633_v2  ;;  %4636 = vset.pattern.permute.xlu1 %v7114_v24  ;;  %v6541_v42 = vpop.eup %4704 }
 0x679   : > { %v2635_v52 = vmul.f32 1.442695, %v2617_v12  ;;  %2709 = vrot.lane.b32.xlu0 %v6485_v39, %s5132_s24  ;;  %4712 = vpow2.f32 %v2519_v19  ;;  %v6546_v21 = vpop.eup %4706  ;;  %v2490_v12 = vsub.f32 %v6357_v51, %v6363_v17  ;;  %v2492_v51 = vsub.f32 %v6377_v34, %v6383_v48 }
 0x67a   : > { %v2553_v26 = vpop.permute.xlu1 %2552 }
 0x67b   : > { %4714 = vpow2.f32 %v2635_v52  ;;  %v2618_v49 = vsub.f32 %v7117_v4, %v2553_v26  ;;  %2683 = vrot.lane.b32.xlu1 %v6347_v20, %s5132_s24  ;;  %v2507_v20 = vmul.f32 1.442695, %v2489_v29  ;;  %v7120_v4 = vld [vmem:[#allocation41_spill] sm:$0xff] }
 0x67c   : > { %4716 = vpow2.f32 %v2523_v44 }
 0x67d   : > { %v2637_v54 = vmul.f32 1.442695, %v2618_v49  ;;  %2895 = vperm.xlu0 %4637, %v6535_v55  }
 0x67e   : > { %v2558_v24 = vpop.permute.xlu0 %2557 }
 0x67f   : > { %4718 = vpow2.f32 %v2637_v54  ;;  %v2619_v45 = vsub.f32 %v5963_v15, %v2558_v24  ;;  %2687 = vrot.lane.b32.xlu1 %v6367_v56, %s5132_s24  ;;  %v2509_v54 = vmul.f32 1.442695, %v2490_v12 }
 0x681   : > { %v2639_v31 = vmul.f32 1.442695, %v2619_v45  ;;  %2910 = vperm.xlu0 %4637, %v6541_v42  }
 0x682   : > { %v2563_v38 = vpop.permute.xlu1 %2562 }
 0x683   : > { %4720 = vpow2.f32 %v2639_v31  ;;  %v2620_v37 = vsub.f32 %v7118_v7, %v2563_v38  ;;  %2691 = vrot.lane.b32.xlu1 %v6387_v41, %s5132_s24  ;;  %v7119_v41 = vld [vmem:[#allocation32_spill] sm:$0xff]  ;;  %v2513_v31 = vmul.f32 1.442695, %v2492_v51  ;;  %v2494_v38 = vsub.f32 %v6397_v36, %v6403_v57 }
 0x684   : > { %v6551_v15 = vpop.eup %4708 }
 0x685   : > { %v6553_v56 = vpop.eup %4710  ;;  %v2641_v2 = vmul.f32 1.442695, %v2620_v37  ;;  %4371 = vmatprep.mubr.f32.mxu1 %v6551_v15  ;;  %2920 = vperm.xlu0 %4637, %v6546_v21   ;;  %v2496_v37 = vsub.f32 %v6437_v58, %v6443_v16 }
 0x686   : > { %4372 = vmatmul.mubr.f32.vlgmr.msra.gmra.mxu1 %v6553_v56  ;;  %v2568_v53 = vpop.permute.xlu0 %2567  ;;  %v6560_v19 = vpop.eup %4712 }
 0x687   : > { %4722 = vpow2.f32 %v2641_v2  ;;  %v2621_v60 = vsub.f32 %v7119_v41, %v2568_v53  ;;  %2695 = vrot.lane.b32.xlu1 %v6407_v5, %s5132_s24  ;;  %v2521_v29 = vmul.f32 1.442695, %v2496_v37  ;;  %v2498_v2 = vsub.f32 %v6447_v61, %v6453_v14  ;;  %v6630_v37 = vpop.f32.mrf.mxu1 }
 0x688   : > { %v6565_v62 = vpop.eup %4714  ;;  %4724 = vpow2.f32 %v2503_v46 }
 0x689   : > { %v2643_v52 = vmul.f32 1.442695, %v2621_v60  ;;  %2930 = vperm.xlu0 %4637, %v6560_v19   ;;  %4374 = vmatprep.mubr.f32.mxu1 %v6565_v62  ;;  %v6571_v26 = vpop.eup %4716  ;;  %v2525_v58 = vmul.f32 1.442695, %v2498_v2  ;;  %v2122_v2 = vpop.f32.mrf.mxu1 }
 0x68a   : > { %v2573_v44 = vpop.permute.xlu1 %2572 }
 0x68b   : > { %4726 = vpow2.f32 %v2643_v52  ;;  %v2622_v49 = vsub.f32 %v7120_v4, %v2573_v44  ;;  %2699 = vrot.lane.b32.xlu1 %v6416_v33, %s5132_s24 }
 0x68c   : > { %v6576_v5 = vpop.eup %4718  ;;  %4728 = vpow2.f32 %v2507_v20 }
 0x68d   : > { %v2645_v24 = vmul.f32 1.442695, %v2622_v49  ;;  %2940 = vperm.xlu0 %4637, %v6571_v26   ;;  %4375 = vmatmul.mubr.f32.gmra.mxu1 %v6576_v5 }
 0x68e   : > { %v2578_v45 = vpop.permute.xlu0 %2577 }
 0x68f   : > { %4730 = vpow2.f32 %v2645_v24  ;;  %v2623_v63 = vsub.f32 %v6155_v50, %v2578_v45  ;;  %2703 = vrot.lane.b32.xlu1 %v6423_v8, %s5132_s24  ;;  %v2517_v50 = vmul.f32 1.442695, %v2494_v38 }
 0x690   : > { %v6585_v33 = vpop.eup %4720  ;;  %4732 = vpow2.f32 %v2509_v54 }
 0x691   : > { %v2647_v34 = vmul.f32 1.442695, %v2623_v63  ;;  %4377 = vmatprep.mubr.f32.mxu1 %v6585_v33 }
 0x692   : > { %v2588_v12 = vpop.permute.xlu0 %2587 }
 0x693   : > { %4734 = vpow2.f32 %v2647_v34  ;;  %2707 = vrot.lane.b32.xlu1 %v6463_v3, %s5132_s24  ;;  %v2625_v52 = vsub.f32 %v6162_v32, %v2588_v12  ;;  %v1925_v12 = vld [vmem:[#allocation5 + $0xe8] sm:$0xff] }
 0x694   : > { %v6592_v7 = vpop.eup %4722  ;;  %4736 = vpow2.f32 %v2513_v31 }
 0x695   : > { %4378 = vmatmul.mubr.f32.gmra.mxu1 %v6592_v7  ;;  %v6597_v46 = vpop.eup %4724  ;;  %4738 = vpow2.f32 %v2517_v50  ;;  %v2651_v51 = vmul.f32 1.442695, %v2625_v52  ;;  %v4270_v52 = vpop.f32.mrf.mxu1 }
 0x696   : > { %4740 = vpow2.f32 %v2521_v29  ;;  %v2598_v4 = vpop.permute.xlu0 %2597 }
 0x697   : > { %2890 = vperm.xlu1 %4636, %v6597_v46   ;;  %4742 = vpow2.f32 %v2525_v58  ;;  %v2627_v24 = vsub.f32 %v6169_v9, %v2598_v4 }
 0x698   : > { %v4727_v36 = vpop.eup %4726 }
 0x699   : > { %4380 = vmatprep.mubr.f32.mxu1 %v4727_v36  ;;  %v6602_v53 = vpop.eup %4728  ;;  %v2655_v38 = vmul.f32 1.442695, %v2627_v24 }
 0x69b   : > { %2900 = vperm.xlu1 %4636, %v6602_v53  }
 0x69c   : > { %v6605_v41 = vpop.eup %4730 }
 0x69d   : > { %4381 = vmatmul.mubr.f32.gmra.mxu1 %v6605_v41  ;;  %v6608_v60 = vpop.eup %4732 }
 0x69f   : > { %2905 = vperm.xlu1 %4636, %v6608_v60  }
 0x6a0   : > { %v4735_v20 = vpop.eup %4734 }
 0x6a1   : > { %4383 = vmatprep.mubr.f32.mxu1 %v4735_v20  ;;  %v6611_v61 = vpop.eup %4736 }
 0x6a2   : > { %v6615_v44 = vpop.eup %4738 }
 0x6a3   : > { %2915 = vperm.xlu1 %4636, %v6611_v61   ;;  %v6620_v45 = vpop.eup %4740 }
 0x6a4   : > { %v6625_v34 = vpop.eup %4742 }
 0x6a7   : > { %v2583_v49 = vpop.permute.xlu1 %2582  ;;  %2925 = vperm.xlu1 %4636, %v6615_v44  }
 0x6a8   : > { %v2624_v54 = vsub.f32 %v6153_v40, %v2583_v49 }
 0x6aa   : > { %v2649_v63 = vmul.f32 1.442695, %v2624_v54  ;;  %v1927_v54 = vld [vmem:[#allocation5 + $0x58] sm:$0xff] }
 0x6ab   : > { %v2593_v31 = vpop.permute.xlu1 %2592  ;;  %2935 = vperm.xlu1 %4636, %v6620_v45  }
 0x6ac   : > { %4744 = vpow2.f32 %v2649_v63  ;;  %v2626_v32 = vsub.f32 %v6159_v35, %v2593_v31  ;;  %2745 = vadd.xlane.f32.xlu0 %v6553_v56 }
 0x6ad   : > { %4746 = vpow2.f32 %v2651_v51 }
 0x6ae   : > { %v2653_v50 = vmul.f32 1.442695, %v2626_v32  ;;  %v1928_v32 = vld [vmem:[#allocation5 + $0xd0] sm:$0xff] }
 0x6af   : > { %v2603_v40 = vpop.permute.xlu1 %2602  ;;  %2945 = vperm.xlu1 %4636, %v6625_v34  }
 0x6b0   : > { %4748 = vpow2.f32 %v2653_v50  ;;  %v2628_v9 = vsub.f32 %v6165_v25, %v2603_v40  ;;  %2747 = vadd.xlane.f32.xlu0 %v6565_v62 }
 0x6b1   : > { %4750 = vpow2.f32 %v2655_v38 }
 0x6b2   : > { %v2657_v29 = vmul.f32 1.442695, %v2628_v9  ;;  %v1931_v9 = vld [vmem:[#allocation5 + $0x18] sm:$0xff] }
 0x6b3   : > { %v2608_v35 = vpop.permute.xlu0 %2607 }
 0x6b4   : > { %4752 = vpow2.f32 %v2657_v29  ;;  %v2629_v56 = vsub.f32 %v6176_v27, %v2608_v35  ;;  %2751 = vadd.xlane.f32.xlu0 %v6585_v33  ;;  %v6638_v27 = vpop.f32.mrf.mxu1 }
 0x6b6   : > { %v2659_v58 = vmul.f32 1.442695, %v2629_v56  ;;  %v4273_v31 = vpop.f32.mrf.mxu1 }
 0x6b8   : > { %4754 = vpow2.f32 %v2659_v58  ;;  %2755 = vadd.xlane.f32.xlu0 %v4727_v36  ;;  %v1948_v4 = vpop.permute.xlu0 %1947 }
 0x6b9   : > { %v6634_v25 = vpop.eup %4744  ;;  %v2021_v62 = vmul.f32 %v1948_v4, %v1925_v12 }
 0x6ba   : > { %v4747_v49 = vpop.eup %4746  ;;  %4384 = vmatmul.mubr.f32.gmra.mxu1 %v6634_v25 }
 0x6bb   : > { %v2182_v51 = vadd.f32 %v6476_v10, %v2021_v62  ;;  %4386 = vmatprep.mubr.f32.mxu1 %v4747_v49  ;;  %v2499_v62 = vsub.f32 %v6423_v8, %v6427_v11 }
 0x6bc   : > { %2759 = vadd.xlane.f32.xlu0 %v4735_v20  ;;  %v1958_v33 = vpop.permute.xlu0 %1957  ;;  %v6646_v20 = vpop.f32.mrf.mxu1 }
 0x6bd   : > { %v6640_v24 = vpop.eup %4748  ;;  %2198 = vst [vmem:[#allocation5 + $0xe8] sm:$0xff] %v2182_v51  ;;  %v2023_v63 = vmul.f32 %v1958_v33, %v1927_v54  ;;  %v1935_v33 = vld [vmem:[#allocation5 + $0x20] sm:$0xff] }
 0x6be   : > { %v4751_v36 = vpop.eup %4750  ;;  %4387 = vmatmul.mubr.f32.gmra.mxu1 %v6640_v24  ;;  %v4276_v12 = vpop.f32.mrf.mxu1 }
 0x6bf   : > { %v2184_v38 = vadd.f32 %v6482_v47, %v2023_v63  ;;  %4389 = vmatprep.mubr.f32.mxu1 %v4751_v36  ;;  %v1933_v47 = vld [vmem:[#allocation5 + $0x50] sm:$0xff]  ;;  %v2527_v63 = vmul.f32 1.442695, %v2499_v62 }
 0x6c0   : > { %2763 = vadd.xlane.f32.xlu0 %v4747_v49  ;;  %v1963_v50 = vpop.permute.xlu0 %1962  ;;  %v6651_v51 = vpop.f32.mrf.mxu1 }
 0x6c1   : > { %v6644_v10 = vpop.eup %4752  ;;  %2200 = vst [vmem:[#allocation5 + $0x58] sm:$0xff] %v2184_v38  ;;  %v2024_v40 = vmul.f32 %v1963_v50, %v1928_v32  ;;  %v1937_v50 = vld [vmem:[#allocation5 + $0xf8] sm:$0xff]  ;;  %4756 = vpow2.f32 %v2527_v63 }
 0x6c2   : > { %4390 = vmatmul.mubr.f32.gmra.mxu1 %v6644_v10  ;;  %v4279_v38 = vpop.f32.mrf.mxu1 }
 0x6c3   : > { %v2185_v29 = vadd.f32 %v2122_v2, %v2024_v40 }
 0x6c4   : > { %2767 = vadd.xlane.f32.xlu0 %v4751_v36  ;;  %v1978_v35 = vpop.permute.xlu0 %1977  ;;  %v2162_v8 = vpop.f32.mrf.mxu1 }
 0x6c5   : > { %v4755_v56 = vpop.eup %4754  ;;  %2201 = vst [vmem:[#allocation5 + $0xd0] sm:$0xff] %v2185_v29  ;;  %v2027_v58 = vmul.f32 %v1978_v35, %v1931_v9  ;;  %v1939_v29 = vld [vmem:[#allocation5 + $0x28] sm:$0xff] }
 0x6c6   : > { %4392 = vmatprep.mubr.f32.mxu1 %v4755_v56 }
 0x6c7   : > { %v2188_v4 = vadd.f32 %v4270_v52, %v2027_v58 }
 0x6c8   : > { %2771 = vadd.xlane.f32.xlu0 %v4755_v56  ;;  %v1988_v49 = vpop.permute.xlu0 %1987 }
 0x6c9   : > { %2204 = vst [vmem:[#allocation5 + $0x18] sm:$0xff] %v2188_v4  ;;  %v2029_v54 = vmul.f32 %v1988_v49, %v1933_v47  ;;  %v4282_v47 = vpop.f32.mrf.mxu1 }
 0x6cb   : > { %v2190_v2 = vadd.f32 %v4273_v31, %v2029_v54  ;;  %v1929_v54 = vld [vmem:[#allocation5 + $0x38] sm:$0xff] }
 0x6cc   : > { %v1998_v36 = vpop.permute.xlu0 %1997 }
 0x6cd   : > { %2206 = vst [vmem:[#allocation5 + $0x50] sm:$0xff] %v2190_v2  ;;  %v2031_v32 = vmul.f32 %v1998_v36, %v1935_v33  ;;  %v1930_v36 = vld [vmem:[#allocation5 + $0xe0] sm:$0xff] }
 0x6cf   : > { %v2192_v40 = vadd.f32 %v4276_v12, %v2031_v32  ;;  %v6661_v32 = vpop.eup %4756 }
 0x6d0   : > { %v2008_v52 = vpop.permute.xlu0 %2007 }
 0x6d1   : > { %2208 = vst [vmem:[#allocation5 + $0x20] sm:$0xff] %v2192_v40  ;;  %v2033_v9 = vmul.f32 %v2008_v52, %v1937_v50  ;;  %v1932_v52 = vld [vmem:[#allocation5 + $0x10] sm:$0xff] }
 0x6d3   : > { %v2194_v35 = vadd.f32 %v4279_v38, %v2033_v9  ;;  %2743 = vadd.xlane.f32.xlu1 %v6551_v15  ;;  %v2500_v15 = vsub.f32 %v6456_v23, %v6460_v22 }
 0x6d4   : > { %v2018_v56 = vpop.permute.xlu0 %2017 }
 0x6d5   : > { %2210 = vst [vmem:[#allocation5 + $0xf8] sm:$0xff] %v2194_v35  ;;  %v2035_v58 = vmul.f32 %v2018_v56, %v1939_v29  ;;  %v2613_v31 = vpop.permute.xlu1 %2612  ;;  %v2529_v50 = vmul.f32 1.442695, %v2500_v15  ;;  %v1934_v35 = vld [vmem:[#allocation5 + $0xd8] sm:$0xff] }
 0x6d6   : > { %v2630_v4 = vsub.f32 %v6173_v13, %v2613_v31 }
 0x6d7   : > { %v2196_v62 = vadd.f32 %v4282_v47, %v2035_v58  ;;  %2749 = vadd.xlane.f32.xlu1 %v6576_v5  ;;  %v1936_v47 = vld [vmem:[#allocation5 + $0x88] sm:$0xff] }
 0x6d8   : > { %v2661_v12 = vmul.f32 1.442695, %v2630_v4  ;;  %v6656_v49 = vpop.permute.xlu0 %2681 }
 0x6d9   : > { %2212 = vst [vmem:[#allocation5 + $0x28] sm:$0xff] %v2196_v62 }
 0x6da   : > { %4758 = vpow2.f32 %v2661_v12  ;;  %v1968_v33 = vpop.permute.xlu1 %1967  ;;  %v1938_v12 = vld [vmem:[#allocation5 + $0xb8] sm:$0xff] }
 0x6db   : > { %v2025_v2 = vmul.f32 %v1968_v33, %v1929_v54  ;;  %2753 = vadd.xlane.f32.xlu1 %v6592_v7  ;;  %4760 = vpow2.f32 %v2529_v50 }
 0x6dc   : > { %v2686_v63 = vpop.permute.xlu0 %2685 }
 0x6dd   : > { %v2186_v13 = vadd.f32 %v6630_v37, %v2025_v2  ;;  %v6665_v5 = vmul.f32 %v6608_v60, %v2686_v63 }
 0x6de   : > { %v1973_v38 = vpop.permute.xlu1 %1972  ;;  %2950 = vperm.xlu0 %4637, %v6661_v32  }
 0x6df   : > { %2202 = vst [vmem:[#allocation5 + $0x38] sm:$0xff] %v2186_v13  ;;  %v2026_v40 = vmul.f32 %v1973_v38, %v1930_v36  ;;  %2757 = vadd.xlane.f32.xlu1 %v6605_v41 }
 0x6e0   : > { %v2690_v23 = vpop.permute.xlu0 %2689 }
 0x6e1   : > { %v2187_v7 = vadd.f32 %v6638_v27, %v2026_v40  ;;  %v6671_v9 = vmul.f32 %v6611_v61, %v2690_v23 }
 0x6e2   : > { %v1983_v29 = vpop.permute.xlu1 %1982 }
 0x6e3   : > { %2203 = vst [vmem:[#allocation5 + $0xe0] sm:$0xff] %v2187_v7  ;;  %v2028_v60 = vmul.f32 %v1983_v29, %v1932_v52  ;;  %2761 = vadd.xlane.f32.xlu1 %v6634_v25 }
 0x6e4   : > { %v2694_v37 = vpop.permute.xlu0 %2693 }
 0x6e5   : > { %v2189_v56 = vadd.f32 %v6646_v20, %v2028_v60  ;;  %v6676_v58 = vmul.f32 %v6615_v44, %v2694_v37 }
 0x6e6   : > { %v1993_v41 = vpop.permute.xlu1 %1992 }
 0x6e7   : > { %v4759_v31 = vpop.eup %4758  ;;  %2205 = vst [vmem:[#allocation5 + $0x10] sm:$0xff] %v2189_v56  ;;  %v2030_v27 = vmul.f32 %v1993_v41, %v1934_v35  ;;  %2765 = vadd.xlane.f32.xlu1 %v6640_v24  ;;  %v2728_v56 = vmul.f32 %v6535_v55, %v6656_v49 }
 0x6e8   : > { %4393 = vmatmul.mubr.f32.gmra.mxu1 %v4759_v31  ;;  %v2698_v61 = vpop.permute.xlu0 %2697  ;;  %v4761_v2 = vpop.eup %4760 }
 0x6e9   : > { %v2191_v4 = vadd.f32 %v6651_v51, %v2030_v27  ;;  %v6681_v25 = vmul.f32 %v6620_v45, %v2698_v61  ;;  %v2172_v51 = vpop.f32.mrf.mxu1 }
 0x6ea   : > { %v2003_v62 = vpop.permute.xlu1 %2002 }
 0x6eb   : > { %2207 = vst [vmem:[#allocation5 + $0xd8] sm:$0xff] %v2191_v4  ;;  %v2032_v20 = vmul.f32 %v2003_v62, %v1936_v47  ;;  %2769 = vadd.xlane.f32.xlu1 %v6644_v10  ;;  %v7121_v4 = vld [vmem:[#allocation33_spill] sm:$0xff] }
 0x6ec   : > { %v2702_v44 = vpop.permute.xlu0 %2701  ;;  %v2501_v62 = vsub.f32 %v6463_v3, %v7121_v4  ;;  %v2873_v3 = vld [vmem:[#allocation5 + $0x78] sm:$0xff] }
 0x6ed   : > { %v2193_v54 = vadd.f32 %v2162_v8, %v2032_v20  ;;  %v6685_v33 = vmul.f32 %v6625_v34, %v2702_v44 }
 0x6ee   : > { %v2013_v24 = vpop.permute.xlu1 %2012 }
 0x6ef   : > { %2209 = vst [vmem:[#allocation5 + $0x88] sm:$0xff] %v2193_v54  ;;  %v2034_v15 = vmul.f32 %v2013_v24, %v1938_v12  ;;  %2773 = vadd.xlane.f32.xlu1 %v4759_v31  ;;  %v2531_v24 = vmul.f32 1.442695, %v2501_v62 }
 0x6f0   : > { %v2706_v63 = vpop.permute.xlu0 %2705 }
 0x6f1   : > { %v2195_v45 = vadd.f32 %v2172_v51, %v2034_v15  ;;  %v6687_v36 = vmul.f32 %v4761_v2, %v2706_v63  ;;  %4762 = vpow2.f32 %v2531_v24 }
 0x6f2   : > { %v6689_v13 = vpop.permute.xlu1 %2679 }
 0x6f3   : > { %2211 = vst [vmem:[#allocation5 + $0xb8] sm:$0xff] %v2195_v45 }
 0x6f4   : > { %v6691_v8 = vpop.permute.xlu0 %2709 }
 0x6f6   : > { %v2684_v10 = vpop.permute.xlu1 %2683 }
 0x6f7   : > { %v2729_v61 = vmul.f32 %v6602_v53, %v2684_v10 }
 0x6f8   : > { %v2896_v50 = vpop.permute.xlu0 %2895 }
 0x6f9   : > { %v2969_v45 = vmul.f32 %v2896_v50, %v2873_v3 }
 0x6fa   : > { %v2688_v38 = vpop.permute.xlu1 %2687 }
 0x6fb   : > { %v2731_v12 = vmul.f32 %v6541_v42, %v2688_v38  ;;  %v2872_v42 = vld [vmem:[#allocation5 + $0xc8] sm:$0xff] }
 0x6fc   : > { %v6693_v23 = vpop.permute.xlu0 %2910 }
 0x6fe   : > { %v2692_v34 = vpop.permute.xlu1 %2691 }
 0x6ff   : > { %v2733_v49 = vmul.f32 %v6546_v21, %v2692_v34 }
 0x700   : > { %2955 = vperm.xlu1 %4636, %v4761_v2   ;;  %v6695_v7 = vpop.permute.xlu0 %2920  ;;  %v2502_v2 = vsub.f32 %v6485_v39, %v6488_v18  ;;  %v2875_v39 = vld [vmem:[#allocation5 + $0xa8] sm:$0xff] }
 0x702   : > { %v2696_v40 = vpop.permute.xlu1 %2695  ;;  %v2533_v38 = vmul.f32 1.442695, %v2502_v2 }
 0x703   : > { %v2735_v63 = vmul.f32 %v6560_v19, %v2696_v40 }
 0x704   : > { %v6697_v60 = vpop.permute.xlu0 %2930  ;;  %4764 = vpow2.f32 %v2533_v38 }
 0x706   : > { %v2700_v52 = vpop.permute.xlu1 %2699 }
 0x708   : > { %v6699_v35 = vpop.permute.xlu0 %2940 }
 0x70a   : > { %v2704_v29 = vpop.permute.xlu1 %2703 }
 0x70b   : > { %v2739_v50 = vmul.f32 %v6661_v32, %v2704_v29 }
 0x70e   : > { %v2708_v37 = vpop.permute.xlu1 %2707 }
 0x712   : > { %v2891_v41 = vpop.permute.xlu1 %2890 }
 0x716   : > { %v2901_v20 = vpop.permute.xlu1 %2900 }
 0x71a   : > { %v2906_v15 = vpop.permute.xlu1 %2905 }
 0x735   : > { %v2746_v31 = vpop.xlane.xlu0 %2745 }
 0x736   : > { %v2776_v27 = vadd.f32 %v2746_v31, %v2728_v56  ;;  %v2916_v56 = vpop.permute.xlu1 %2915  ;;  %v2968_v31 = vmul.f32 %v2891_v41, %v2872_v42 }
 0x738   : > { %2809 = vrot.lane.b32.xlu1 %v2776_v27, %s5135_s2 }
 0x739   : > { %v2748_v47 = vpop.xlane.xlu0 %2747 }
 0x73a   : > { %v2777_v44 = vadd.f32 %v2748_v47, %v2729_v61  ;;  %v2737_v61 = vmul.f32 %v6571_v26, %v2700_v52 }
 0x73c   : > { %2811 = vrot.lane.b32.xlu1 %v2777_v44, %s5135_s2  ;;  %v2874_v44 = vld [vmem:[#allocation5 + $0x90] sm:$0xff] }
 0x73d   : > { %v2752_v54 = vpop.xlane.xlu0 %2751  ;;  %v2970_v26 = vmul.f32 %v2901_v20, %v2874_v44 }
 0x73e   : > { %v2779_v55 = vadd.f32 %v2752_v54, %v2731_v12  ;;  %v2971_v12 = vmul.f32 %v2906_v15, %v2875_v39  ;;  %v2926_v54 = vpop.permute.xlu1 %2925 }
 0x740   : > { %2815 = vrot.lane.b32.xlu1 %v2779_v55, %s5135_s2 }
 0x741   : > { %v2756_v53 = vpop.xlane.xlu0 %2755 }
 0x742   : > { %v2781_v51 = vadd.f32 %v2756_v53, %v2733_v49  ;;  %v6719_v49 = vpop.eup %4762  ;;  %v2936_v29 = vpop.permute.xlu1 %2935 }
 0x743   : > { %v2741_v2 = vmul.f32 %v6719_v49, %v2708_v37  ;;  %v4765_v38 = vpop.eup %4764 }
 0x744   : > { %2819 = vrot.lane.b32.xlu1 %v2781_v51, %s5135_s2  ;;  %v2877_v51 = vld [vmem:[#allocation5 + $0x40] sm:$0xff] }
 0x745   : > { %v2760_v10 = vpop.xlane.xlu0 %2759  ;;  %v2973_v42 = vmul.f32 %v2916_v56, %v2877_v51 }
 0x746   : > { %v2783_v21 = vadd.f32 %v2760_v10, %v2735_v63  ;;  %v4373_v34 = vpop.f32.mrf.mxu1  ;;  %v2876_v63 = vld [vmem:[#allocation5 + $0xb0] sm:$0xff]  ;;  %v2946_v37 = vpop.permute.xlu1 %2945 }
 0x747   : > { %v3130_v27 = vadd.f32 %v4373_v34, %v2969_v45  ;;  %v2972_v45 = vmul.f32 %v6693_v23, %v2876_v63 }
 0x748   : > { %v3050_v47 = vpop.f32.mrf.mxu1  ;;  %2823 = vrot.lane.b32.xlu1 %v2783_v21, %s5135_s2 }
 0x749   : > { %3146 = vst [vmem:[#allocation5 + $0x78] sm:$0xff] %v3130_v27  ;;  %v3129_v62 = vadd.f32 %v3050_v47, %v2968_v31  ;;  %v2764_v19 = vpop.xlane.xlu0 %2763  ;;  %v2879_v31 = vld [vmem:[#allocation5 + $0x68] sm:$0xff]  ;;  %v2727_v27 = vmul.f32 %v6597_v46, %v6689_v13 }
 0x74a   : > { %v2785_v40 = vadd.f32 %v2764_v19, %v2737_v61  ;;  %v2878_v61 = vld [vmem:[#allocation5 + $0x60] sm:$0xff]  ;;  %v2975_v47 = vmul.f32 %v2926_v54, %v2879_v31 }
 0x74b   : > { %3145 = vst [vmem:[#allocation5 + $0xc8] sm:$0xff] %v3129_v62  ;;  %v2974_v19 = vmul.f32 %v6695_v7, %v2878_v61 }
 0x74c   : > { %2827 = vrot.lane.b32.xlu1 %v2785_v40, %s5135_s2 }
 0x74d   : > { %v4376_v41 = vpop.f32.mrf.mxu1  ;;  %v2768_v24 = vpop.xlane.xlu0 %2767 }
 0x74e   : > { %v3132_v52 = vadd.f32 %v4376_v41, %v2971_v12  ;;  %v2787_v55 = vadd.f32 %v2768_v24, %v2739_v50 }
 0x74f   : > { %v3060_v53 = vpop.f32.mrf.mxu1 }
 0x750   : > { %3148 = vst [vmem:[#allocation5 + $0xa8] sm:$0xff] %v3132_v52  ;;  %v3131_v3 = vadd.f32 %v3060_v53, %v2970_v26  ;;  %2831 = vrot.lane.b32.xlu1 %v2787_v55, %s5135_s2  ;;  %v2881_v55 = vld [vmem:[#allocation5 + $0xa0] sm:$0xff]  ;;  %v2742_v53 = vmul.f32 %v4765_v38, %v6691_v8 }
 0x751   : > { %v2772_v32 = vpop.xlane.xlu0 %2771 }
 0x752   : > { %3147 = vst [vmem:[#allocation5 + $0x90] sm:$0xff] %v3131_v3  ;;  %v2789_v15 = vadd.f32 %v2772_v32, %v2741_v2  ;;  %v2977_v3 = vmul.f32 %v2936_v29, %v2881_v55 }
 0x754   : > { %2835 = vrot.lane.b32.xlu1 %v2789_v15, %s5135_s2 }
 0x755   : > { %v4379_v20 = vpop.f32.mrf.mxu1 }
 0x756   : > { %v3134_v10 = vadd.f32 %v4379_v20, %v2973_v42 }
 0x757   : > { %v3070_v21 = vpop.f32.mrf.mxu1 }
 0x758   : > { %3150 = vst [vmem:[#allocation5 + $0x40] sm:$0xff] %v3134_v10  ;;  %v3133_v34 = vadd.f32 %v3070_v21, %v2972_v45  ;;  %2965 = vperm.xlu1 %4636, %v4765_v38   ;;  %v2885_v45 = vld [vmem:[#allocation5 + $0xc0] sm:$0xff]  ;;  %v2884_v21 = vld [vmem:[#allocation5 + $0x48] sm:$0xff] }
 0x75a   : > { %3149 = vst [vmem:[#allocation5 + $0xb0] sm:$0xff] %v3133_v34  ;;  %v2951_v34 = vpop.permute.xlu0 %2950 }
 0x75c   : > { %v2744_v56 = vpop.xlane.xlu1 %2743 }
 0x75d   : > { %v2775_v39 = vadd.f32 %v2744_v56, %v2727_v27  ;;  %v4382_v62 = vpop.f32.mrf.mxu1 }
 0x75e   : > { %v3136_v23 = vadd.f32 %v4382_v62, %v2975_v47  ;;  %v2980_v47 = vmul.f32 %v2951_v34, %v2884_v21 }
 0x75f   : > { %v3080_v40 = vpop.f32.mrf.mxu1  ;;  %2807 = vrot.lane.b32.xlu0 %v2775_v39, %s5135_s2 }
 0x760   : > { %3152 = vst [vmem:[#allocation5 + $0x68] sm:$0xff] %v3136_v23  ;;  %v3135_v44 = vadd.f32 %v3080_v40, %v2974_v19  ;;  %v2750_v50 = vpop.xlane.xlu1 %2749 }
 0x761   : > { %v2778_v12 = vadd.f32 %v2750_v50, %v6665_v5 }
 0x762   : > { %3151 = vst [vmem:[#allocation5 + $0x60] sm:$0xff] %v3135_v44 }
 0x763   : > { %2813 = vrot.lane.b32.xlu0 %v2778_v12, %s5135_s2 }
 0x764   : > { %v2754_v46 = vpop.xlane.xlu1 %2753 }
 0x765   : > { %v2780_v13 = vadd.f32 %v2754_v46, %v6671_v9 }
 0x767   : > { %2817 = vrot.lane.b32.xlu0 %v2780_v13, %s5135_s2 }
 0x768   : > { %v2758_v54 = vpop.xlane.xlu1 %2757 }
 0x769   : > { %v2782_v7 = vadd.f32 %v2758_v54, %v6676_v58  ;;  %v2880_v58 = vld [vmem:[#allocation5 + $0x70] sm:$0xff] }
 0x76a   : > { %v2976_v15 = vmul.f32 %v6697_v60, %v2880_v58 }
 0x76b   : > { %2821 = vrot.lane.b32.xlu0 %v2782_v7, %s5135_s2 }
 0x76c   : > { %v2762_v41 = vpop.xlane.xlu1 %2761 }
 0x76d   : > { %v2784_v24 = vadd.f32 %v2762_v41, %v6681_v25  ;;  %v2883_v25 = vld [vmem:[#allocation5 + $0xf0] sm:$0xff] }
 0x76e   : > { %v2979_v20 = vmul.f32 %v2946_v37, %v2883_v25 }
 0x76f   : > { %2825 = vrot.lane.b32.xlu0 %v2784_v24, %s5135_s2 }
 0x770   : > { %v2766_v26 = vpop.xlane.xlu1 %2765 }
 0x771   : > { %v2786_v5 = vadd.f32 %v2766_v26, %v6685_v33  ;;  %v2882_v33 = vld [vmem:[#allocation5 + $0x30] sm:$0xff] }
 0x772   : > { %v2978_v38 = vmul.f32 %v6699_v35, %v2882_v33 }
 0x773   : > { %2829 = vrot.lane.b32.xlu0 %v2786_v5, %s5135_s2 }
 0x774   : > { %v2770_v52 = vpop.xlane.xlu1 %2769 }
 0x775   : > { %v2788_v9 = vadd.f32 %v2770_v52, %v6687_v36 }
 0x777   : > { %2833 = vrot.lane.b32.xlu0 %v2788_v9, %s5135_s2 }
 0x778   : > { %v2774_v2 = vpop.xlane.xlu1 %2773 }
 0x779   : > { %v2790_v51 = vadd.f32 %v2774_v2, %v2742_v53 }
 0x77a   : > { %v4385_v32 = vpop.f32.mrf.mxu1 }
 0x77b   : > { %v3138_v63 = vadd.f32 %v4385_v32, %v2977_v3  ;;  %2837 = vrot.lane.b32.xlu0 %v2790_v51, %s5135_s2 }
 0x77c   : > { %v3090_v42 = vpop.f32.mrf.mxu1  ;;  %v2956_v8 = vpop.permute.xlu1 %2955 }
 0x77d   : > { %3154 = vst [vmem:[#allocation5 + $0xa0] sm:$0xff] %v3138_v63  ;;  %v3137_v36 = vadd.f32 %v3090_v42, %v2976_v15  ;;  %v2981_v31 = vmul.f32 %v2956_v8, %v2885_v45 }
 0x77e   : > { %v4388_v10 = vpop.f32.mrf.mxu1 }
 0x77f   : > { %3153 = vst [vmem:[#allocation5 + $0x70] sm:$0xff] %v3137_v36  ;;  %v3140_v29 = vadd.f32 %v4388_v10, %v2979_v20  ;;  %2960 = vperm.xlu0 %4637, %v6719_v49  }
 0x780   : > { %v3100_v60 = vpop.f32.mrf.mxu1 }
 0x781   : > { %3156 = vst [vmem:[#allocation5 + $0xf0] sm:$0xff] %v3140_v29  ;;  %v3139_v27 = vadd.f32 %v3100_v60, %v2978_v38 }
 0x782   : > { %v4391_v61 = vpop.f32.mrf.mxu1 }
 0x783   : > { %3155 = vst [vmem:[#allocation5 + $0x30] sm:$0xff] %v3139_v27  ;;  %v3142_v37 = vadd.f32 %v4391_v61, %v2981_v31 }
 0x784   : > { %v3110_v56 = vpop.f32.mrf.mxu1 }
 0x785   : > { %3158 = vst [vmem:[#allocation5 + $0xc0] sm:$0xff] %v3142_v37  ;;  %v3141_v39 = vadd.f32 %v3110_v56, %v2980_v47 }
 0x787   : > { %3157 = vst [vmem:[#allocation5 + $0x48] sm:$0xff] %v3141_v39 }
 0x7a8   : > { %v4394_v44 = vpop.f32.mrf.mxu1 }
 0x7aa   : > { %v2810_v35 = vpop.permute.xlu1 %2809  ;;  %v3120_v54 = vpop.f32.mrf.mxu1 }
 0x7ab   : > { %2857 = vst.msk [vmem:[#allocation4 + $0x8] sm:$0xff] %vm2855_vm4, %v2810_v35 }
 0x7ac   : > { %3163 = vst.msk [vmem:[#allocation4 + $0x8] sm:$0xff] %vm3161_vm5, %v6333_v59 }
 0x7ae   : > { %v2812_v49 = vpop.permute.xlu1 %2811 }
 0x7af   : > { %2858 = vst.msk [vmem:[#allocation4 + $0x10] sm:$0xff] %vm2855_vm4, %v2812_v49 }
 0x7b0   : > { %3164 = vst.msk [vmem:[#allocation4 + $0x10] sm:$0xff] %vm3161_vm5, %v6353_v0 }
 0x7b2   : > { %v2816_v62 = vpop.permute.xlu1 %2815 }
 0x7b3   : > { %2860 = vst.msk [vmem:[#allocation4 + $0x20] sm:$0xff] %vm2855_vm4, %v2816_v62 }
 0x7b4   : > { %3166 = vst.msk [vmem:[#allocation4 + $0x20] sm:$0xff] %vm3161_vm5, %v6373_v30 }
 0x7b6   : > { %v2820_v19 = vpop.permute.xlu1 %2819 }
 0x7b7   : > { %2862 = vst.msk [vmem:[#allocation4 + $0x30] sm:$0xff] %vm2855_vm4, %v2820_v19 }
 0x7b8   : > { %3168 = vst.msk [vmem:[#allocation4 + $0x30] sm:$0xff] %vm3161_vm5, %v6393_v1 }
 0x7ba   : > { %v2824_v23 = vpop.permute.xlu1 %2823 }
 0x7bb   : > { %2864 = vst.msk [vmem:[#allocation4 + $0x40] sm:$0xff] %vm2855_vm4, %v2824_v23 }
 0x7bc   : > { %3170 = vst.msk [vmem:[#allocation4 + $0x40] sm:$0xff] %vm3161_vm5, %v6413_v28  ;;  %v2887_v28 = vld [vmem:[#allocation5 + $0x98] sm:$0xff] }
 0x7be   : > { %v2828_v59 = vpop.permute.xlu1 %2827 }
 0x7bf   : > { %2866 = vst.msk [vmem:[#allocation4 + $0x50] sm:$0xff] %vm2855_vm4, %v2828_v59 }
 0x7c0   : > { %3172 = vst.msk [vmem:[#allocation4 + $0x50] sm:$0xff] %vm3161_vm5, %v6420_v6 }
 0x7c2   : > { %v2832_v0 = vpop.permute.xlu1 %2831 }
 0x7c3   : > { %2868 = vst.msk [vmem:[#allocation4 + $0x60] sm:$0xff] %vm2855_vm4, %v2832_v0 }
 0x7c4   : > { %3174 = vst.msk [vmem:[#allocation4 + $0x60] sm:$0xff] %vm3161_vm5, %v6427_v11 }
 0x7c6   : > { %v2836_v30 = vpop.permute.xlu1 %2835 }
 0x7c7   : > { %2870 = vst.msk [vmem:[#allocation4 + $0x70] sm:$0xff] %vm2855_vm4, %v2836_v30 }
 0x7c8   : > { %3176 = vst.msk [vmem:[#allocation4 + $0x70] sm:$0xff] %vm3161_vm5, %v7121_v4 }
 0x7d1   : > { %v2808_v1 = vpop.permute.xlu0 %2807 }
 0x7d2   : > { %2856 = vst.msk [vmem:[#allocation4] sm:$0xff] %vm2855_vm4, %v2808_v1 }
 0x7d3   : > { %3162 = vst.msk [vmem:[#allocation4] sm:$0xff] %vm3161_vm5, %v6343_v43  ;;  %v2966_v6 = vpop.permute.xlu1 %2965 }
 0x7d4   : > { %v2983_v40 = vmul.f32 %v2966_v6, %v2887_v28 }
 0x7d5   : > { %v2814_v50 = vpop.permute.xlu0 %2813 }
 0x7d6   : > { %v3144_v12 = vadd.f32 %v4394_v44, %v2983_v40  ;;  %2859 = vst.msk [vmem:[#allocation4 + $0x18] sm:$0xff] %vm2855_vm4, %v2814_v50 }
 0x7d7   : > { %3165 = vst.msk [vmem:[#allocation4 + $0x18] sm:$0xff] %vm3161_vm5, %v6363_v17 }
 0x7d8   : > { %3160 = vst [vmem:[#allocation5 + $0x98] sm:$0xff] %v3144_v12 }
 0x7d9   : > { %v2818_v11 = vpop.permute.xlu0 %2817 }
 0x7da   : > { %2861 = vst.msk [vmem:[#allocation4 + $0x28] sm:$0xff] %vm2855_vm4, %v2818_v11 }
 0x7db   : > { %3167 = vst.msk [vmem:[#allocation4 + $0x28] sm:$0xff] %vm3161_vm5, %v6383_v48 }
 0x7dd   : > { %v2822_v4 = vpop.permute.xlu0 %2821 }
 0x7de   : > { %2863 = vst.msk [vmem:[#allocation4 + $0x38] sm:$0xff] %vm2855_vm4, %v2822_v4 }
 0x7df   : > { %3169 = vst.msk [vmem:[#allocation4 + $0x38] sm:$0xff] %vm3161_vm5, %v6403_v57  ;;  %v2886_v57 = vld [vmem:[#allocation5] sm:$0xff] }
 0x7e1   : > { %v2826_v43 = vpop.permute.xlu0 %2825 }
 0x7e2   : > { %2865 = vst.msk [vmem:[#allocation4 + $0x48] sm:$0xff] %vm2855_vm4, %v2826_v43 }
 0x7e3   : > { %3171 = vst.msk [vmem:[#allocation4 + $0x48] sm:$0xff] %vm3161_vm5, %v6443_v16 }
 0x7e5   : > { %v2830_v17 = vpop.permute.xlu0 %2829 }
 0x7e6   : > { %2867 = vst.msk [vmem:[#allocation4 + $0x58] sm:$0xff] %vm2855_vm4, %v2830_v17 }
 0x7e7   : > { %3173 = vst.msk [vmem:[#allocation4 + $0x58] sm:$0xff] %vm3161_vm5, %v6453_v14 }
 0x7e9   : > { %v2834_v46 = vpop.permute.xlu0 %2833 }
 0x7ea   : > { %2869 = vst.msk [vmem:[#allocation4 + $0x68] sm:$0xff] %vm2855_vm4, %v2834_v46 }
 0x7eb   : > { %3175 = vst.msk [vmem:[#allocation4 + $0x68] sm:$0xff] %vm3161_vm5, %v6460_v22 }
 0x7ed   : > { %v2838_v48 = vpop.permute.xlu0 %2837 }
 0x7ee   : > { %2871 = vst.msk [vmem:[#allocation4 + $0x78] sm:$0xff] %vm2855_vm4, %v2838_v48 }
 0x7ef   : > { %3177 = vst.msk [vmem:[#allocation4 + $0x78] sm:$0xff] %vm3161_vm5, %v6488_v18 }
 0x7fa   : > { %v2961_v16 = vpop.permute.xlu0 %2960 }
 0x7fb   : > { %v2982_v13 = vmul.f32 %v2961_v16, %v2886_v57  ;;  %3181 = sbr.rel (%p3955_p0) target bundleno = 2478 (0x9ae), region = 80 }
 0x7fd   : > { %v3143_v7 = vadd.f32 %v3120_v54, %v2982_v13 }
 0x7ff   : > { %3159 = vst [vmem:[#allocation5] sm:$0xff] %v3143_v7 }
 0x800   : > { %v3183_v14 = vld [vmem:[#allocation4 + $0x8] sm:$0xff]  ;;  %v3182_v41 = vld [vmem:[#allocation4] sm:$0xff]  ;;  %v3185_v24 = vld [vmem:[#allocation4 + $0x18] sm:$0xff]  ;;  %v5136_v26 = vmov 2   ;;  %v5137_v47 = vmov 3  }
 0x801   : > { %4785 = vset.pattern.permute.xlu0 %v5136_v26  ;;  %4783 = vset.pattern.permute.xlu1 %v5136_v26  ;;  %4802 = vrcp.f32 %v3183_v14  ;;  %v3190_v22 = vld [vmem:[#allocation4 + $0x40] sm:$0xff]  ;;  %v3187_v18 = vld [vmem:[#allocation4 + $0x28] sm:$0xff]  ;;  %v3565_v5 = vld [vmem:[#allocation14 + $0xf8] sm:$0xff] }
 0x802   : > { %4804 = vrcp.f32 %v3182_v41  ;;  %v3549_v52 = vld [vmem:[#allocation14 + $0x78] sm:$0xff]  ;;  %v3351_v9 = vld [vmem:[#allocation4 + $0x48] sm:$0xff]  ;;  %4091 = vmatprep.subr.mxu0 %v3565_v5  ;;  %v3564_v55 = vld [vmem:[#allocation14 + $0xf0] sm:$0xff]  ;;  %4427 = vmatprep.subr.mxu1 %v3565_v5 }
 0x803   : > { %4806 = vrcp.f32 %v3185_v24  ;;  %v3548_v53 = vld [vmem:[#allocation14 + $0x70] sm:$0xff]  ;;  %4092 = vmatpush3.msra.mxu0 %v3549_v52  ;;  %v3563_v58 = vld [vmem:[#allocation14 + $0xe8] sm:$0xff]  ;;  %4443 = vmatpush3.msra.mxu1 %v3549_v52  ;;  %v3562_v3 = vld [vmem:[#allocation14 + $0xe0] sm:$0xff] }
 0x804   : > { %4808 = vrcp.f32 %v3190_v22  ;;  %4093 = vmatprep.subr.mxu0 %v3564_v55  ;;  %v3547_v2 = vld [vmem:[#allocation14 + $0x68] sm:$0xff]  ;;  %4428 = vmatprep.subr.mxu1 %v3564_v55  ;;  %v3546_v51 = vld [vmem:[#allocation14 + $0x60] sm:$0xff]  ;;  %v3561_v25 = vld [vmem:[#allocation14 + $0xd8] sm:$0xff] }
 0x805   : > { %4810 = vrcp.f32 %v3187_v18  ;;  %4094 = vmatpush3.msra.mxu0 %v3548_v53  ;;  %4444 = vmatpush3.msra.mxu1 %v3548_v53  ;;  %v3545_v32 = vld [vmem:[#allocation14 + $0x58] sm:$0xff]  ;;  %v3560_v15 = vld [vmem:[#allocation14 + $0xd0] sm:$0xff]  ;;  %v3559_v20 = vld [vmem:[#allocation14 + $0xc8] sm:$0xff] }
 0x806   : > { %4812 = vrcp.f32 %v3351_v9  ;;  %4095 = vmatprep.subr.mxu0 %v3563_v58  ;;  %4429 = vmatprep.subr.mxu1 %v3563_v58  ;;  %v3544_v33 = vld [vmem:[#allocation14 + $0x50] sm:$0xff]  ;;  %v3543_v8 = vld [vmem:[#allocation14 + $0x48] sm:$0xff]  ;;  %v3558_v38 = vld [vmem:[#allocation14 + $0xc0] sm:$0xff] }
 0x807   : > { %4096 = vmatpush3.msra.mxu0 %v3547_v2  ;;  %4445 = vmatpush3.msra.mxu1 %v3547_v2  ;;  %v3344_v45 = vld [vmem:[#allocation4 + $0x10] sm:$0xff]  ;;  %v3542_v29 = vld [vmem:[#allocation14 + $0x40] sm:$0xff]  ;;  %v3557_v21 = vld [vmem:[#allocation14 + $0xb8] sm:$0xff] }
 0x808   : > { %4097 = vmatprep.subr.mxu0 %v3562_v3  ;;  %4430 = vmatprep.subr.mxu1 %v3562_v3  ;;  %4814 = vrcp.f32 %v3344_v45  ;;  %v3352_v60 = vld [vmem:[#allocation4 + $0x50] sm:$0xff]  ;;  %v3541_v31 = vld [vmem:[#allocation14 + $0x38] sm:$0xff]  ;;  %v3555_v56 = vld [vmem:[#allocation14 + $0xa8] sm:$0xff] }
 0x809   : > { %4098 = vmatpush3.msra.mxu0 %v3546_v51  ;;  %4446 = vmatpush3.msra.mxu1 %v3546_v51  ;;  %v3556_v61 = vld [vmem:[#allocation14 + $0xb0] sm:$0xff]  ;;  %4816 = vrcp.f32 %v3352_v60  ;;  %v3539_v39 = vld [vmem:[#allocation14 + $0x28] sm:$0xff]  ;;  %v3354_v35 = vld [vmem:[#allocation4 + $0x60] sm:$0xff] }
 0x80a   : > { %4099 = vmatprep.subr.mxu0 %v3561_v25  ;;  %4431 = vmatprep.subr.mxu1 %v3561_v25  ;;  %v3540_v37 = vld [vmem:[#allocation14 + $0x30] sm:$0xff]  ;;  %v3554_v49 = vld [vmem:[#allocation14 + $0xa0] sm:$0xff]  ;;  %v3353_v62 = vld [vmem:[#allocation4 + $0x58] sm:$0xff]  ;;  %4818 = vrcp.f32 %v3354_v35 }
 0x80b   : > { %4100 = vmatpush3.msra.mxu0 %v3545_v32  ;;  %4447 = vmatpush3.msra.mxu1 %v3545_v32  ;;  %v3538_v19 = vld [vmem:[#allocation14 + $0x20] sm:$0xff]  ;;  %v3553_v59 = vld [vmem:[#allocation14 + $0x98] sm:$0xff]  ;;  %4820 = vrcp.f32 %v3353_v62  ;;  %v3552_v30 = vld [vmem:[#allocation14 + $0x90] sm:$0xff] }
 0x80c   : > { %4101 = vmatprep.subr.mxu0 %v3560_v15  ;;  %4432 = vmatprep.subr.mxu1 %v3560_v15  ;;  %v3537_v0 = vld [vmem:[#allocation14 + $0x18] sm:$0xff]  ;;  %v3536_v1 = vld [vmem:[#allocation14 + $0x10] sm:$0xff]  ;;  %v3551_v40 = vld [vmem:[#allocation14 + $0x88] sm:$0xff] }
 0x80d   : > { %4102 = vmatpush3.msra.mxu0 %v3544_v33  ;;  %4448 = vmatpush3.msra.mxu1 %v3544_v33  ;;  %v3356_v6 = vld [vmem:[#allocation4 + $0x70] sm:$0xff]  ;;  %v3535_v44 = vld [vmem:[#allocation14 + $0x8] sm:$0xff]  ;;  %v3346_v50 = vld [vmem:[#allocation4 + $0x20] sm:$0xff] }
 0x80e   : > { %v6797_v63 = vpop.eup %4802  ;;  %4103 = vmatprep.subr.mxu0 %v3559_v20  ;;  %4433 = vmatprep.subr.mxu1 %v3559_v20  ;;  %4822 = vrcp.f32 %v3356_v6  ;;  %v3550_v12 = vld [vmem:[#allocation14 + $0x80] sm:$0xff]  ;;  %v3349_v11 = vld [vmem:[#allocation4 + $0x38] sm:$0xff]  ;;  %v3355_v48 = vld [vmem:[#allocation4 + $0x68] sm:$0xff] }
 0x80f   : > { %v4805_v42 = vpop.eup %4804  ;;  %3237 = vperm.xlu0 %4785, %v6797_v63   ;;  %4104 = vmatpush3.msra.mxu0 %v3543_v8  ;;  %v3534_v4 = vld [vmem:[#allocation14] sm:$0xff]  ;;  %4824 = vrcp.f32 %v3346_v50  ;;  %v3348_v13 = vld [vmem:[#allocation4 + $0x30] sm:$0xff]  ;;  %v3357_v7 = vld [vmem:[#allocation4 + $0x78] sm:$0xff] }
 0x810   : > { %v6800_v36 = vpop.eup %4806  ;;  %3232 = vperm.xlu1 %4783, %v4805_v42   ;;  %4105 = vmatprep.subr.mxu0 %v3558_v38  ;;  %4826 = vrcp.f32 %v3349_v11  ;;  %v3215_v24 = vld [vmem:[#allocation5 + $0xe8] sm:$0xff]  ;;  %v3214_v22 = vld [vmem:[#allocation5 + $0x80] sm:$0xff]  ;;  %v3217_v55 = vld [vmem:[#allocation5 + $0x58] sm:$0xff] }
 0x811   : > { %v4809_v10 = vpop.eup %4808  ;;  %4106 = vmatpush3.msra.mxu0 %v3542_v29  ;;  %4449 = vmatpush3.msra.mxu1 %v3543_v8  ;;  %4828 = vrcp.f32 %v3355_v48  ;;  %v3222_v53 = vld [vmem:[#allocation5 + $0x10] sm:$0xff]  ;;  %v3219_v25 = vld [vmem:[#allocation5 + $0x38] sm:$0xff]  ;;  %v3383_v32 = vld [vmem:[#allocation5 + $0xa0] sm:$0xff] }
 0x812   : > { %v6803_v34 = vpop.eup %4810  ;;  %4107 = vmatprep.subr.mxu0 %v3557_v21  ;;  %4434 = vmatprep.subr.mxu1 %v3558_v38  ;;  %4830 = vrcp.f32 %v3348_v13  ;;  %v3375_v60 = vld [vmem:[#allocation5 + $0x78] sm:$0xff]  ;;  %v3385_v6 = vld [vmem:[#allocation5 + $0xf0] sm:$0xff]  ;;  %v3379_v11 = vld [vmem:[#allocation5 + $0x40] sm:$0xff] }
 0x813   : > { %3247 = vperm.xlu0 %4785, %v6800_v36   ;;  %v4813_v27 = vpop.eup %4812  ;;  %4108 = vmatpush3.msra.mxu0 %v3541_v31  ;;  %4832 = vrcp.f32 %v3357_v7  ;;  %v3388_v48 = vld [vmem:[#allocation5] sm:$0xff]  ;;  %v3378_v13 = vld [vmem:[#allocation5 + $0xb0] sm:$0xff]  ;;  %v3381_v7 = vld [vmem:[#allocation5 + $0x68] sm:$0xff] }
 0x814   : > { %3272 = vperm.xlu1 %4783, %v4809_v10   ;;  %4109 = vmatprep.subr.mxu0 %v3556_v61 }
 0x815   : > { %4450 = vmatpush3.msra.mxu1 %v3542_v29  ;;  %4110 = vmatpush3.msra.mxu0 %v3540_v37  ;;  %v4815_v23 = vpop.eup %4814 }
 0x816   : > { %4435 = vmatprep.subr.mxu1 %v3557_v21  ;;  %4111 = vmatprep.subr.mxu0 %v3555_v56  ;;  %v4817_v28 = vpop.eup %4816 }
 0x817   : > { %3257 = vperm.xlu0 %4785, %v6803_v34   ;;  %4451 = vmatpush3.msra.mxu1 %v3541_v31  ;;  %v4819_v43 = vpop.eup %4818 }
 0x818   : > { %4784 = vset.pattern.permute.xlu1 %v5137_v47  ;;  %4112 = vmatpush3.msra.mxu0 %v3539_v39  ;;  %v4821_v17 = vpop.eup %4820 }
 0x819   : > { %3437 = vperm.xlu1 %4784, %v4813_v27   ;;  %4436 = vmatprep.subr.mxu1 %v3556_v61 }
 0x81a   : > { %4113 = vmatprep.subr.mxu0 %v3554_v49  ;;  %4452 = vmatpush3.msra.mxu1 %v3540_v37  ;;  %v3216_v37 = vld [vmem:[#allocation5 + $0x8] sm:$0xff] }
 0x81b   : > { %4794 = vset.pattern.permute.xlu0 %v5137_v47  ;;  %4114 = vmatpush3.msra.mxu0 %v3538_v19  ;;  %v4823_v46 = vpop.eup %4822 }
 0x81c   : > { %3392 = vperm.xlu0 %4794, %v4805_v42   ;;  %4437 = vmatprep.subr.mxu1 %v3555_v56  ;;  %v4825_v57 = vpop.eup %4824  ;;  %v3374_v42 = vld [vmem:[#allocation5 + $0xc8] sm:$0xff]  ;;  %v3384_v56 = vld [vmem:[#allocation5 + $0x30] sm:$0xff] }
 0x81d   : > { %4786 = vset.pattern.permute.xlu1 %v5136_v26  ;;  %4115 = vmatprep.subr.mxu0 %v3553_v59  ;;  %v4827_v16 = vpop.eup %4826 }
 0x81e   : > { %3277 = vperm.xlu1 %4786, %v4813_v27   ;;  %4453 = vmatpush3.msra.mxu1 %v3539_v39  ;;  %v4829_v54 = vpop.eup %4828 }
 0x81f   : > { %4116 = vmatpush3.msra.mxu0 %v3537_v0  ;;  %4438 = vmatprep.subr.mxu1 %v3554_v49  ;;  %v4831_v14 = vpop.eup %4830 }
 0x820   : > { %3432 = vperm.xlu0 %4794, %v4809_v10   ;;  %4117 = vmatprep.subr.mxu0 %v3552_v30  ;;  %v4833_v41 = vpop.eup %4832  ;;  %v3382_v10 = vld [vmem:[#allocation5 + $0x70] sm:$0xff] }
 0x821   : > { %4454 = vmatpush3.msra.mxu1 %v3538_v19  ;;  %4118 = vmatpush3.msra.mxu0 %v3536_v1  ;;  %v3224_v19 = vld [vmem:[#allocation5 + $0xd8] sm:$0xff] }
 0x822   : > { %4787 = vset.pattern.permute.xlu1 %v5137_v47  ;;  %4439 = vmatprep.subr.mxu1 %v3553_v59 }
 0x823   : > { %3402 = vperm.xlu1 %4787, %v4815_v23   ;;  %4119 = vmatprep.subr.mxu0 %v3551_v40 }
 0x824   : > { %3397 = vperm.xlu0 %4794, %v6797_v63   ;;  %4455 = vmatpush3.msra.mxu1 %v3537_v0 }
 0x825   : > { %4120 = vmatpush3.msra.mxu0 %v3535_v44  ;;  %4440 = vmatprep.subr.mxu1 %v3552_v30 }
 0x826   : > { %4121 = vmatprep.subr.mxu0 %v3550_v12  ;;  %4456 = vmatpush3.msra.mxu1 %v3536_v1 }
 0x827   : > { %4788 = vset.pattern.permute.xlu1 %v5136_v26  ;;  %4122 = vmatpush3.msra.mxu0 %v3534_v4 }
 0x828   : > { %3242 = vperm.xlu1 %4788, %v4815_v23   ;;  %3442 = vperm.xlu0 %4794, %v4817_v28   ;;  %v3377_v23 = vld [vmem:[#allocation5 + $0xa8] sm:$0xff] }
 0x829   : > { %4441 = vmatprep.subr.mxu1 %v3551_v40 }
 0x82a   : > { %4457 = vmatpush3.msra.mxu1 %v3535_v44 }
 0x82b   : > { %4442 = vmatprep.subr.mxu1 %v3550_v12 }
 0x82c   : > { %3282 = vperm.xlu1 %4788, %v4817_v28   ;;  %3407 = vperm.xlu0 %4794, %v6800_v36   ;;  %v3223_v36 = vld [vmem:[#allocation5 + $0x50] sm:$0xff]  ;;  %v3386_v28 = vld [vmem:[#allocation5 + $0x48] sm:$0xff] }
 0x82d   : > { %4458 = vmatpush3.msra.mxu1 %v3534_v4  ;;  %v3225_v4 = vld [vmem:[#allocation5 + $0x20] sm:$0xff] }
 0x830   : > { %4789 = vset.pattern.permute.xlu1 %v5137_v47  ;;  %3452 = vperm.xlu0 %4794, %v4819_v43  }
 0x831   : > { %3447 = vperm.xlu1 %4789, %v4821_v17  }
 0x834   : > { %3417 = vperm.xlu0 %4794, %v6803_v34   ;;  %v3376_v34 = vld [vmem:[#allocation5 + $0x90] sm:$0xff] }
 0x835   : > { %4790 = vset.pattern.permute.xlu1 %v5136_v26 }
 0x836   : > { %3287 = vperm.xlu1 %4790, %v4821_v17  }
 0x838   : > { %3462 = vperm.xlu0 %4794, %v4823_v46  }
 0x83a   : > { %4791 = vset.pattern.permute.xlu1 %v5137_v47 }
 0x83b   : > { %3412 = vperm.xlu1 %4791, %v4825_v57  }
 0x83c   : > { %3427 = vperm.xlu0 %4794, %v4827_v16  }
 0x83f   : > { %4792 = vset.pattern.permute.xlu1 %v5136_v26 }
 0x840   : > { %3252 = vperm.xlu1 %4792, %v4825_v57   ;;  %4799 = vset.pattern.permute.xlu0 %v5136_v26 }
 0x841   : > { %3267 = vperm.xlu0 %4799, %v4827_v16  }
 0x844   : > { %3292 = vperm.xlu1 %4792, %v4819_v43  }
 0x845   : > { %4801 = vset.pattern.permute.xlu0 %v5137_v47 }
 0x848   : > { %4793 = vset.pattern.permute.xlu1 %v5137_v47 }
 0x849   : > { %3457 = vperm.xlu1 %4793, %v4829_v54  }
 0x84d   : > { %4795 = vset.pattern.permute.xlu1 %v5136_v26 }
 0x84e   : > { %3297 = vperm.xlu1 %4795, %v4829_v54  }
 0x852   : > { %4796 = vset.pattern.permute.xlu1 %v5137_v47 }
 0x853   : > { %3422 = vperm.xlu1 %4796, %v4831_v14  }
 0x857   : > { %4797 = vset.pattern.permute.xlu1 %v5136_v26 }
 0x858   : > { %3262 = vperm.xlu1 %4797, %v4831_v14  }
 0x85c   : > { %3302 = vperm.xlu1 %4797, %v4823_v46  }
 0x860   : > { %4798 = vset.pattern.permute.xlu1 %v5137_v47 }
 0x861   : > { %3467 = vperm.xlu1 %4798, %v4833_v41  }
 0x865   : > { %4800 = vset.pattern.permute.xlu1 %v5136_v26 }
 0x866   : > { %3307 = vperm.xlu1 %4800, %v4833_v41  }
 0x88a   : > { %v3238_v18 = vpop.permute.xlu0 %3237 }
 0x88b   : > { %v3233_v5 = vpop.permute.xlu1 %3232  ;;  %v3311_v52 = vmul.f32 %v3238_v18, %v3215_v24  ;;  %v3218_v18 = vld [vmem:[#allocation5 + $0xd0] sm:$0xff] }
 0x88c   : > { %v3310_v9 = vmul.f32 %v3233_v5, %v3214_v22  ;;  %v3221_v5 = vld [vmem:[#allocation5 + $0x18] sm:$0xff] }
 0x88d   : > { %3327 = vst [vmem:[#allocation5 + $0xe8] sm:$0xff] %v3311_v52 }
 0x88e   : > { %3326 = vst [vmem:[#allocation5 + $0x80] sm:$0xff] %v3310_v9  ;;  %v3248_v58 = vpop.permute.xlu0 %3247 }
 0x88f   : > { %v3273_v2 = vpop.permute.xlu1 %3272  ;;  %v6826_v3 = vmul.f32 %v3248_v58, %v3217_v55 }
 0x890   : > { %v3318_v51 = vmul.f32 %v3273_v2, %v3222_v53  ;;  %v3226_v53 = vld [vmem:[#allocation5 + $0x88] sm:$0xff] }
 0x891   : > { %3329 = vst [vmem:[#allocation5 + $0x58] sm:$0xff] %v6826_v3 }
 0x892   : > { %3334 = vst [vmem:[#allocation5 + $0x10] sm:$0xff] %v3318_v51  ;;  %v3258_v26 = vpop.permute.xlu0 %3257 }
 0x893   : > { %v6829_v15 = vmul.f32 %v3258_v26, %v3219_v25 }
 0x894   : > { %v3438_v63 = vpop.permute.xlu1 %3437 }
 0x895   : > { %3331 = vst [vmem:[#allocation5 + $0x38] sm:$0xff] %v6829_v15  ;;  %v3479_v33 = vmul.f32 %v3438_v63, %v3383_v32  ;;  %v3227_v32 = vld [vmem:[#allocation5 + $0xf8] sm:$0xff] }
 0x897   : > { %3495 = vst [vmem:[#allocation5 + $0xa0] sm:$0xff] %v3479_v33  ;;  %v3393_v20 = vpop.permute.xlu0 %3392 }
 0x898   : > { %v3470_v45 = vmul.f32 %v3393_v20, %v3374_v42  ;;  %v3380_v42 = vld [vmem:[#allocation5 + $0x60] sm:$0xff] }
 0x899   : > { %v3278_v8 = vpop.permute.xlu1 %3277 }
 0x89a   : > { %3486 = vst [vmem:[#allocation5 + $0xc8] sm:$0xff] %v3470_v45  ;;  %v3319_v38 = vmul.f32 %v3278_v8, %v3223_v36  ;;  %3637 = vmatprep.mubr.f32.mxu0 %v3470_v45  ;;  %v3220_v45 = vld [vmem:[#allocation5 + $0xe0] sm:$0xff] }
 0x89b   : > { %v3433_v29 = vpop.permute.xlu0 %3432  ;;  %3638 = vmatmul.mubr.f32.vlgmr.msra.gmra.mxu0 %v3310_v9 }
 0x89c   : > { %3335 = vst [vmem:[#allocation5 + $0x50] sm:$0xff] %v3319_v38  ;;  %v3478_v21 = vmul.f32 %v3433_v29, %v3382_v10 }
 0x89e   : > { %3494 = vst [vmem:[#allocation5 + $0x70] sm:$0xff] %v3478_v21  ;;  %v3403_v31 = vpop.permute.xlu1 %3402  ;;  %3677 = vmatprep.mubr.f32.mxu1 %v3478_v21  ;;  %v3389_v21 = vld [vmem:[#allocation5 + $0x98] sm:$0xff] }
 0x89f   : > { %v3472_v27 = vmul.f32 %v3403_v31, %v3376_v34  ;;  %v3398_v61 = vpop.permute.xlu0 %3397  ;;  %3678 = vmatmul.mubr.f32.vlgmr.msra.gmra.mxu1 %v3318_v51  ;;  %v3387_v51 = vld [vmem:[#allocation5 + $0xc0] sm:$0xff]  ;;  %v3229_v31 = vld [vmem:[#allocation5 + $0x28] sm:$0xff] }
 0x8a0   : > { %v3471_v47 = vmul.f32 %v3398_v61, %v3375_v60  ;;  %3682 = vmatprep.mubr.f32.mxu1 %v3479_v33 }
 0x8a1   : > { %3488 = vst [vmem:[#allocation5 + $0x90] sm:$0xff] %v3472_v27 }
 0x8a2   : > { %3487 = vst [vmem:[#allocation5 + $0x78] sm:$0xff] %v3471_v47  ;;  %3642 = vmatprep.mubr.f32.mxu0 %v3471_v47 }
 0x8a3   : > { %v3243_v39 = vpop.permute.xlu1 %3242  ;;  %v3443_v35 = vpop.permute.xlu0 %3442  ;;  %3643 = vmatmul.mubr.f32.gmra.mxu0 %v3311_v52  ;;  %3683 = vmatmul.mubr.f32.gmra.mxu1 %v3319_v38 }
 0x8a4   : > { %v3312_v49 = vmul.f32 %v3243_v39, %v3216_v37  ;;  %v3480_v62 = vmul.f32 %v3443_v35, %v3384_v56  ;;  %3647 = vmatprep.mubr.f32.mxu0 %v3472_v27  ;;  %v6837_v37 = vld [vmem:[%s7123_s6] ss:$0 sm:$0xff] }
 0x8a5   : > { %v3718_v35 = vld [vmem:[%s5414_s19] sm:$0xff] }
 0x8a6   : > { %3328 = vst [vmem:[#allocation5 + $0x8] sm:$0xff] %v3312_v49  ;;  %3496 = vst [vmem:[#allocation5 + $0x30] sm:$0xff] %v3480_v62  ;;  %3687 = vmatprep.mubr.f32.mxu1 %v3480_v62 }
 0x8a7   : > { %v3283_v59 = vpop.permute.xlu1 %3282  ;;  %v3408_v0 = vpop.permute.xlu0 %3407  ;;  %3648 = vmatmul.mubr.f32.gmra.mxu0 %v3312_v49 }
 0x8a8   : > { %v3320_v30 = vmul.f32 %v3283_v59, %v3224_v19  ;;  %v3473_v1 = vmul.f32 %v3408_v0, %v3377_v23  ;;  %v3726_v0 = vld [vmem:[%s5414_s19 + $0x40] sm:$0xff] }
 0x8aa   : > { %3336 = vst [vmem:[#allocation5 + $0xd8] sm:$0xff] %v3320_v30  ;;  %3489 = vst [vmem:[#allocation5 + $0xa8] sm:$0xff] %v3473_v1  ;;  %3688 = vmatmul.mubr.f32.gmra.mxu1 %v3320_v30  ;;  %3652 = vmatprep.mubr.f32.mxu0 %v3473_v1 }
 0x8ab   : > { %v3453_v40 = vpop.permute.xlu0 %3452  ;;  %3653 = vmatmul.mubr.f32.gmra.mxu0 %v6826_v3 }
 0x8ac   : > { %v3448_v44 = vpop.permute.xlu1 %3447  ;;  %v3482_v50 = vmul.f32 %v3453_v40, %v3386_v28 }
 0x8ad   : > { %v3481_v12 = vmul.f32 %v3448_v44, %v3385_v6 }
 0x8ae   : > { %3498 = vst [vmem:[#allocation5 + $0x48] sm:$0xff] %v3482_v50 }
 0x8af   : > { %3497 = vst [vmem:[#allocation5 + $0xf0] sm:$0xff] %v3481_v12  ;;  %v3418_v43 = vpop.permute.xlu0 %3417  ;;  %3692 = vmatprep.mubr.f32.mxu1 %v3481_v12 }
 0x8b0   : > { %v3475_v17 = vmul.f32 %v3418_v43, %v3379_v11  ;;  %v3719_v11 = vld [vmem:[%s5414_s19 + $0x8] sm:$0xff] }
 0x8b1   : > { %v3288_v46 = vpop.permute.xlu1 %3287 }
 0x8b2   : > { %v3321_v57 = vmul.f32 %v3288_v46, %v3225_v4  ;;  %3491 = vst [vmem:[#allocation5 + $0x40] sm:$0xff] %v3475_v17  ;;  %v3727_v4 = vld [vmem:[%s5414_s19 + $0x48] sm:$0xff] }
 0x8b3   : > { %v3463_v16 = vpop.permute.xlu0 %3462 }
 0x8b4   : > { %3337 = vst [vmem:[#allocation5 + $0x20] sm:$0xff] %v3321_v57  ;;  %v3484_v54 = vmul.f32 %v3463_v16, %v3388_v48  ;;  %3693 = vmatmul.mubr.f32.gmra.mxu1 %v3321_v57 }
 0x8b5   : > { %3697 = vmatprep.mubr.f32.mxu1 %v3482_v50 }
 0x8b6   : > { %v3413_v14 = vpop.permute.xlu1 %3412  ;;  %3500 = vst [vmem:[#allocation5] sm:$0xff] %v3484_v54 }
 0x8b7   : > { %v3474_v41 = vmul.f32 %v3413_v14, %v3378_v13  ;;  %v3428_v24 = vpop.permute.xlu0 %3427 }
 0x8b8   : > { %v3477_v22 = vmul.f32 %v3428_v24, %v3381_v7  ;;  %v3720_v7 = vld [vmem:[%s5414_s19 + $0x10] sm:$0xff] }
 0x8b9   : > { %3490 = vst [vmem:[#allocation5 + $0xb0] sm:$0xff] %v3474_v41  ;;  %3657 = vmatprep.mubr.f32.mxu0 %v3474_v41 }
 0x8ba   : > { %3493 = vst [vmem:[#allocation5 + $0x68] sm:$0xff] %v3477_v22 }
 0x8bb   : > { %v3253_v52 = vpop.permute.xlu1 %3252 }
 0x8bc   : > { %v3314_v9 = vmul.f32 %v3253_v52, %v3218_v18  ;;  %v3268_v55 = vpop.permute.xlu0 %3267  ;;  %v3728_v52 = vld [vmem:[%s5414_s19 + $0x50] sm:$0xff] }
 0x8bd   : > { %v3317_v58 = vmul.f32 %v3268_v55, %v3221_v5 }
 0x8be   : > { %3330 = vst [vmem:[#allocation5 + $0xd0] sm:$0xff] %v3314_v9  ;;  %3658 = vmatmul.mubr.f32.gmra.mxu0 %v3314_v9 }
 0x8bf   : > { %v3293_v2 = vpop.permute.xlu1 %3292  ;;  %3662 = vmatprep.mubr.f32.mxu0 %v3475_v17  ;;  %3333 = vst [vmem:[#allocation5 + $0x18] sm:$0xff] %v3317_v58 }
 0x8c0   : > { %v3322_v3 = vmul.f32 %v3293_v2, %v3226_v53  ;;  %v3721_v53 = vld [vmem:[%s5414_s19 + $0x18] sm:$0xff] }
 0x8c2   : > { %3338 = vst [vmem:[#allocation5 + $0x88] sm:$0xff] %v3322_v3  ;;  %3663 = vmatmul.mubr.f32.gmra.mxu0 %v6829_v15  ;;  %3698 = vmatmul.mubr.f32.gmra.mxu1 %v3322_v3  ;;  %v3228_v15 = vld [vmem:[#allocation5 + $0xb8] sm:$0xff] }
 0x8c4   : > { %v3458_v25 = vpop.permute.xlu1 %3457 }
 0x8c5   : > { %v3483_v26 = vmul.f32 %v3458_v25, %v3387_v51 }
 0x8c7   : > { %3499 = vst [vmem:[#allocation5 + $0xc0] sm:$0xff] %v3483_v26  ;;  %3702 = vmatprep.mubr.f32.mxu1 %v3483_v26 }
 0x8c9   : > { %v3298_v63 = vpop.permute.xlu1 %3297 }
 0x8ca   : > { %v3323_v33 = vmul.f32 %v3298_v63, %v3227_v32  ;;  %v3729_v32 = vld [vmem:[%s5414_s19 + $0x58] sm:$0xff] }
 0x8cc   : > { %3339 = vst [vmem:[#allocation5 + $0xf8] sm:$0xff] %v3323_v33  ;;  %3703 = vmatmul.mubr.f32.gmra.mxu1 %v3323_v33 }
 0x8cd   : > { %3707 = vmatprep.mubr.f32.mxu1 %v3484_v54 }
 0x8ce   : > { %v3423_v20 = vpop.permute.xlu1 %3422 }
 0x8cf   : > { %v3476_v36 = vmul.f32 %v3423_v20, %v3380_v42 }
 0x8d1   : > { %3492 = vst [vmem:[#allocation5 + $0x60] sm:$0xff] %v3476_v36  ;;  %3667 = vmatprep.mubr.f32.mxu0 %v3476_v36 }
 0x8d3   : > { %v3263_v8 = vpop.permute.xlu1 %3262 }
 0x8d4   : > { %v3316_v10 = vmul.f32 %v3263_v8, %v3220_v45  ;;  %v3722_v45 = vld [vmem:[%s5414_s19 + $0x20] sm:$0xff] }
 0x8d6   : > { %3332 = vst [vmem:[#allocation5 + $0xe0] sm:$0xff] %v3316_v10  ;;  %3668 = vmatmul.mubr.f32.gmra.mxu0 %v3316_v10 }
 0x8d7   : > { %v3303_v38 = vpop.permute.xlu1 %3302  ;;  %3672 = vmatprep.mubr.f32.mxu0 %v3477_v22 }
 0x8d8   : > { %v3324_v29 = vmul.f32 %v3303_v38, %v3228_v15 }
 0x8da   : > { %3340 = vst [vmem:[#allocation5 + $0xb8] sm:$0xff] %v3324_v29  ;;  %3708 = vmatmul.mubr.f32.gmra.mxu1 %v3324_v29  ;;  %3673 = vmatmul.mubr.f32.gmra.mxu0 %v3317_v58 }
 0x8dc   : > { %v3468_v34 = vpop.permute.xlu1 %3467 }
 0x8dd   : > { %v3485_v60 = vmul.f32 %v3468_v34, %v3389_v21 }
 0x8df   : > { %3501 = vst [vmem:[#allocation5 + $0x98] sm:$0xff] %v3485_v60  ;;  %3712 = vmatprep.mubr.f32.mxu1 %v3485_v60 }
 0x8e1   : > { %v3308_v27 = vpop.permute.xlu1 %3307 }
 0x8e2   : > { %v3325_v61 = vmul.f32 %v3308_v27, %v3229_v31  ;;  %v3723_v31 = vld [vmem:[%s5414_s19 + $0x28] sm:$0xff]  ;;  %v3730_v27 = vld [vmem:[%s5414_s19 + $0x60] sm:$0xff] }
 0x8e4   : > { %3341 = vst [vmem:[#allocation5 + $0x28] sm:$0xff] %v3325_v61  ;;  %3713 = vmatmul.mubr.f32.gmra.mxu1 %v3325_v61 }
 0x95b   : > { %v4123_v47 = vpop.f32.mrf.mxu0 }
 0x95d   : > { %v4124_v56 = vpop.f32.mrf.mxu0 }
 0x95e   : > { %v4125_v39 = vadd.f32 %v4124_v56, %v4123_v47 }
 0x95f   : > { %v4147_v49 = vpop.f32.mrf.mxu1 }
 0x960   : > { %v3640_v62 = vadd.f32 %v4125_v39, %v6837_v37 }
 0x961   : > { %v4148_v19 = vpop.f32.mrf.mxu1 }
 0x962   : > { %v3734_v23 = vadd.f32 %v3718_v35, %v3640_v62  ;;  %v4149_v59 = vadd.f32 %v4148_v19, %v4147_v49  ;;  %v3731_v19 = vld [vmem:[%s5414_s19 + $0x68] sm:$0xff] }
 0x963   : > { %v4126_v30 = vpop.f32.mrf.mxu0  ;;  %v4150_v1 = vpop.f32.mrf.mxu1 }
 0x964   : > { %3750 = vst [vmem:[%s5436_s20] sm:$0xff] %v3734_v23  ;;  %v3680_v28 = vadd.f32 %v4149_v59, %v6837_v37 }
 0x965   : > { %v4127_v6 = vpop.f32.mrf.mxu0  ;;  %v4151_v40 = vpop.f32.mrf.mxu1 }
 0x966   : > { %v3742_v44 = vadd.f32 %v3726_v0, %v3680_v28  ;;  %v4128_v50 = vadd.f32 %v4127_v6, %v4126_v30  ;;  %v4152_v12 = vadd.f32 %v4151_v40, %v4150_v1  ;;  %v3724_v28 = vld [vmem:[%s5414_s19 + $0x30] sm:$0xff] }
 0x967   : > { %v4129_v43 = vpop.f32.mrf.mxu0 }
 0x968   : > { %3758 = vst [vmem:[%s5436_s20 + $0x40] sm:$0xff] %v3742_v44  ;;  %v3645_v17 = vadd.f32 %v4128_v50, %v6837_v37  ;;  %v3685_v46 = vadd.f32 %v4152_v12, %v6837_v37 }
 0x969   : > { %v4130_v48 = vpop.f32.mrf.mxu0 }
 0x96a   : > { %v3735_v57 = vadd.f32 %v3719_v11, %v3645_v17  ;;  %v3743_v16 = vadd.f32 %v3727_v4, %v3685_v46  ;;  %v4131_v13 = vadd.f32 %v4130_v48, %v4129_v43  ;;  %v4153_v54 = vpop.f32.mrf.mxu1  ;;  %v3732_v17 = vld [vmem:[%s5414_s19 + $0x70] sm:$0xff]  ;;  %v3725_v46 = vld [vmem:[%s5414_s19 + $0x38] sm:$0xff] }
 0x96b   : > { %v4132_v14 = vpop.f32.mrf.mxu0 }
 0x96c   : > { %3751 = vst [vmem:[%s5436_s20 + $0x8] sm:$0xff] %v3735_v57  ;;  %3759 = vst [vmem:[%s5436_s20 + $0x48] sm:$0xff] %v3743_v16  ;;  %v3650_v41 = vadd.f32 %v4131_v13, %v6837_v37  ;;  %v4154_v24 = vpop.f32.mrf.mxu1 }
 0x96d   : > { %v4155_v22 = vadd.f32 %v4154_v24, %v4153_v54  ;;  %v4133_v18 = vpop.f32.mrf.mxu0 }
 0x96e   : > { %v3736_v5 = vadd.f32 %v3720_v7, %v3650_v41  ;;  %v4134_v9 = vadd.f32 %v4133_v18, %v4132_v14  ;;  %v3733_v41 = vld [vmem:[%s5414_s19 + $0x78] sm:$0xff] }
 0x96f   : > { %v3690_v55 = vadd.f32 %v4155_v22, %v6837_v37 }
 0x970   : > { %3752 = vst [vmem:[%s5436_s20 + $0x10] sm:$0xff] %v3736_v5  ;;  %v3655_v58 = vadd.f32 %v4134_v9, %v6837_v37 }
 0x971   : > { %v3744_v2 = vadd.f32 %v3728_v52, %v3690_v55 }
 0x972   : > { %v3737_v3 = vadd.f32 %v3721_v53, %v3655_v58 }
 0x973   : > { %3760 = vst [vmem:[%s5436_s20 + $0x50] sm:$0xff] %v3744_v2 }
 0x974   : > { %3753 = vst [vmem:[%s5436_s20 + $0x18] sm:$0xff] %v3737_v3  ;;  %v4156_v51 = vpop.f32.mrf.mxu1 }
 0x976   : > { %v4157_v25 = vpop.f32.mrf.mxu1 }
 0x977   : > { %v4158_v26 = vadd.f32 %v4157_v25, %v4156_v51 }
 0x979   : > { %v3695_v63 = vadd.f32 %v4158_v26, %v6837_v37 }
 0x97b   : > { %v3745_v33 = vadd.f32 %v3729_v32, %v3695_v63 }
 0x97d   : > { %3761 = vst [vmem:[%s5436_s20 + $0x58] sm:$0xff] %v3745_v33 }
 0x97e   : > { %v4135_v42 = vpop.f32.mrf.mxu0 }
 0x980   : > { %v4136_v20 = vpop.f32.mrf.mxu0 }
 0x981   : > { %v4137_v36 = vadd.f32 %v4136_v20, %v4135_v42 }
 0x982   : > { %v4138_v8 = vpop.f32.mrf.mxu0  ;;  %v4159_v10 = vpop.f32.mrf.mxu1 }
 0x983   : > { %v3660_v15 = vadd.f32 %v4137_v36, %v6837_v37 }
 0x984   : > { %v4139_v38 = vpop.f32.mrf.mxu0  ;;  %v4160_v29 = vpop.f32.mrf.mxu1 }
 0x985   : > { %v3738_v21 = vadd.f32 %v3722_v45, %v3660_v15  ;;  %v4140_v34 = vadd.f32 %v4139_v38, %v4138_v8  ;;  %v4161_v60 = vadd.f32 %v4160_v29, %v4159_v10 }
 0x987   : > { %3754 = vst [vmem:[%s5436_s20 + $0x20] sm:$0xff] %v3738_v21  ;;  %v3665_v61 = vadd.f32 %v4140_v34, %v6837_v37  ;;  %v3700_v47 = vadd.f32 %v4161_v60, %v6837_v37 }
 0x989   : > { %v3739_v56 = vadd.f32 %v3723_v31, %v3665_v61  ;;  %v3746_v39 = vadd.f32 %v3730_v27, %v3700_v47 }
 0x98b   : > { %3755 = vst [vmem:[%s5436_s20 + $0x28] sm:$0xff] %v3739_v56  ;;  %3762 = vst [vmem:[%s5436_s20 + $0x60] sm:$0xff] %v3746_v39 }
 0x98c   : > { %v4162_v35 = vpop.f32.mrf.mxu1 }
 0x98e   : > { %v4163_v49 = vpop.f32.mrf.mxu1 }
 0x98f   : > { %v4164_v62 = vadd.f32 %v4163_v49, %v4162_v35 }
 0x991   : > { %v3705_v23 = vadd.f32 %v4164_v62, %v6837_v37 }
 0x993   : > { %v3747_v59 = vadd.f32 %v3731_v19, %v3705_v23 }
 0x995   : > { %3763 = vst [vmem:[%s5436_s20 + $0x68] sm:$0xff] %v3747_v59 }
 0x996   : > { %v4141_v0 = vpop.f32.mrf.mxu0 }
 0x998   : > { %v4142_v30 = vpop.f32.mrf.mxu0 }
 0x999   : > { %v4143_v1 = vadd.f32 %v4142_v30, %v4141_v0 }
 0x99a   : > { %v4165_v6 = vpop.f32.mrf.mxu1  ;;  %v4144_v40 = vpop.f32.mrf.mxu0 }
 0x99b   : > { %v3670_v44 = vadd.f32 %v4143_v1, %v6837_v37 }
 0x99c   : > { %v4166_v50 = vpop.f32.mrf.mxu1  ;;  %v4145_v12 = vpop.f32.mrf.mxu0 }
 0x99d   : > { %v3740_v11 = vadd.f32 %v3724_v28, %v3670_v44  ;;  %v4167_v4 = vadd.f32 %v4166_v50, %v4165_v6  ;;  %v4146_v43 = vadd.f32 %v4145_v12, %v4144_v40 }
 0x99f   : > { %3756 = vst [vmem:[%s5436_s20 + $0x30] sm:$0xff] %v3740_v11  ;;  %v3710_v48 = vadd.f32 %v4167_v4, %v6837_v37  ;;  %v3675_v57 = vadd.f32 %v4146_v43, %v6837_v37 }
 0x9a1   : > { %v3748_v16 = vadd.f32 %v3732_v17, %v3710_v48  ;;  %v3741_v13 = vadd.f32 %v3725_v46, %v3675_v57 }
 0x9a3   : > { %3764 = vst [vmem:[%s5436_s20 + $0x70] sm:$0xff] %v3748_v16  ;;  %3757 = vst [vmem:[%s5436_s20 + $0x38] sm:$0xff] %v3741_v13 }
 0x9a4   : > { %v4168_v54 = vpop.f32.mrf.mxu1 }
 0x9a6   : > { %v4169_v7 = vpop.f32.mrf.mxu1 }
 0x9a7   : > { %v4170_v14 = vadd.f32 %v4169_v7, %v4168_v54 }
 0x9a9   : > { %v3715_v24 = vadd.f32 %v4170_v14, %v6837_v37 }
 0x9ab   : > { %v3749_v22 = vadd.f32 %v3733_v41, %v3715_v24 }
 0x9ad   : > { %3765 = vst [vmem:[%s5436_s20 + $0x78] sm:$0xff] %v3749_v22 }
 0x9ae PF: > { %s7124_s30 = sld [smem:[#allocation23_spill]]  ;;  %s3782_s12 = sshll.u32 %s5436_s20, 4  ;;  %s6890_s12 = int_to_ptr.vmem [resolvable:$true] %s3782_s12 }
 0x9af   : > { %s7125_s5 = sld [smem:[#allocation24_spill]]  ;;  %s3767_s22 = scalar_lea.sflag [#allocation8], %s5410_s7 }
 0x9b0   : > { %s7127_s2 = sld [smem:[#allocation65_spill]]  ;;  %s4968_s11 = scalar_lea.vmem %s6890_s12, 2048 }
 0x9b1   : > { %p4969_p1 = scmp.ne.s32.totalorder %s6890_s12, %s4968_s11  ;;  %s5138_s6 = smov [#allocation15]  }
 0x9b2   : > { %s4972_s20 = sshll.u32 %s5138_s6, 4  ;;  %s4973_s20 = int_to_ptr.vmem [resolvable:$false] %s4972_s20 }
 0x9b3   : > { %p4970_p8 = pnand %p4969_p1, %p5337_p5  ;;  %p4975_p9 = scmp.lt.s32.totalorder %s6890_s12, %s4973_s20 }
 0x9b4   : > { %s3958_s21 = sshll.u32 %s7124_s30, 4  ;;  %s4974_s30 = scalar_lea.vmem %s4973_s20, 4096 }
 0x9b5   : > { %s3959_s26 = sshll.u32 %s7125_s5, 5  ;;  %p4971_p7 = pneg %p4970_p8 }
 0x9b6   : > { %s3779_s24 = sadd.s32 %s3959_s26, %s3958_s21  ;;  %p4976_p12 = scmp.lt.s32.totalorder %s4974_s30, %s4968_s11 }
 0x9b7   : > { %s3960_s19 = sshll.u32 %s3779_s24, 7 }
 0x9b8   : > { %s6895_s4 = scalar_lea.hbm %s7127_s2, %s3960_s19  ;;  %p4977_p6 = por %p4976_p12, %p4975_p9 }
 0x9ba   : > { %p4978_p10 = pnand %p4977_p6, %p4971_p7 }
 0x9bc   : > { %4981 = shalt.err (!%p4978_p10)
}
 0x9bd   : > { %s4982_s5 = scalar_lea.hbm %s6895_s4, 2048  ;;  %s4986_s24 = scalar_lea.hbm %s7127_s2, 8192 }
 0x9be   : > { %p4983_p13 = scmp.ne.s32.totalorder %s6895_s4, %s4982_s5  ;;  %p4987_p3 = scmp.lt.s32.totalorder %s6895_s4, %s7127_s2 }
 0x9bf   : > { %p4988_p11 = scmp.lt.s32.totalorder %s4986_s24, %s4982_s5 }
 0x9c0   : > { %p4984_p2 = pnand %p4983_p13, %p5337_p5 }
 0x9c1   : > { %p4989_p0 = por %p4988_p11, %p4987_p3 }
 0x9c2   : > { %p4985_p4 = pneg %p4984_p2 }
 0x9c4   : > { %p4990_p1 = pnand %p4989_p0, %p4985_p4 }
 0x9c6   : > { %4993 = shalt.err (!%p4990_p1)
}
 0x9c7   : > { %s5139_s23 = smov 128   ;;  %s5140_s11 = smov 8  }
 0x9c8   : > { %4475 = dma.vmem_to_hbm [thread:$0]  (%p5337_p5), %s6890_s12, 2048, %s6895_s4, %s3767_s22, %s5139_s23, %s5139_s23, %s5140_s11  }
 0x9c9 PF: > { %s7128_s6 = sld [smem:[#allocation21_spill]]  ;;  %p4505_p8 = scmp.ge.s32.totalorder %s5116_s17, 2 }
 0x9ca   : > { %s7129_s20 = sld [smem:[#allocation28_spill]] }
 0x9cf   : > { %s3797_s30 = sand.u32 1, %s7128_s6  }
 0x9d0   : > { %p7130_p7 = scmp.ne.s32.totalorder %s7129_s20, 0  ;;  %s3798_s5 = scalar_lea.sflag [#allocation8], %s3797_s30 }
 0x9d2   : > { %p4495_p9 = pnand %p4505_p8, %p7130_p7 }
 0x9d4   : > { %p4496_p12 = pneg %p4495_p9 }
 0x9d6   : > { %5063 = dma.done.wait (%p4496_p12), %s3798_s5, 2048  }
 0x9d7   : > { %5065 = vsyncadd (%p4496_p12), %s3798_s5, 4294965248  ;;  %s28_s17 = sadd.s32 1, %s5116_s17   ;;  %s7132_s7 = sld [smem:[#allocation29_spill]] }
 0x9d8   : > { %p6925_p6 = scmp.ge.s32.totalorder %s28_s17, 10   ;;  %s7133_s4 = sld [smem:[#allocation31_spill]] }
 0x9d9   : > { %s7134_s22 = smov %s7156_s27  ;;  %s7135_s27 = smov %s5072_s28 }
 0x9da   : > { %s7136_s28 = smov %s5076_s29  ;;  %s7137_s29 = smov %s5383_s8 }
 0x9db   : > { %s7138_s30 = smov %s5084_s9  ;;  %s7139_s9 = smov %s5088_s10 }
 0x9dc   : > { %s7140_s10 = smov %s5358_s3  ;;  %s7141_s11 = smov %s5104_s14 }
 0x9dd   : > { %s7142_s12 = smov %s5108_s15  ;;  %s7143_s13 = smov %s5112_s16 }
 0x9de   : > { %s7144_s14 = smov %s7132_s7  ;;  %s7145_s15 = smov %s7133_s4 }
 0x9df   : > { %s7146_s16 = smov %s7134_s22  ;;  %27 = sbr.rel (!%p6925_p6) target bundleno = 21 (0x15), region = 130 }
 0x9e4   :  { %3803 = vsyncpa [#allocation7], 1 }
 0x9e5   :  { %3805 = vsyncpa [#allocation7 + $0x1], 1 }
 0x9e6   :  { %3806 = vsyncpa [#allocation10], 1 }
 0x9e7   :  { %3808 = vsyncpa [#allocation10 + $0x1], 1 }
 0x9e8   :  { %3809 = vsyncpa [#allocation13], 1 }
 0x9e9   :  { %3810 = vsyncpa [#allocation8], 1 }
 0x9ea   :  { %3812 = vsyncpa [#allocation8 + $0x1], 1 }

</bundles_post_ra>
